<compile_context>
chip_gen: v6e
topology: v6e:2x2x1
jax: 0.10.0
libtpu: 0.0.40
codegen_flags: <defaults>
</compile_context>

<pallas_src>
import functools

import numpy as np
import jax
import jax.numpy as jnp
from jax import lax
from jax.experimental import pallas as pl
from jax.experimental.pallas import tpu as pltpu

_K, _STRIDE, _PAD = 3, 2, 1


# ---------------------------------------------------------------------------
# Static 0/1 tap-selection tensors (numpy, built once per trace)
# ---------------------------------------------------------------------------
def _col_select(in_w, out_w, transpose):
    """(3, in_w, out_w) 0/1 matrices: W-tap selection incl. padding."""
    iw = np.arange(in_w)[:, None]
    ow = np.arange(out_w)[None, :]
    mats = []
    for kw in range(_K):
        if transpose:      # ConvTranspose: ow = 2*iw + kw - 1
            m = ow == _STRIDE * iw + kw - _PAD
        else:              # Conv:          iw = 2*ow + kw - 1
            m = iw == _STRIDE * ow + kw - _PAD
        mats.append(m.astype(np.float32))
    return np.stack(mats)


def _conv_rowsel(p_out, halo):
    """(3, p_out, 2*p_out+1) H-tap selection for a stride-2 conv whose input is a
    pack of 2*p_out image rows plus either a leading halo row (halo=True) or a
    trailing 'previous pack last row' slot (halo=False)."""
    e_dim = 2 * p_out + 1
    sel = np.zeros((_K, p_out, e_dim), np.float32)
    for kh in range(_K):
        for r in range(p_out):
            d = _STRIDE * r + kh - _PAD              # input row within pack (may be -1)
            e = d + 1 if halo else (d if d >= 0 else e_dim - 1)
            sel[kh, r, e] = 1.0
    return sel


def _deconv_rowsel(p_out):
    """(3, p_out, p_out//2+1) H-tap selection for a stride-2 transposed conv whose
    input is a pack of p_out//2 image rows plus a 'next pack first row' slot."""
    p_in = p_out // 2
    e_dim = p_in + 1
    sel = np.zeros((_K, p_out, e_dim), np.float32)
    for kh in range(_K):
        for r in range(p_out):
            v = r - kh + _PAD                        # = 2*j if this tap contributes
            if v >= 0 and v % 2 == 0:
                sel[kh, r, v // 2] = 1.0             # v//2 == p_in -> shifted slot
    return sel


def _fold(weight, bias, in_w, rowsel, *, transpose):
    """Fold (kh, kw, stride, pad, channel-mix) into one (K, N) bf16 RHS + bias row."""
    if transpose:          # torch ConvTranspose2d weight: (Cin, Cout, kh, kw)
        c_in, c_out = weight.shape[0], weight.shape[1]
        out_w = _STRIDE * in_w
        w4 = jnp.transpose(weight, (2, 3, 0, 1))     # (kh, kw, ci, co)
    else:                  # torch Conv2d weight: (Cout, Cin, kh, kw)
        c_out, c_in = weight.shape[0], weight.shape[1]
        out_w = in_w // _STRIDE
        w4 = jnp.transpose(weight, (2, 3, 1, 0))     # (kh, kw, ci, co)

    cs = _col_select(in_w, out_w, transpose)          # (3, in_w, out_w)
    # rhs[(e, iw, ci), (r, ow, co)]
    rhs = jnp.einsum("hre,wio,hwcd->eicrod", rowsel, cs, w4)
    e_dim, p_out = rowsel.shape[2], rowsel.shape[1]
    rhs = rhs.reshape(e_dim * in_w * c_in, p_out * out_w * c_out).astype(jnp.bfloat16)
    brow = jnp.tile(bias, p_out * out_w).reshape(1, p_out * out_w * c_out)
    return rhs, brow.astype(jnp.float32)


# ---------------------------------------------------------------------------
# Fused forward kernel: 4 layers, one MXU matmul each, activations in VMEM
# ---------------------------------------------------------------------------
def _dae_kernel(x_ref, w1_ref, b1_ref, w2_ref, b2_ref, w3_ref, b3_ref,
                w4_ref, b4_ref, o_ref, *, s, k1, k2, k3):
    rows = x_ref.shape[0]
    pack_id = lax.broadcasted_iota(jnp.int32, (rows, 1), 0) % s
    have_prev = pack_id > 0            # a previous pack of the SAME sample exists
    have_next = pack_id < (s - 1)      # a next pack of the SAME sample exists

    def shift_down(blk):               # row g <- row g-1, zero at sample start
        z = jnp.zeros((1, blk.shape[1]), blk.dtype)
        sh = jnp.concatenate([z, blk[:-1, :]], axis=0)
        return jnp.where(have_prev, sh, jnp.zeros_like(sh))

    def shift_up(blk):                 # row g <- row g+1, zero at sample end
        z = jnp.zeros((1, blk.shape[1]), blk.dtype)
        sh = jnp.concatenate([blk[1:, :], z], axis=0)
        return jnp.where(have_next, sh, jnp.zeros_like(sh))

    def dense(lhs, w_ref, b_ref):
        return jnp.dot(lhs, w_ref[...], preferred_element_type=jnp.float32) + b_ref[...]

    # L1: conv 1->32 (input pack carries its own zero halo row; single matmul)
    h1 = jnp.maximum(dense(x_ref[...], w1_ref, b1_ref), 0.0)
    h1 = h1.astype(jnp.bfloat16)                          # (rows, 4*(W/2)*32)

    # L2: conv 32->64; extra operand = previous pack's LAST image row
    lhs2 = jnp.concatenate([h1, shift_down(h1[:, -k1:])], axis=1)
    h2 = jnp.maximum(dense(lhs2, w2_ref, b2_ref), 0.0)
    h2 = h2.astype(jnp.bfloat16)                          # (rows, 2*(W/4)*64)

    # L3: transposed conv 64->32; extra operand = next pack's FIRST image row
    lhs3 = jnp.concatenate([h2, shift_up(h2[:, :k2])], axis=1)
    h3 = jnp.maximum(dense(lhs3, w3_ref, b3_ref), 0.0)
    h3 = h3.astype(jnp.bfloat16)                          # (rows, 4*(W/2)*32)

    # L4: transposed conv 32->1 + sigmoid (exact; output is lane-dense 8*W)
    lhs4 = jnp.concatenate([h3, shift_up(h3[:, :k3])], axis=1)
    z = dense(lhs4, w4_ref, b4_ref)                       # (rows, 8*W)
    o_ref[...] = 1.0 / (1.0 + jnp.exp(-z))


# ---------------------------------------------------------------------------
# Wrapper
# ---------------------------------------------------------------------------
def _pick_block_batch(n, s, target):
    target = max(1, min(int(target), n))
    if n >= 2:                          # keep >=2 grid steps so v7x megacore helps
        target = max(1, min(target, n // 2))
    divisors = [d for d in range(1, n + 1) if n % d == 0 and d <= target]
    aligned = [d for d in divisors if (s * d) % 8 == 0]   # 8-row aligned blocks
    return (aligned or divisors)[-1]


@functools.partial(jax.jit, static_argnames=("block_batch",))
def denoising_autoencoder(x_nchw, params, block_batch=128):
    n, c, h, w = x_nchw.shape
    assert c == 1, "DenoisingAutoencoder expects a single input channel"
    assert h % 8 == 0 and w % 4 == 0, "this packing requires H % 8 == 0, W % 4 == 0"
    s = h // 8                                # packed rows per sample
    bt = _pick_block_batch(n, s, block_batch)
    rows = s * bt                             # matrix rows per grid step (matmul M)

    # ---- fold the four conv layers into resident (K, N) bf16 matrices --------
    w1, b1 = _fold(params["enc1_w"], params["enc1_b"], w,      _conv_rowsel(4, halo=True),  transpose=False)
    w2, b2 = _fold(params["enc2_w"], params["enc2_b"], w // 2, _conv_rowsel(2, halo=False), transpose=False)
    w3, b3 = _fold(params["dec1_w"], params["dec1_b"], w // 4, _deconv_rowsel(4),           transpose=True)
    w4, b4 = _fold(params["dec2_w"], params["dec2_b"], w // 2, _deconv_rowsel(8),           transpose=True)

    # per-layer widths of the "pack-boundary row" blocks appended to the LHS
    k1 = (w // 2) * 32        # last image row of a conv1-output pack
    k2 = (w // 4) * 64        # first image row of a conv2-output pack
    k3 = (w // 2) * 32        # first image row of a deconv1-output pack

    # ---- wrapper-side layout plumbing: NCHW -> row-packed, halo'd, bf16 -------
    img = x_nchw[:, 0]                                    # (n, h, w)
    img = jnp.pad(img, ((0, 0), (1, 0), (0, 0)))          # one zero halo row on top
    packs = [img[:, 8 * t: 8 * t + 9, :] for t in range(s)]
    xin = jnp.stack(packs, axis=1).reshape(n * s, 9 * w).astype(jnp.bfloat16)

    # ---- cost hint for the XLA scheduler ---------------------------------------
    flops = 2 * n * s * sum(int(a.shape[0]) * int(a.shape[1]) for a in (w1, w2, w3, w4))
    bytes_accessed = (int(xin.size) * 2 + n * s * 8 * w * 4
                      + sum(int(a.size) * 2 for a in (w1, w2, w3, w4)))
    cost = pl.CostEstimate(flops=flops, transcendentals=n * h * w,
                           bytes_accessed=bytes_accessed)

    const = lambda shape: pl.BlockSpec(shape, lambda i: (0,) * len(shape))

    out2d = pl.pallas_call(
        functools.partial(_dae_kernel, s=s, k1=k1, k2=k2, k3=k3),
        out_shape=jax.ShapeDtypeStruct((n * s, 8 * w), jnp.float32),
        grid=(n // bt,),
        in_specs=[
            pl.BlockSpec((rows, 9 * w), lambda i: (i, 0)),
            const(w1.shape), const(b1.shape),
            const(w2.shape), const(b2.shape),
            const(w3.shape), const(b3.shape),
            const(w4.shape), const(b4.shape),
        ],
        out_specs=pl.BlockSpec((rows, 8 * w), lambda i: (i, 0)),
        compiler_params=pltpu.CompilerParams(
            dimension_semantics=("parallel",),           # megacore: batch tiles
            vmem_limit_bytes=48 * 1024 * 1024),
        cost_estimate=cost,
    )(xin, w1, b1, w2, b2, w3, b3, w4, b4)

    # row-packed (n*s, 8*w) -> NCHW
    out = out2d.reshape(n, s, 8, w).reshape(n, h, w)
    return out[:, None, :, :]


# ---------------------------------------------------------------------------
# Parameters (deterministic synthetic init, PyTorch-like uniform bounds)
# ---------------------------------------------------------------------------
def init_params(key):
    def uconv(key, shape, fan_in):
        bound = 1.0 / jnp.sqrt(fan_in)
        return jax.random.uniform(key, shape, jnp.float32, -bound, bound)

    ks = jax.random.split(key, 8)
    return {
        "enc1_w": uconv(ks[0], (32, 1, 3, 3), 1 * 9),    # Conv2d(1, 32, 3)
        "enc1_b": uconv(ks[1], (32,), 1 * 9),
        "enc2_w": uconv(ks[2], (64, 32, 3, 3), 32 * 9),  # Conv2d(32, 64, 3)
        "enc2_b": uconv(ks[3], (64,), 32 * 9),
        "dec1_w": uconv(ks[4], (64, 32, 3, 3), 64 * 9),  # ConvTranspose2d(64, 32, 3)
        "dec1_b": uconv(ks[5], (32,), 64 * 9),
        "dec2_w": uconv(ks[6], (32, 1, 3, 3), 32 * 9),   # ConvTranspose2d(32, 1, 3)
        "dec2_b": uconv(ks[7], (1,), 32 * 9),
    }


# ---------------------------------------------------------------------------
# Pure-XLA reference (exact PyTorch semantics) for the correctness check
# ---------------------------------------------------------------------------
def _reference_forward(x_nchw, params):
    def conv(x, w, b):
        y = lax.conv_general_dilated(
            x, w, window_strides=(2, 2), padding=((1, 1), (1, 1)),
            dimension_numbers=("NCHW", "OIHW", "NCHW"))
        return y + b.reshape(1, -1, 1, 1)

    def conv_t(x, w, b):
        # ConvTranspose2d(k=3, s=2, p=1, output_padding=1) as a dilated conv
        w_conv = jnp.transpose(w[:, :, ::-1, ::-1], (1, 0, 2, 3))
        y = lax.conv_general_dilated(
            x, w_conv, window_strides=(1, 1), padding=((1, 2), (1, 2)),
            lhs_dilation=(2, 2), dimension_numbers=("NCHW", "OIHW", "NCHW"))
        return y + b.reshape(1, -1, 1, 1)

    x = jax.nn.relu(conv(x_nchw, params["enc1_w"], params["enc1_b"]))
    x = jax.nn.relu(conv(x, params["enc2_w"], params["enc2_b"]))
    x = jax.nn.relu(conv_t(x, params["dec1_w"], params["dec1_b"]))
    return jax.nn.sigmoid(conv_t(x, params["dec2_w"], params["dec2_b"]))


if __name__ == "__main__":
    key = jax.random.PRNGKey(0)
    k_param, k_x = jax.random.split(key)
    params = init_params(k_param)

    # small single-channel images consistent with the module
    x = jax.random.uniform(k_x, (8, 1, 16, 16), jnp.float32)

    # batch tile = 4 -> grid of 2 (exercises the pipelined, megacore-parallel grid)
    y = denoising_autoencoder(x, params)
    jax.block_until_ready(y)

    assert y.shape == (8, 1, 16, 16), y.shape
    assert bool(jnp.all((y >= 0.0) & (y <= 1.0))), "sigmoid output out of range"

    y_ref = _reference_forward(x, params)
    err = float(jnp.max(jnp.abs(y - y_ref)))
    assert err < 5e-2, f"mismatch vs XLA reference: max abs err = {err}"

    print("KERNEL_OK")
</pallas_src>

<mosaic_0001>
module attributes {stable_mosaic.version = 11 : i64} {
  func.func @_dae_kernel(%arg0: i32, %arg1: memref<8x144xbf16, #tpu.memory_space<vmem>>, %arg2: memref<144x1024xbf16, #tpu.memory_space<vmem>>, %arg3: memref<1x1024xf32, #tpu.memory_space<vmem>>, %arg4: memref<1280x512xbf16, #tpu.memory_space<vmem>>, %arg5: memref<1x512xf32, #tpu.memory_space<vmem>>, %arg6: memref<768x1024xbf16, #tpu.memory_space<vmem>>, %arg7: memref<1x1024xf32, #tpu.memory_space<vmem>>, %arg8: memref<1280x128xbf16, #tpu.memory_space<vmem>>, %arg9: memref<1x128xf32, #tpu.memory_space<vmem>>, %arg10: memref<8x128xf32, #tpu.memory_space<vmem>>) attributes {dimension_semantics = [#tpu.dimension_semantics<parallel>], iteration_bounds = array<i64: 2>, scalar_prefetch = 0 : i64, scratch_operands = 0 : i64, tpu.core_type = #tpu.core_type<tc>, window_params = [{transform_indices = @transform_0, window_bounds = array<i64: 8, 144>}, {pipeline_mode = #tpu.pipeline_mode<synchronous>, transform_indices = @transform_1, window_bounds = array<i64: 144, 1024>}, {pipeline_mode = #tpu.pipeline_mode<synchronous>, transform_indices = @transform_2, window_bounds = array<i64: 1, 1024>}, {pipeline_mode = #tpu.pipeline_mode<synchronous>, transform_indices = @transform_3, window_bounds = array<i64: 1280, 512>}, {pipeline_mode = #tpu.pipeline_mode<synchronous>, transform_indices = @transform_4, window_bounds = array<i64: 1, 512>}, {pipeline_mode = #tpu.pipeline_mode<synchronous>, transform_indices = @transform_5, window_bounds = array<i64: 768, 1024>}, {pipeline_mode = #tpu.pipeline_mode<synchronous>, transform_indices = @transform_6, window_bounds = array<i64: 1, 1024>}, {pipeline_mode = #tpu.pipeline_mode<synchronous>, transform_indices = @transform_7, window_bounds = array<i64: 1280, 128>}, {pipeline_mode = #tpu.pipeline_mode<synchronous>, transform_indices = @transform_8, window_bounds = array<i64: 1, 128>}, {transform_indices = @transform_9, window_bounds = array<i64: 8, 128>}]} {
    %0 = tpu.iota {dimensions = array<i32: 0>} : vector<8x1xi32>
    %c2_i32 = arith.constant 2 : i32
    %c0_i32 = arith.constant 0 : i32
    %1 = arith.cmpi eq, %c2_i32, %c0_i32 : i32
    %c1_i32 = arith.constant 1 : i32
    %2 = arith.select %1, %c1_i32, %c2_i32 : i32
    %3 = vector.broadcast %2 : i32 to vector<8x1xi32>
    %4 = arith.remsi %0, %3 : vector<8x1xi32>
    %c0_i32_0 = arith.constant 0 : i32
    %5 = vector.broadcast %c0_i32_0 : i32 to vector<8x1xi32>
    %6 = arith.cmpi ne, %4, %5 : vector<8x1xi32>
    %c0_i32_1 = arith.constant 0 : i32
    %7 = vector.broadcast %c0_i32_1 : i32 to vector<8x1xi32>
    %8 = arith.cmpi slt, %4, %7 : vector<8x1xi32>
    %c0_i32_2 = arith.constant 0 : i32
    %9 = arith.cmpi slt, %2, %c0_i32_2 : i32
    %10 = vector.broadcast %9 : i1 to vector<8x1xi1>
    %11 = vector.broadcast %10 : vector<8x1xi1> to vector<8x1xi1>
    %12 = arith.xori %8, %11 : vector<8x1xi1>
    %13 = arith.andi %12, %6 : vector<8x1xi1>
    %14 = vector.broadcast %2 : i32 to vector<8x1xi32>
    %15 = arith.addi %4, %14 : vector<8x1xi32>
    %16 = arith.select %13, %15, %4 : vector<8x1xi1>, vector<8x1xi32>
    %c0_i32_3 = arith.constant 0 : i32
    %17 = vector.broadcast %c0_i32_3 : i32 to vector<8x1xi32>
    %18 = arith.cmpi sgt, %16, %17 : vector<8x1xi32>
    %c1_i32_4 = arith.constant 1 : i32
    %19 = vector.broadcast %c1_i32_4 : i32 to vector<8x1xi32>
    %20 = arith.cmpi slt, %16, %19 : vector<8x1xi32>
    %c0 = arith.constant 0 : index
    %c0_5 = arith.constant 0 : index
    %21 = vector.load %arg1[%c0, %c0_5] : memref<8x144xbf16, #tpu.memory_space<vmem>>, vector<8x144xbf16>
    %c0_6 = arith.constant 0 : index
    %c0_7 = arith.constant 0 : index
    %22 = vector.load %arg2[%c0_6, %c0_7] : memref<144x1024xbf16, #tpu.memory_space<vmem>>, vector<144x1024xbf16>
    %cst = arith.constant dense<0.000000e+00> : vector<8x1024xf32>
    %23 = tpu.matmul %21, %22, %cst {dimension_numbers = #tpu.dot_dimension_numbers<[1], [0], [0], [1], [0, 0, 1, 1], [], []>} : vector<8x144xbf16>, vector<144x1024xbf16>, vector<8x1024xf32> -> vector<8x1024xf32>
    %c0_8 = arith.constant 0 : index
    %c0_9 = arith.constant 0 : index
    %24 = vector.load %arg3[%c0_8, %c0_9] : memref<1x1024xf32, #tpu.memory_space<vmem>>, vector<1x1024xf32>
    %25 = vector.broadcast %24 : vector<1x1024xf32> to vector<8x1024xf32>
    %26 = arith.addf %23, %25 : vector<8x1024xf32>
    %cst_10 = arith.constant 0.000000e+00 : f32
    %27 = vector.broadcast %cst_10 : f32 to vector<8x1024xf32>
    %28 = arith.maximumf %26, %27 : vector<8x1024xf32>
    %29 = arith.truncf %28 : vector<8x1024xf32> to vector<8x1024xbf16>
    %30 = vector.extract_strided_slice %29 {offsets = [0, 768], sizes = [8, 256], strides = [1, 1]} : vector<8x1024xbf16> to vector<8x256xbf16>
    %cst_11 = arith.constant 0.000000e+00 : bf16
    %31 = vector.broadcast %cst_11 : bf16 to vector<1x256xbf16>
    %32 = vector.extract_strided_slice %30 {offsets = [0, 0], sizes = [7, 256], strides = [1, 1]} : vector<8x256xbf16> to vector<7x256xbf16>
    %33 = tpu.concatenate %31, %32 in 0 : vector<1x256xbf16>, vector<7x256xbf16> -> vector<8x256xbf16>
    %cst_12 = arith.constant 0.000000e+00 : bf16
    %34 = vector.broadcast %cst_12 : bf16 to vector<8x256xbf16>
    %35 = vector.shape_cast %18 : vector<8x1xi1> to vector<8x1xi1>
    %36 = vector.broadcast %35 : vector<8x1xi1> to vector<8x256xi1>
    %37 = arith.select %36, %33, %34 : vector<8x256xi1>, vector<8x256xbf16>
    %38 = tpu.concatenate %29, %37 in 1 : vector<8x1024xbf16>, vector<8x256xbf16> -> vector<8x1280xbf16>
    %c0_13 = arith.constant 0 : index
    %c0_14 = arith.constant 0 : index
    %39 = vector.load %arg4[%c0_13, %c0_14] : memref<1280x512xbf16, #tpu.memory_space<vmem>>, vector<1280x512xbf16>
    %cst_15 = arith.constant dense<0.000000e+00> : vector<8x512xf32>
    %40 = tpu.matmul %38, %39, %cst_15 {dimension_numbers = #tpu.dot_dimension_numbers<[1], [0], [0], [1], [0, 0, 1, 1], [], []>} : vector<8x1280xbf16>, vector<1280x512xbf16>, vector<8x512xf32> -> vector<8x512xf32>
    %c0_16 = arith.constant 0 : index
    %c0_17 = arith.constant 0 : index
    %41 = vector.load %arg5[%c0_16, %c0_17] : memref<1x512xf32, #tpu.memory_space<vmem>>, vector<1x512xf32>
    %42 = vector.broadcast %41 : vector<1x512xf32> to vector<8x512xf32>
    %43 = arith.addf %40, %42 : vector<8x512xf32>
    %cst_18 = arith.constant 0.000000e+00 : f32
    %44 = vector.broadcast %cst_18 : f32 to vector<8x512xf32>
    %45 = arith.maximumf %43, %44 : vector<8x512xf32>
    %46 = arith.truncf %45 : vector<8x512xf32> to vector<8x512xbf16>
    %47 = vector.extract_strided_slice %46 {offsets = [0, 0], sizes = [8, 256], strides = [1, 1]} : vector<8x512xbf16> to vector<8x256xbf16>
    %cst_19 = arith.constant 0.000000e+00 : bf16
    %48 = vector.broadcast %cst_19 : bf16 to vector<1x256xbf16>
    %49 = vector.extract_strided_slice %47 {offsets = [1, 0], sizes = [7, 256], strides = [1, 1]} : vector<8x256xbf16> to vector<7x256xbf16>
    %50 = tpu.concatenate %49, %48 in 0 : vector<7x256xbf16>, vector<1x256xbf16> -> vector<8x256xbf16>
    %cst_20 = arith.constant 0.000000e+00 : bf16
    %51 = vector.broadcast %cst_20 : bf16 to vector<8x256xbf16>
    %52 = vector.shape_cast %20 : vector<8x1xi1> to vector<8x1xi1>
    %53 = vector.broadcast %52 : vector<8x1xi1> to vector<8x256xi1>
    %54 = arith.select %53, %50, %51 : vector<8x256xi1>, vector<8x256xbf16>
    %55 = tpu.concatenate %46, %54 in 1 : vector<8x512xbf16>, vector<8x256xbf16> -> vector<8x768xbf16>
    %c0_21 = arith.constant 0 : index
    %c0_22 = arith.constant 0 : index
    %56 = vector.load %arg6[%c0_21, %c0_22] : memref<768x1024xbf16, #tpu.memory_space<vmem>>, vector<768x1024xbf16>
    %cst_23 = arith.constant dense<0.000000e+00> : vector<8x1024xf32>
    %57 = tpu.matmul %55, %56, %cst_23 {dimension_numbers = #tpu.dot_dimension_numbers<[1], [0], [0], [1], [0, 0, 1, 1], [], []>} : vector<8x768xbf16>, vector<768x1024xbf16>, vector<8x1024xf32> -> vector<8x1024xf32>
    %c0_24 = arith.constant 0 : index
    %c0_25 = arith.constant 0 : index
    %58 = vector.load %arg7[%c0_24, %c0_25] : memref<1x1024xf32, #tpu.memory_space<vmem>>, vector<1x1024xf32>
    %59 = vector.broadcast %58 : vector<1x1024xf32> to vector<8x1024xf32>
    %60 = arith.addf %57, %59 : vector<8x1024xf32>
    %cst_26 = arith.constant 0.000000e+00 : f32
    %61 = vector.broadcast %cst_26 : f32 to vector<8x1024xf32>
    %62 = arith.maximumf %60, %61 : vector<8x1024xf32>
    %63 = arith.truncf %62 : vector<8x1024xf32> to vector<8x1024xbf16>
    %64 = vector.extract_strided_slice %63 {offsets = [0, 0], sizes = [8, 256], strides = [1, 1]} : vector<8x1024xbf16> to vector<8x256xbf16>
    %cst_27 = arith.constant 0.000000e+00 : bf16
    %65 = vector.broadcast %cst_27 : bf16 to vector<1x256xbf16>
    %66 = vector.extract_strided_slice %64 {offsets = [1, 0], sizes = [7, 256], strides = [1, 1]} : vector<8x256xbf16> to vector<7x256xbf16>
    %67 = tpu.concatenate %66, %65 in 0 : vector<7x256xbf16>, vector<1x256xbf16> -> vector<8x256xbf16>
    %cst_28 = arith.constant 0.000000e+00 : bf16
    %68 = vector.broadcast %cst_28 : bf16 to vector<8x256xbf16>
    %69 = vector.shape_cast %20 : vector<8x1xi1> to vector<8x1xi1>
    %70 = vector.broadcast %69 : vector<8x1xi1> to vector<8x256xi1>
    %71 = arith.select %70, %67, %68 : vector<8x256xi1>, vector<8x256xbf16>
    %72 = tpu.concatenate %63, %71 in 1 : vector<8x1024xbf16>, vector<8x256xbf16> -> vector<8x1280xbf16>
    %c0_29 = arith.constant 0 : index
    %c0_30 = arith.constant 0 : index
    %73 = vector.load %arg8[%c0_29, %c0_30] : memref<1280x128xbf16, #tpu.memory_space<vmem>>, vector<1280x128xbf16>
    %cst_31 = arith.constant dense<0.000000e+00> : vector<8x128xf32>
    %74 = tpu.matmul %72, %73, %cst_31 {dimension_numbers = #tpu.dot_dimension_numbers<[1], [0], [0], [1], [0, 0, 1, 1], [], []>} : vector<8x1280xbf16>, vector<1280x128xbf16>, vector<8x128xf32> -> vector<8x128xf32>
    %c0_32 = arith.constant 0 : index
    %c0_33 = arith.constant 0 : index
    %75 = vector.load %arg9[%c0_32, %c0_33] : memref<1x128xf32, #tpu.memory_space<vmem>>, vector<1x128xf32>
    %76 = vector.broadcast %75 : vector<1x128xf32> to vector<8x128xf32>
    %77 = arith.addf %74, %76 : vector<8x128xf32>
    %cst_34 = arith.constant 0.000000e+00 : f32
    %78 = vector.broadcast %cst_34 : f32 to vector<8x128xf32>
    %79 = arith.subf %78, %77 : vector<8x128xf32>
    %80 = math.exp %79 : vector<8x128xf32>
    %cst_35 = arith.constant 1.000000e+00 : f32
    %81 = vector.broadcast %cst_35 : f32 to vector<8x128xf32>
    %82 = arith.addf %81, %80 : vector<8x128xf32>
    %cst_36 = arith.constant 1.000000e+00 : f32
    %83 = vector.broadcast %cst_36 : f32 to vector<8x128xf32>
    %84 = arith.divf %83, %82 : vector<8x128xf32>
    %c0_37 = arith.constant 0 : index
    %c0_38 = arith.constant 0 : index
    %85 = vector.load %arg10[%c0_37, %c0_38] : memref<8x128xf32, #tpu.memory_space<vmem>>, vector<8x128xf32>
    tpu.vector_store %arg10[%c0_37, %c0_38], %84 {strides = array<i32>} : memref<8x128xf32, #tpu.memory_space<vmem>>, vector<8x128xf32>,
    return
  }
  func.func @transform_0(%arg0: i32) -> (i32, i32) {
    %c0_i32 = arith.constant 0 : i32
    %c0_i32_0 = arith.constant 0 : i32
    return %arg0, %c0_i32 : i32, i32
  }
  func.func @transform_1(%arg0: i32) -> (i32, i32) {
    %c0_i32 = arith.constant 0 : i32
    %c0_i32_0 = arith.constant 0 : i32
    %c0_i32_1 = arith.constant 0 : i32
    return %c0_i32, %c0_i32_0 : i32, i32
  }
  func.func @transform_2(%arg0: i32) -> (i32, i32) {
    %c0_i32 = arith.constant 0 : i32
    %c0_i32_0 = arith.constant 0 : i32
    %c0_i32_1 = arith.constant 0 : i32
    return %c0_i32, %c0_i32_0 : i32, i32
  }
  func.func @transform_3(%arg0: i32) -> (i32, i32) {
    %c0_i32 = arith.constant 0 : i32
    %c0_i32_0 = arith.constant 0 : i32
    %c0_i32_1 = arith.constant 0 : i32
    return %c0_i32, %c0_i32_0 : i32, i32
  }
  func.func @transform_4(%arg0: i32) -> (i32, i32) {
    %c0_i32 = arith.constant 0 : i32
    %c0_i32_0 = arith.constant 0 : i32
    %c0_i32_1 = arith.constant 0 : i32
    return %c0_i32, %c0_i32_0 : i32, i32
  }
  func.func @transform_5(%arg0: i32) -> (i32, i32) {
    %c0_i32 = arith.constant 0 : i32
    %c0_i32_0 = arith.constant 0 : i32
    %c0_i32_1 = arith.constant 0 : i32
    return %c0_i32, %c0_i32_0 : i32, i32
  }
  func.func @transform_6(%arg0: i32) -> (i32, i32) {
    %c0_i32 = arith.constant 0 : i32
    %c0_i32_0 = arith.constant 0 : i32
    %c0_i32_1 = arith.constant 0 : i32
    return %c0_i32, %c0_i32_0 : i32, i32
  }
  func.func @transform_7(%arg0: i32) -> (i32, i32) {
    %c0_i32 = arith.constant 0 : i32
    %c0_i32_0 = arith.constant 0 : i32
    %c0_i32_1 = arith.constant 0 : i32
    return %c0_i32, %c0_i32_0 : i32, i32
  }
  func.func @transform_8(%arg0: i32) -> (i32, i32) {
    %c0_i32 = arith.constant 0 : i32
    %c0_i32_0 = arith.constant 0 : i32
    %c0_i32_1 = arith.constant 0 : i32
    return %c0_i32, %c0_i32_0 : i32, i32
  }
  func.func @transform_9(%arg0: i32) -> (i32, i32) {
    %c0_i32 = arith.constant 0 : i32
    %c0_i32_0 = arith.constant 0 : i32
    return %arg0, %c0_i32 : i32, i32
  }
}

</mosaic_0001>

<bundles_post_ra>
// kernel: tile.23
= control target key start
LH: loop header
LB: loop body
LE: loop exit
PB: predicated region body
PF: predicated region fallthrough
CT: control target
= control target key end

     0   :  { %s40_s0 = inlined_call_operand.vmem [shape: f32[32], index: 0, kind: input, shape index: {}]   ;;  %s41_s1 = inlined_call_operand.vmem [shape: f32[32,32], index: 1, kind: output, shape index: {}]  }
   0x1   :  { %v4_v0 = vld [vmem:[%s40_s0] ss:$0 sm:$0xff] }
   0x2   :  { %5 = vst [vmem:[%s41_s1] sm:$0xff] %v4_v0  ;;  %12 = vst [vmem:[%s41_s1 + $0x8] sm:$0xff] %v4_v0 }
   0x3   :  { %13 = vst [vmem:[%s41_s1 + $0x10] sm:$0xff] %v4_v0  ;;  %14 = vst [vmem:[%s41_s1 + $0x18] sm:$0xff] %v4_v0 }

// kernel: tile.24
= control target key start
LH: loop header
LB: loop body
LE: loop exit
PB: predicated region body
PF: predicated region fallthrough
CT: control target
= control target key end

     0   :  { %s102_s8 = smov 96   ;;  %vm3_vm0 = vcmask 261120   ;;  %s104_s15 = smov 64   ;;  %vm10_vm1 = vcmask 1048320   ;;  %vm17_vm2 = vcmask 785920   ;;  %vm24_vm3 = vcmask 523520   ;;  %s151_s0 = inlined_call_operand.vmem [shape: f32[32,32], index: 0, kind: input, shape index: {}]   ;;  %s152_s1 = inlined_call_operand.vmem [shape: f32[1,1024], index: 1, kind: output, shape index: {}]  }
   0x1   :  { %v89_v0 = vld [vmem:[%s151_s0 + $0x3] ss:$4 sm:$0xff]   ;;  %v91_v1 = vld [vmem:[%s151_s0 + $0x1] ss:$4 sm:$0xff]   ;;  %v2_v2 = vld [vmem:[%s151_s0] ss:$4 sm:$0xff]  }
   0x2   :  { %8 = vrot.lane.b32.xlu0 %v89_v0, %s102_s8  ;;  %v90_v3 = vld [vmem:[%s151_s0 + $0x2] ss:$4 sm:$0xff]   ;;  %s103_s0 = smov 32   ;;  %4 = vst.msk [vmem:[#allocation0] ss:$8 sm:$0xf] %vm3_vm0, %v2_v2  }
   0x3   :  { %22 = vrot.lane.b32.xlu1 %v91_v1, %s103_s0  ;;  %5 = vst.msk [vmem:[#allocation0] ss:$8 sm:$0xf0] %vm3_vm0, %v2_v2  }
   0x6   :  { %15 = vrot.lane.b32.xlu0 %v90_v3, %s104_s15 }
  0x74   :  { %v9_v4 = vpop.permute.xlu0 %8  }
  0x75   :  { %11 = vst.msk [vmem:[#allocation0] ss:$8 sm:$0xf] %vm10_vm1, %v9_v4   ;;  %12 = vst.msk [vmem:[#allocation0] ss:$8 sm:$0xf0] %vm10_vm1, %v9_v4   ;;  %v23_v5 = vpop.permute.xlu1 %22  }
  0x78   :  { %v16_v6 = vpop.permute.xlu0 %15  }
  0x79   :  { %18 = vst.msk [vmem:[#allocation0] ss:$8 sm:$0xf] %vm17_vm2, %v16_v6   ;;  %19 = vst.msk [vmem:[#allocation0] ss:$8 sm:$0xf0] %vm17_vm2, %v16_v6  }
  0x7a   :  { %25 = vst.msk [vmem:[#allocation0] ss:$8 sm:$0xf] %vm24_vm3, %v23_v5   ;;  %26 = vst.msk [vmem:[#allocation0] ss:$8 sm:$0xf0] %vm24_vm3, %v23_v5  }
  0x81   :  { %v31_v7 = vld [vmem:[#allocation0] sm:$0x1]  ;;  %v36_v8 = vld [vmem:[#allocation0 + $0x8] sm:$0x1]  ;;  %v42_v9 = vld [vmem:[#allocation0 + $0x10] sm:$0x1] }
  0x82   :  { %34 = vst [vmem:[%s152_s1] sm:$0x1] %v31_v7  ;;  %92 = vst [vmem:[%s152_s1 + $0x1] sm:$0x1] %v36_v8  ;;  %v49_v10 = vld [vmem:[#allocation0 + $0x18] sm:$0x1] }
  0x83   :  { %93 = vst [vmem:[%s152_s1 + $0x2] sm:$0x1] %v42_v9  ;;  %v56_v11 = vld [vmem:[#allocation0 + $0x20] sm:$0x1]  ;;  %v63_v12 = vld [vmem:[#allocation0 + $0x28] sm:$0x1] }
  0x84   :  { %94 = vst [vmem:[%s152_s1 + $0x3] sm:$0x1] %v49_v10  ;;  %95 = vst [vmem:[%s152_s1 + $0x4] sm:$0x1] %v56_v11  ;;  %v70_v13 = vld [vmem:[#allocation0 + $0x30] sm:$0x1] }
  0x85   :  { %96 = vst [vmem:[%s152_s1 + $0x5] sm:$0x1] %v63_v12  ;;  %v77_v14 = vld [vmem:[#allocation0 + $0x38] sm:$0x1]  ;;  %97 = vst [vmem:[%s152_s1 + $0x6] sm:$0x1] %v70_v13 }
  0x86   :  { %98 = vst [vmem:[%s152_s1 + $0x7] sm:$0x1] %v77_v14 }

// kernel: tile.28
= control target key start
LH: loop header
LB: loop body
LE: loop exit
PB: predicated region body
PF: predicated region fallthrough
CT: control target
= control target key end

     0   :  { %s22_s0 = inlined_call_operand.vmem [shape: f32[64], index: 0, kind: input, shape index: {}]   ;;  %s23_s1 = inlined_call_operand.vmem [shape: f32[8,64], index: 1, kind: output, shape index: {}]  }
   0x1   :  { %v4_v0 = vld [vmem:[%s22_s0] ss:$0 sm:$0xff] }
   0x2   :  { %5 = vst [vmem:[%s23_s1] sm:$0xff] %v4_v0 }

// kernel: tile.29
= control target key start
LH: loop header
LB: loop body
LE: loop exit
PB: predicated region body
PF: predicated region fallthrough
CT: control target
= control target key end

     0   :  { %vm3_vm0 = vcmask 523264   ;;  %s46_s8 = smov 64   ;;  %vm9_vm1 = vcmask 1048064   ;;  %s75_s0 = inlined_call_operand.vmem [shape: f32[8,64], index: 0, kind: input, shape index: {}]   ;;  %s76_s1 = inlined_call_operand.vmem [shape: f32[1,512], index: 1, kind: output, shape index: {}]  }
   0x1   :  { %v41_v0 = vld [vmem:[%s75_s0 + $0x1] ss:$2 sm:$0xf]   ;;  %v2_v1 = vld [vmem:[%s75_s0] ss:$2 sm:$0xf]  }
   0x2   :  { %7 = vrot.lane.b32.xlu0 %v41_v0, %s46_s8  ;;  %4 = vst.msk [vmem:[#allocation0] ss:$8 sm:$0xf] %vm3_vm0, %v2_v1  }
  0x74   :  { %v8_v2 = vpop.permute.xlu0 %7  }
  0x75   :  { %10 = vst.msk [vmem:[#allocation0] ss:$8 sm:$0xf] %vm9_vm1, %v8_v2  }
  0x7c   :  { %v15_v3 = vld [vmem:[#allocation0] sm:$0x1]  ;;  %v20_v4 = vld [vmem:[#allocation0 + $0x8] sm:$0x1]  ;;  %v26_v5 = vld [vmem:[#allocation0 + $0x10] sm:$0x1] }
  0x7d   :  { %18 = vst [vmem:[%s76_s1] sm:$0x1] %v15_v3  ;;  %42 = vst [vmem:[%s76_s1 + $0x1] sm:$0x1] %v20_v4  ;;  %v33_v6 = vld [vmem:[#allocation0 + $0x18] sm:$0x1] }
  0x7e   :  { %43 = vst [vmem:[%s76_s1 + $0x2] sm:$0x1] %v26_v5  ;;  %44 = vst [vmem:[%s76_s1 + $0x3] sm:$0x1] %v33_v6 }

// kernel: denoising_autoencoder.1
= control target key start
LH: loop header
LB: loop body
LE: loop exit
PB: predicated region body
PF: predicated region fallthrough
CT: control target
= control target key end

     0   :  { %s8851_s30 = smov 0   ;;  %s11821_s0 = inlined_call_operand.vmem [shape: bf16[16,144], index: 0, kind: input, shape index: {}]   ;;  %s11822_s1 = inlined_call_operand.vmem [shape: bf16[144,1024], index: 1, kind: input, shape index: {}]   ;;  %s11823_s2 = inlined_call_operand.vmem [shape: f32[1,1024], index: 2, kind: input, shape index: {}]   ;;  %s11824_s3 = inlined_call_operand.vmem [shape: bf16[1280,512], index: 3, kind: input, shape index: {}]   ;;  %s11825_s4 = inlined_call_operand.vmem [shape: f32[1,512], index: 4, kind: input, shape index: {}]   ;;  %s11826_s5 = inlined_call_operand.vmem [shape: bf16[768,1024], index: 5, kind: input, shape index: {}]   ;;  %s11827_s6 = inlined_call_operand.vmem [shape: f32[1,1024], index: 6, kind: input, shape index: {}]   ;;  %s11828_s7 = inlined_call_operand.vmem [shape: bf16[1280,128], index: 7, kind: input, shape index: {}]   ;;  %s11829_s8 = inlined_call_operand.vmem [shape: f32[1,128], index: 8, kind: input, shape index: {}]   ;;  %s11830_s9 = inlined_call_operand.vmem [shape: f32[16,128], index: 9, kind: output, shape index: {}]  }
   0x1 LB: > { %s7216_s10 = sadd.s32 4294967295, %s8798_s30   ;;  %p7220_p0 = scmp.ge.s32.totalorder %s8798_s30, 1  ;;  %s8798_s30 = sphi %s8851_s30, %s19_s30  }
   0x2   : > { %p287_p1 = scmp.lt.s32.totalorder %s8798_s30, 3 }
   0x4   : > { %p288_p2 = pnand %p7220_p0, %p287_p1 }
   0x5   : > { %p322_p3 = scmp.lt.s32.totalorder (!%p288_p2), %s7216_s10, 1 }
   0x6   : > { %291 = sbr.rel (%p288_p2) target bundleno = 1471 (0x5bf), region = 56 }
   0xb   : > { %v407_v0 = vld [vmem:[%s11822_s1 + $0x1c0] sm:$0xff]  ;;  %v408_v2 = vld [vmem:[%s11822_s1 + $0x1c8] sm:$0xff]  ;;  %s11842_s10 = smov (!%p322_p3, %s7216_s10), 1  ;;  %vm831_vm0 = vcmask 130048   ;;  %vm1031_vm5 = vcmask 1040384   ;;  %vm3421_vm9 = vcmask 1043456  }
   0xc   : > { %v411_v1 = vld [vmem:[%s11822_s1 + $0x1e0] sm:$0xff]  ;;  %v412_v4 = vld [vmem:[%s11822_s1 + $0x1e8] sm:$0xff]  ;;  %s8105_s20 = sshll.u32 %s11842_s10, 3  ;;  %vm1032_vm6 = vsmask.f32 256 }
   0xd   : > { %v7283_v3 = vcombine.high %v407_v0, %v411_v1  ;;  %v7282_v5 = vcombine.low %v407_v0, %v411_v1  ;;  %v399_v6 = vld [vmem:[%s11822_s1 + $0x180] sm:$0xff]  ;;  %v7285_v8 = vcombine.high %v408_v2, %v412_v4  ;;  %v7284_v9 = vcombine.low %v408_v2, %v412_v4  ;;  %v400_v11 = vld [vmem:[%s11822_s1 + $0x188] sm:$0xff]  ;;  %s326_s27 = scalar_lea.vmem %s11821_s0, %s8105_s20  ;;  %vm9588_vm7 = vmand %vm1031_vm5, %vm1032_vm6  ;;  %s330_s28 = scalar_lea.vmem %s11830_s9, %s8105_s20 }
   0xe   : > { %v403_v7 = vld [vmem:[%s11822_s1 + $0x1a0] sm:$0xff]  ;;  %v404_v12 = vld [vmem:[%s11822_s1 + $0x1a8] sm:$0xff]  ;;  %vm3422_vm10 = vsmask.f32 3328 }
   0xf   : > { %v7275_v10 = vcombine.high %v399_v6, %v403_v7  ;;  %v391_v13 = vld [vmem:[%s11822_s1 + $0x140] sm:$0xff]  ;;  %835 = vmatprep.subr.bf16.mxu0 %v7283_v3  ;;  %v7277_v14 = vcombine.high %v400_v11, %v404_v12  ;;  %v392_v16 = vld [vmem:[%s11822_s1 + $0x148] sm:$0xff]  ;;  %876 = vmatprep.subr.bf16.mxu1 %v7285_v8  ;;  %v7274_v18 = vcombine.low %v399_v6, %v403_v7  ;;  %v409_v7 = vld [vmem:[%s11822_s1 + $0x1d0] sm:$0xff] }
  0x10   : > { %v395_v15 = vld [vmem:[%s11822_s1 + $0x160] sm:$0xff]  ;;  %v396_v17 = vld [vmem:[%s11822_s1 + $0x168] sm:$0xff]  ;;  %836 = vmatpush1.bf16.msra.mxu0 %v7282_v5  ;;  %877 = vmatpush1.bf16.msra.mxu1 %v7284_v9  ;;  %v7276_v19 = vcombine.low %v400_v11, %v404_v12  ;;  %v413_v9 = vld [vmem:[%s11822_s1 + $0x1f0] sm:$0xff] }
  0x11   : > { %837 = vmatprep.subr.bf16.mxu0 %v7275_v10  ;;  %v7267_v20 = vcombine.high %v391_v13, %v395_v15  ;;  %878 = vmatprep.subr.bf16.mxu1 %v7277_v14  ;;  %v7269_v21 = vcombine.high %v392_v16, %v396_v17  ;;  %v383_v22 = vld [vmem:[%s11822_s1 + $0x100] sm:$0xff]  ;;  %v384_v24 = vld [vmem:[%s11822_s1 + $0x108] sm:$0xff]  ;;  %v7266_v26 = vcombine.low %v391_v13, %v395_v15  ;;  %v410_v10 = vld [vmem:[%s11822_s1 + $0x1d8] sm:$0xff] }
  0x12   : > { %v387_v23 = vld [vmem:[%s11822_s1 + $0x120] sm:$0xff]  ;;  %v388_v25 = vld [vmem:[%s11822_s1 + $0x128] sm:$0xff]  ;;  %v7268_v27 = vcombine.low %v392_v16, %v396_v17  ;;  %v414_v11 = vld [vmem:[%s11822_s1 + $0x1f8] sm:$0xff]  ;;  %v7287_v14 = vcombine.high %v409_v7, %v413_v9 }
  0x13   : > { %v7259_v28 = vcombine.high %v383_v22, %v387_v23  ;;  %v7261_v29 = vcombine.high %v384_v24, %v388_v25  ;;  %v375_v30 = vld [vmem:[%s11822_s1 + $0xc0] sm:$0xff]  ;;  %v376_v32 = vld [vmem:[%s11822_s1 + $0xc8] sm:$0xff]  ;;  %v7258_v34 = vcombine.low %v383_v22, %v387_v23  ;;  %v7260_v36 = vcombine.low %v384_v24, %v388_v25  ;;  %v401_v15 = vld [vmem:[%s11822_s1 + $0x190] sm:$0xff] }
  0x14   : > { %838 = vmatpush1.bf16.msra.mxu0 %v7274_v18  ;;  %879 = vmatpush1.bf16.msra.mxu1 %v7276_v19  ;;  %v379_v31 = vld [vmem:[%s11822_s1 + $0xe0] sm:$0xff]  ;;  %v380_v33 = vld [vmem:[%s11822_s1 + $0xe8] sm:$0xff]  ;;  %v7289_v16 = vcombine.high %v410_v10, %v414_v11  ;;  %v405_v17 = vld [vmem:[%s11822_s1 + $0x1b0] sm:$0xff]  ;;  %v7288_v22 = vcombine.low %v410_v10, %v414_v11 }
  0x15   : > { %839 = vmatprep.subr.bf16.mxu0 %v7267_v20  ;;  %880 = vmatprep.subr.bf16.mxu1 %v7269_v21  ;;  %v8927_v35 = vld [vmem:[%s326_s27] sm:$0xff]  ;;  %v7251_v37 = vcombine.high %v375_v30, %v379_v31  ;;  %v7253_v39 = vcombine.high %v376_v32, %v380_v33  ;;  %v368_v42 = vld [vmem:[%s11822_s1 + $0x88] sm:$0xff]  ;;  %v7250_v44 = vcombine.low %v375_v30, %v379_v31  ;;  %v402_v18 = vld [vmem:[%s11822_s1 + $0x198] sm:$0xff] }
  0x16   : > { %v8931_v38 = vcombine.high %v8927_v35, %v8927_v35  ;;  %v367_v40 = vld [vmem:[%s11822_s1 + $0x80] sm:$0xff]  ;;  %v372_v43 = vld [vmem:[%s11822_s1 + $0xa8] sm:$0xff]  ;;  %v7252_v45 = vcombine.low %v376_v32, %v380_v33  ;;  %v9008_v19 = vcombine.low %v8927_v35, %v8927_v35  ;;  %v406_v20 = vld [vmem:[%s11822_s1 + $0x1b8] sm:$0xff]  ;;  %v7286_v21 = vcombine.low %v409_v7, %v413_v9 }
  0x17   : > { %v371_v41 = vld [vmem:[%s11822_s1 + $0xa0] sm:$0xff]  ;;  %v7245_v47 = vcombine.high %v368_v42, %v372_v43  ;;  %v360_v50 = vld [vmem:[%s11822_s1 + $0x48] sm:$0xff]  ;;  %v7244_v53 = vcombine.low %v368_v42, %v372_v43  ;;  %v7279_v23 = vcombine.high %v401_v15, %v405_v17  ;;  %v393_v24 = vld [vmem:[%s11822_s1 + $0x150] sm:$0xff]  ;;  %v7281_v25 = vcombine.high %v402_v18, %v406_v20 }
  0x18   : > { %840 = vmatpush1.bf16.msra.mxu0 %v7266_v26  ;;  %881 = vmatpush1.bf16.msra.mxu1 %v7268_v27  ;;  %v7243_v46 = vcombine.high %v367_v40, %v371_v41  ;;  %v359_v48 = vld [vmem:[%s11822_s1 + $0x40] sm:$0xff]  ;;  %v364_v51 = vld [vmem:[%s11822_s1 + $0x68] sm:$0xff]  ;;  %v7242_v52 = vcombine.low %v367_v40, %v371_v41  ;;  %v397_v26 = vld [vmem:[%s11822_s1 + $0x170] sm:$0xff]  ;;  %v7280_v30 = vcombine.low %v402_v18, %v406_v20 }
  0x19   : > { %841 = vmatprep.subr.bf16.mxu0 %v7259_v28  ;;  %882 = vmatprep.subr.bf16.mxu1 %v7261_v29  ;;  %v363_v49 = vld [vmem:[%s11822_s1 + $0x60] sm:$0xff]  ;;  %v7237_v55 = vcombine.high %v360_v50, %v364_v51  ;;  %v352_v58 = vld [vmem:[%s11822_s1 + $0x8] sm:$0xff]  ;;  %v7236_v61 = vcombine.low %v360_v50, %v364_v51  ;;  %v394_v27 = vld [vmem:[%s11822_s1 + $0x158] sm:$0xff]  ;;  %v7278_v29 = vcombine.low %v401_v15, %v405_v17 }
  0x1a   : > { %7298 = vmatprep.mubr.msk.bf16.mxu0 %vm831_vm0, %v8931_v38  ;;  %7299 = vmatprep.mubr.msk.bf16.mxu1 %vm831_vm0, %v8931_v38  ;;  %v7235_v54 = vcombine.high %v359_v48, %v363_v49  ;;  %v351_v56 = vld [vmem:[%s11822_s1] sm:$0xff]  ;;  %v356_v59 = vld [vmem:[%s11822_s1 + $0x28] sm:$0xff]  ;;  %v7234_v60 = vcombine.low %v359_v48, %v363_v49  ;;  %v398_v28 = vld [vmem:[%s11822_s1 + $0x178] sm:$0xff]  ;;  %v7271_v31 = vcombine.high %v393_v24, %v397_v26 }
  0x1b   : > { %v355_v57 = vld [vmem:[%s11822_s1 + $0x20] sm:$0xff]  ;;  %v7229_v0 = vcombine.high %v352_v58, %v356_v59  ;;  %v416_v2 = vld [vmem:[%s11822_s1 + $0x208] sm:$0xff]  ;;  %v7228_v5 = vcombine.low %v352_v58, %v356_v59  ;;  %v385_v32 = vld [vmem:[%s11822_s1 + $0x110] sm:$0xff]  ;;  %v7273_v33 = vcombine.high %v394_v27, %v398_v28 }
  0x1c   : > { %842 = vmatpush1.bf16.msra.mxu0 %v7258_v34  ;;  %883 = vmatpush1.bf16.msra.mxu1 %v7260_v36  ;;  %v7227_v62 = vcombine.high %v351_v56, %v355_v57  ;;  %v415_v63 = vld [vmem:[%s11822_s1 + $0x200] sm:$0xff]  ;;  %v420_v3 = vld [vmem:[%s11822_s1 + $0x228] sm:$0xff]  ;;  %v7226_v4 = vcombine.low %v351_v56, %v355_v57  ;;  %v389_v34 = vld [vmem:[%s11822_s1 + $0x130] sm:$0xff] }
  0x1d   : > { %843 = vmatprep.subr.bf16.mxu0 %v7251_v37  ;;  %884 = vmatprep.subr.bf16.mxu1 %v7253_v39  ;;  %v419_v1 = vld [vmem:[%s11822_s1 + $0x220] sm:$0xff]  ;;  %v7293_v8 = vcombine.high %v416_v2, %v420_v3  ;;  %v7292_v13 = vcombine.low %v416_v2, %v420_v3  ;;  %v386_v35 = vld [vmem:[%s11822_s1 + $0x118] sm:$0xff]  ;;  %v7270_v37 = vcombine.low %v393_v24, %v397_v26  ;;  %v377_v41 = vld [vmem:[%s11822_s1 + $0xd0] sm:$0xff] }
  0x1e   : > { %v7291_v6 = vcombine.high %v415_v63, %v419_v1  ;;  %v7290_v12 = vcombine.low %v415_v63, %v419_v1  ;;  %v390_v36 = vld [vmem:[%s11822_s1 + $0x138] sm:$0xff]  ;;  %v7272_v39 = vcombine.low %v394_v27, %v398_v28  ;;  %v7263_v40 = vcombine.high %v385_v32, %v389_v34  ;;  %v381_v43 = vld [vmem:[%s11822_s1 + $0xf0] sm:$0xff]  ;;  %vm10476_vm12 = vmand %vm3421_vm9, %vm3422_vm10 }
  0x1f   : > { %v7265_v42 = vcombine.high %v386_v35, %v390_v36  ;;  %v369_v48 = vld [vmem:[%s11822_s1 + $0x90] sm:$0xff]  ;;  %v370_v51 = vld [vmem:[%s11822_s1 + $0x98] sm:$0xff] }
  0x20   : > { %844 = vmatpush1.bf16.msra.mxu0 %v7250_v44  ;;  %885 = vmatpush1.bf16.msra.mxu1 %v7252_v45  ;;  %v382_v44 = vld [vmem:[%s11822_s1 + $0xf8] sm:$0xff]  ;;  %v7262_v45 = vcombine.low %v385_v32, %v389_v34  ;;  %v373_v50 = vld [vmem:[%s11822_s1 + $0xb0] sm:$0xff] }
  0x21   : > { %845 = vmatprep.subr.bf16.mxu0 %v7243_v46  ;;  %886 = vmatprep.subr.bf16.mxu1 %v7245_v47  ;;  %v7264_v46 = vcombine.low %v386_v35, %v390_v36  ;;  %v7255_v47 = vcombine.high %v377_v41, %v381_v43  ;;  %v361_v56 = vld [vmem:[%s11822_s1 + $0x50] sm:$0xff]  ;;  %v362_v59 = vld [vmem:[%s11822_s1 + $0x58] sm:$0xff] }
  0x22   : > { %v365_v58 = vld [vmem:[%s11822_s1 + $0x70] sm:$0xff]  ;;  %v354_v3 = vld [vmem:[%s11822_s1 + $0x18] sm:$0xff] }
  0x23   : > { %v7239_v63 = vcombine.high %v361_v56, %v365_v58  ;;  %v357_v2 = vld [vmem:[%s11822_s1 + $0x30] sm:$0xff]  ;;  %v418_v10 = vld [vmem:[%s11822_s1 + $0x218] sm:$0xff] }
  0x24   : > { %846 = vmatpush1.bf16.msra.mxu0 %v7242_v52  ;;  %887 = vmatpush1.bf16.msra.mxu1 %v7244_v53  ;;  %v374_v52 = vld [vmem:[%s11822_s1 + $0xb8] sm:$0xff]  ;;  %v7254_v53 = vcombine.low %v377_v41, %v381_v43  ;;  %v421_v9 = vld [vmem:[%s11822_s1 + $0x230] sm:$0xff] }
  0x25   : > { %847 = vmatprep.subr.bf16.mxu0 %v7235_v54  ;;  %888 = vmatprep.subr.bf16.mxu1 %v7237_v55  ;;  %v7247_v55 = vcombine.high %v369_v48, %v373_v50  ;;  %v7249_v57 = vcombine.high %v370_v51, %v374_v52  ;;  %v422_v11 = vld [vmem:[%s11822_s1 + $0x238] sm:$0xff]  ;;  %v8229_v17 = vld [vmem:[%s11824_s3 + $0xe4] ss:$16 sps:$4 sm:$0xff]   ;;  %v8233_v26 = vld [vmem:[%s11824_s3 + $0xc0] ss:$16 sps:$4 sm:$0xff]  }
  0x26   : > { %v8232_v20 = vld [vmem:[%s11824_s3 + $0x2e4] ss:$16 sps:$4 sm:$0xff]   ;;  %v8236_v27 = vld [vmem:[%s11824_s3 + $0x2c0] ss:$16 sps:$4 sm:$0xff]  }
  0x27   : > { %v8235_v24 = vld [vmem:[%s11824_s3 + $0xc4] ss:$16 sps:$4 sm:$0xff]   ;;  %v8248_v34 = vld [vmem:[%s11824_s3 + $0x280] ss:$16 sps:$4 sm:$0xff]  }
  0x28   : > { %848 = vmatpush1.bf16.msra.mxu0 %v7234_v60  ;;  %889 = vmatpush1.bf16.msra.mxu1 %v7236_v61  ;;  %v366_v60 = vld [vmem:[%s11822_s1 + $0x78] sm:$0xff]  ;;  %v7246_v61 = vcombine.low %v369_v48, %v373_v50  ;;  %v8241_v28 = vld [vmem:[%s11824_s3 + $0xa4] ss:$16 sps:$4 sm:$0xff]   ;;  %v8260_v43 = vld [vmem:[%s11824_s3 + $0x240] ss:$16 sps:$4 sm:$0xff]  }
  0x29   : > { %849 = vmatprep.subr.bf16.mxu0 %v7227_v62  ;;  %890 = vmatprep.subr.bf16.mxu1 %v7229_v0  ;;  %v7248_v62 = vcombine.low %v370_v51, %v374_v52  ;;  %v353_v0 = vld [vmem:[%s11822_s1 + $0x10] sm:$0xff]  ;;  %v7241_v1 = vcombine.high %v362_v59, %v366_v60  ;;  %v7240_v7 = vcombine.low %v362_v59, %v366_v60 }
  0x2a   : > { %v8250_v32 = vld [vmem:[%s11824_s3 + $0x284] ss:$16 sps:$4 sm:$0xff]   ;;  %v8272_v50 = vld [vmem:[%s11824_s3 + $0x200] ss:$16 sps:$4 sm:$0xff]  }
  0x2b   : > { %v8253_v35 = vld [vmem:[%s11824_s3 + $0x64] ss:$16 sps:$4 sm:$0xff]  }
  0x2c   : > { %850 = vmatpush1.bf16.msra.mxu0 %v7226_v4  ;;  %891 = vmatpush1.bf16.msra.mxu1 %v7228_v5  ;;  %v358_v4 = vld [vmem:[%s11822_s1 + $0x38] sm:$0xff]  ;;  %v7238_v5 = vcombine.low %v361_v56, %v365_v58  ;;  %v8256_v36 = vld [vmem:[%s11824_s3 + $0x264] ss:$16 sps:$4 sm:$0xff]   ;;  %v8284_v58 = vld [vmem:[%s11824_s3 + $0x3c0] ss:$16 sps:$4 sm:$0xff]  }
  0x2d   : > { %865 = vmatprep.subr.bf16.mxu0 %v7291_v6  ;;  %906 = vmatprep.subr.bf16.mxu1 %v7293_v8  ;;  %v417_v6 = vld [vmem:[%s11822_s1 + $0x210] sm:$0xff]  ;;  %v7231_v8 = vcombine.high %v353_v0, %v357_v2 }
  0x2e   : > { %v7295_v15 = vcombine.high %v417_v6, %v421_v9  ;;  %v7294_v18 = vcombine.low %v417_v6, %v421_v9  ;;  %v8262_v41 = vld [vmem:[%s11824_s3 + $0x244] ss:$16 sps:$4 sm:$0xff]   ;;  %v8302_v6 = vld [vmem:[%s11824_s3 + $0x360] ss:$16 sps:$4 sm:$0xff]  }
  0x2f   : > { %v8274_v48 = vld [vmem:[%s11824_s3 + $0x204] ss:$16 sps:$4 sm:$0xff]   ;;  %v8305_v9 = vld [vmem:[%s11824_s3 + $0x140] ss:$16 sps:$4 sm:$0xff]  }
  0x30   : > { %866 = vmatpush2.bf16.msra.mxu0 %v7290_v12  ;;  %907 = vmatpush2.bf16.msra.mxu1 %v7292_v13  ;;  %v7233_v12 = vcombine.high %v354_v3, %v358_v4  ;;  %v7230_v13 = vcombine.low %v353_v0, %v357_v2  ;;  %v8277_v51 = vld [vmem:[%s11824_s3 + $0x1e4] ss:$16 sps:$4 sm:$0xff]   ;;  %v8296_v2 = vld [vmem:[%s11824_s3 + $0x380] ss:$16 sps:$4 sm:$0xff]  }
  0x31   : > { %917 = vmatprep.subr.bf16.mxu0 %v7287_v14  ;;  %958 = vmatprep.subr.bf16.mxu1 %v7289_v16  ;;  %v7232_v14 = vcombine.low %v354_v3, %v358_v4  ;;  %v7297_v16 = vcombine.high %v418_v10, %v422_v11  ;;  %v8280_v52 = vld [vmem:[%s11824_s3 + $0x3e4] ss:$16 sps:$4 sm:$0xff]  }
  0x32   : > { %v8286_v56 = vld [vmem:[%s11824_s3 + $0x3c4] ss:$16 sps:$4 sm:$0xff]  }
  0x33   : > { %868 = vmatmul.mubr.bf16.vlgmr.msra.gmra.mxu0 %v9008_v19  ;;  %909 = vmatmul.mubr.bf16.vlgmr.msra.gmra.mxu1 %v9008_v19  ;;  %v8289_v59 = vld [vmem:[%s11824_s3 + $0x1a4] ss:$16 sps:$4 sm:$0xff]  }
  0x34   : > { %918 = vmatpush1.bf16.msra.mxu0 %v7286_v21  ;;  %959 = vmatpush1.bf16.msra.mxu1 %v7288_v22  ;;  %v7296_v21 = vcombine.low %v418_v10, %v422_v11  ;;  %v8227_v22 = vld [vmem:[%s11824_s3 + $0xe0] ss:$16 sps:$4 sm:$0xff]   ;;  %v8292_v60 = vld [vmem:[%s11824_s3 + $0x3a4] ss:$16 sps:$4 sm:$0xff]  }
  0x35   : > { %919 = vmatprep.subr.bf16.mxu0 %v7279_v23  ;;  %960 = vmatprep.subr.bf16.mxu1 %v7281_v25  ;;  %v8230_v23 = vld [vmem:[%s11824_s3 + $0x2e0] ss:$16 sps:$4 sm:$0xff]   ;;  %v8238_v25 = vld [vmem:[%s11824_s3 + $0x2c4] ss:$16 sps:$4 sm:$0xff]  }
  0x36   : > { %7300 = vmatprep.mubr.msk.bf16.mxu0 %vm831_vm0, %v8931_v38  ;;  %7301 = vmatprep.mubr.msk.bf16.mxu1 %vm831_vm0, %v8931_v38  ;;  %v378_v38 = vld [vmem:[%s11822_s1 + $0xd8] sm:$0xff]  ;;  %v8298_v0 = vld [vmem:[%s11824_s3 + $0x384] ss:$16 sps:$4 sm:$0xff]   ;;  %v8308_v10 = vld [vmem:[%s11824_s3 + $0x340] ss:$16 sps:$4 sm:$0xff]  }
  0x37   : > { %v7257_v49 = vcombine.high %v378_v38, %v382_v44  ;;  %v7256_v54 = vcombine.low %v378_v38, %v382_v44  ;;  %v8265_v38 = vld [vmem:[%s11824_s3 + $0x24] ss:$16 sps:$4 sm:$0xff]  }
  0x38   : > { %920 = vmatpush1.bf16.msra.mxu0 %v7278_v29  ;;  %961 = vmatpush1.bf16.msra.mxu1 %v7280_v30  ;;  %v8244_v29 = vld [vmem:[%s11824_s3 + $0x2a4] ss:$16 sps:$4 sm:$0xff]   ;;  %v8239_v30 = vld [vmem:[%s11824_s3 + $0xa0] ss:$16 sps:$4 sm:$0xff]  }
  0x39   : > { %921 = vmatprep.subr.bf16.mxu0 %v7271_v31  ;;  %962 = vmatprep.subr.bf16.mxu1 %v7273_v33  ;;  %v8242_v31 = vld [vmem:[%s11824_s3 + $0x2a0] ss:$16 sps:$4 sm:$0xff]   ;;  %v8268_v44 = vld [vmem:[%s11824_s3 + $0x224] ss:$16 sps:$4 sm:$0xff]  }
  0x3a   : > { %v8245_v33 = vld [vmem:[%s11824_s3 + $0x80] ss:$16 sps:$4 sm:$0xff]   ;;  %v8301_v3 = vld [vmem:[%s11824_s3 + $0x164] ss:$16 sps:$4 sm:$0xff]  }
  0x3b   : > { %v8304_v4 = vld [vmem:[%s11824_s3 + $0x364] ss:$16 sps:$4 sm:$0xff]  }
  0x3c   : > { %922 = vmatpush1.bf16.msra.mxu0 %v7270_v37  ;;  %963 = vmatpush1.bf16.msra.mxu1 %v7272_v39  ;;  %v8251_v37 = vld [vmem:[%s11824_s3 + $0x60] ss:$16 sps:$4 sm:$0xff]   ;;  %v8313_v11 = vld [vmem:[%s11824_s3 + $0x124] ss:$16 sps:$4 sm:$0xff]  }
  0x3d   : > { %923 = vmatprep.subr.bf16.mxu0 %v7263_v40  ;;  %964 = vmatprep.subr.bf16.mxu1 %v7265_v42  ;;  %v8254_v39 = vld [vmem:[%s11824_s3 + $0x260] ss:$16 sps:$4 sm:$0xff]   ;;  %v8259_v40 = vld [vmem:[%s11824_s3 + $0x44] ss:$16 sps:$4 sm:$0xff]  }
  0x3e   : > { %v8257_v42 = vld [vmem:[%s11824_s3 + $0x40] ss:$16 sps:$4 sm:$0xff]  }
  0x40   : > { %924 = vmatpush1.bf16.msra.mxu0 %v7262_v45  ;;  %965 = vmatpush1.bf16.msra.mxu1 %v7264_v46  ;;  %v8263_v45 = vld [vmem:[%s11824_s3 + $0x20] ss:$16 sps:$4 sm:$0xff]  }
  0x41   : > { %925 = vmatprep.subr.bf16.mxu0 %v7255_v47  ;;  %966 = vmatprep.subr.bf16.mxu1 %v7257_v49  ;;  %v8266_v46 = vld [vmem:[%s11824_s3 + $0x220] ss:$16 sps:$4 sm:$0xff]   ;;  %v8271_v47 = vld [vmem:[%s11824_s3 + $0x4] ss:$16 sps:$4 sm:$0xff]  }
  0x42   : > { %v8269_v49 = vld [vmem:[%s11824_s3] ss:$16 sps:$4 sm:$0xff]  }
  0x44   : > { %926 = vmatpush1.bf16.msra.mxu0 %v7254_v53  ;;  %967 = vmatpush1.bf16.msra.mxu1 %v7256_v54  ;;  %v8275_v53 = vld [vmem:[%s11824_s3 + $0x1e0] ss:$16 sps:$4 sm:$0xff]  }
  0x45   : > { %927 = vmatprep.subr.bf16.mxu0 %v7247_v55  ;;  %968 = vmatprep.subr.bf16.mxu1 %v7249_v57  ;;  %v8278_v54 = vld [vmem:[%s11824_s3 + $0x3e0] ss:$16 sps:$4 sm:$0xff]   ;;  %v8283_v55 = vld [vmem:[%s11824_s3 + $0x1c4] ss:$16 sps:$4 sm:$0xff]  }
  0x46   : > { %v8281_v57 = vld [vmem:[%s11824_s3 + $0x1c0] ss:$16 sps:$4 sm:$0xff]  }
  0x48   : > { %928 = vmatpush1.bf16.msra.mxu0 %v7246_v61  ;;  %969 = vmatpush1.bf16.msra.mxu1 %v7248_v62  ;;  %v8287_v61 = vld [vmem:[%s11824_s3 + $0x1a0] ss:$16 sps:$4 sm:$0xff]  }
  0x49   : > { %929 = vmatprep.subr.bf16.mxu0 %v7239_v63  ;;  %970 = vmatprep.subr.bf16.mxu1 %v7241_v1  ;;  %v8290_v62 = vld [vmem:[%s11824_s3 + $0x3a0] ss:$16 sps:$4 sm:$0xff]   ;;  %v8295_v63 = vld [vmem:[%s11824_s3 + $0x184] ss:$16 sps:$4 sm:$0xff]  }
  0x4a   : > { %v8293_v1 = vld [vmem:[%s11824_s3 + $0x180] ss:$16 sps:$4 sm:$0xff]  }
  0x4c   : > { %930 = vmatpush1.bf16.msra.mxu0 %v7238_v5  ;;  %971 = vmatpush1.bf16.msra.mxu1 %v7240_v7  ;;  %v8299_v5 = vld [vmem:[%s11824_s3 + $0x160] ss:$16 sps:$4 sm:$0xff]   ;;  %v8307_v7 = vld [vmem:[%s11824_s3 + $0x144] ss:$16 sps:$4 sm:$0xff]  }
  0x4d   : > { %931 = vmatprep.subr.bf16.mxu0 %v7231_v8  ;;  %972 = vmatprep.subr.bf16.mxu1 %v7233_v12  ;;  %v8310_v8 = vld [vmem:[%s11824_s3 + $0x344] ss:$16 sps:$4 sm:$0xff]  }
  0x4e   : > { %v8316_v12 = vld [vmem:[%s11824_s3 + $0x324] ss:$16 sps:$4 sm:$0xff]  }
  0x50   : > { %932 = vmatpush1.bf16.msra.mxu0 %v7230_v13  ;;  %973 = vmatpush1.bf16.msra.mxu1 %v7232_v14  ;;  %v8311_v13 = vld [vmem:[%s11824_s3 + $0x120] ss:$16 sps:$4 sm:$0xff]  }
  0x51   : > { %947 = vmatprep.subr.bf16.mxu0 %v7295_v15  ;;  %988 = vmatprep.subr.bf16.mxu1 %v7297_v16  ;;  %v8314_v14 = vld [vmem:[%s11824_s3 + $0x320] ss:$16 sps:$4 sm:$0xff]   ;;  %v8319_v15 = vld [vmem:[%s11824_s3 + $0x104] ss:$16 sps:$4 sm:$0xff]  }
  0x52   : > { %v8322_v16 = vld [vmem:[%s11824_s3 + $0x304] ss:$16 sps:$4 sm:$0xff]  }
  0x54   : > { %948 = vmatpush2.bf16.msra.mxu0 %v7294_v18  ;;  %989 = vmatpush2.bf16.msra.mxu1 %v7296_v21  ;;  %v8320_v18 = vld [vmem:[%s11824_s3 + $0x300] ss:$16 sps:$4 sm:$0xff]   ;;  %v8328_v21 = vld [vmem:[%s11824_s3 + $0x6e4] ss:$16 sps:$4 sm:$0xff]  }
  0x55   : > { %2987 = vmatprep.subr.bf16.mxu0 %v8229_v17  ;;  %3028 = vmatprep.subr.bf16.mxu1 %v8232_v20  ;;  %v8317_v17 = vld [vmem:[%s11824_s3 + $0x100] ss:$16 sps:$4 sm:$0xff]   ;;  %v8325_v20 = vld [vmem:[%s11824_s3 + $0x4e4] ss:$16 sps:$4 sm:$0xff]  }
  0x57   : > { %950 = vmatmul.mubr.bf16.vlgmr.msra.gmra.mxu0 %v9008_v19  ;;  %991 = vmatmul.mubr.bf16.vlgmr.msra.gmra.mxu1 %v9008_v19  ;;  %v8247_v19 = vld [vmem:[%s11824_s3 + $0x84] ss:$16 sps:$4 sm:$0xff]  }
  0x58   : > { %2988 = vmatpush1.bf16.msra.mxu0 %v8227_v22  ;;  %3029 = vmatpush1.bf16.msra.mxu1 %v8230_v23  ;;  %v334_v22 = vlaneseq }
  0x59   : > { %2989 = vmatprep.subr.bf16.mxu0 %v8235_v24  ;;  %3030 = vmatprep.subr.bf16.mxu1 %v8238_v25  ;;  %v8800_v25 = vmov 0  }
  0x5a   : > { %v9303_v23 = vshrl.u32 %v334_v22, 7  ;;  %v8365_v22 = vld [vmem:[%s11824_s3 + $0x400] ss:$16 sps:$4 sm:$0xff]  }
  0x5c   : > { %2990 = vmatpush1.bf16.msra.mxu0 %v8233_v26  ;;  %3031 = vmatpush1.bf16.msra.mxu1 %v8236_v27  ;;  %v340_v24 = vand.u32 1, %v9303_v23  ;;  %v9314_v27 = vld [vmem:[%s11823_s2] sm:$0xff] }
  0x5d   : > { %2991 = vmatprep.subr.bf16.mxu0 %v8241_v28  ;;  %3032 = vmatprep.subr.bf16.mxu1 %v8244_v29  ;;  %v9317_v28 = vsub.s32 0, %v9303_v23  ;;  %v9320_v29 = vsub.s32 2, %v9303_v23 }
  0x5e   : > { %vm349_vm1 = vcmp.lt.s32.totalorder %v340_v24, 1  ;;  %vm9544_vm3 = vcmp.gt.s32.totalorder %v340_v24, 0  ;;  %v8415_v24 = vld [vmem:[%s11824_s3 + $0x504] ss:$16 sps:$4 sm:$0xff]  }
  0x5f   : > { %vm3428_vm2 = vmpackc.low %vm349_vm1, %vm349_vm1 }
  0x60   : > { %2992 = vmatpush1.bf16.msra.mxu0 %v8239_v30  ;;  %3033 = vmatpush1.bf16.msra.mxu1 %v8242_v31  ;;  %v9309_v26 = vsel %vm3428_vm2, 65537, %v8800_v25  ;;  %v9323_v30 = vsub.s32 1, %v9303_v23  ;;  %v9326_v31 = vsub.s32 3, %v9303_v23  ;;  %vm1038_vm4 = vmpackc.low %vm9544_vm3, %vm9544_vm3 }
  0x61   : > { %2993 = vmatprep.subr.bf16.mxu0 %v8247_v19  ;;  %3034 = vmatprep.subr.bf16.mxu1 %v8250_v32  ;;  %v428_v19 = vrot.slane %v9314_v27, %v9317_v28  ;;  %v436_v32 = vrot.slane %v9314_v27, %v9320_v29 }
  0x64   : > { %2994 = vmatpush1.bf16.msra.mxu0 %v8245_v33  ;;  %3035 = vmatpush1.bf16.msra.mxu1 %v8248_v34  ;;  %v432_v33 = vrot.slane %v9314_v27, %v9323_v30 }
  0x65   : > { %2995 = vmatprep.subr.bf16.mxu0 %v8253_v35  ;;  %3036 = vmatprep.subr.bf16.mxu1 %v8256_v36  ;;  %v440_v35 = vrot.slane %v9314_v27, %v9326_v31 }
  0x68   : > { %2996 = vmatpush1.bf16.msra.mxu0 %v8251_v37  ;;  %3037 = vmatpush1.bf16.msra.mxu1 %v8254_v39 }
  0x69   : > { %2997 = vmatprep.subr.bf16.mxu0 %v8259_v40  ;;  %3038 = vmatprep.subr.bf16.mxu1 %v8262_v41 }
  0x6c   : > { %2998 = vmatpush1.bf16.msra.mxu0 %v8257_v42  ;;  %3039 = vmatpush1.bf16.msra.mxu1 %v8260_v43 }
  0x6d   : > { %2999 = vmatprep.subr.bf16.mxu0 %v8265_v38  ;;  %3040 = vmatprep.subr.bf16.mxu1 %v8268_v44 }
  0x70   : > { %3000 = vmatpush1.bf16.msra.mxu0 %v8263_v45  ;;  %3041 = vmatpush1.bf16.msra.mxu1 %v8266_v46 }
  0x71   : > { %3001 = vmatprep.subr.bf16.mxu0 %v8271_v47  ;;  %3042 = vmatprep.subr.bf16.mxu1 %v8274_v48  ;;  %v8323_v48 = vld [vmem:[%s11824_s3 + $0x4e0] ss:$16 sps:$4 sm:$0xff]  }
  0x74   : > { %3002 = vmatpush1.bf16.msra.mxu0 %v8269_v49  ;;  %3043 = vmatpush1.bf16.msra.mxu1 %v8272_v50 }
  0x75   : > { %3003 = vmatprep.subr.bf16.mxu0 %v8277_v51  ;;  %3044 = vmatprep.subr.bf16.mxu1 %v8280_v52  ;;  %v8326_v51 = vld [vmem:[%s11824_s3 + $0x6e0] ss:$16 sps:$4 sm:$0xff]   ;;  %v8331_v52 = vld [vmem:[%s11824_s3 + $0x4c4] ss:$16 sps:$4 sm:$0xff]  }
  0x78   : > { %3004 = vmatpush2.bf16.msra.mxu0 %v8275_v53  ;;  %3045 = vmatpush2.bf16.msra.mxu1 %v8278_v54 }
  0x79   : > { %3005 = vmatprep.subr.bf16.mxu0 %v8283_v55  ;;  %3046 = vmatprep.subr.bf16.mxu1 %v8286_v56 }
  0x7c   : > { %3006 = vmatpush2.bf16.msra.mxu0 %v8281_v57  ;;  %3047 = vmatpush2.bf16.msra.mxu1 %v8284_v58  ;;  %v8329_v58 = vld [vmem:[%s11824_s3 + $0x4c0] ss:$16 sps:$4 sm:$0xff]  }
  0x7d   : > { %3007 = vmatprep.subr.bf16.mxu0 %v8289_v59  ;;  %3048 = vmatprep.subr.bf16.mxu1 %v8292_v60  ;;  %v8334_v59 = vld [vmem:[%s11824_s3 + $0x6c4] ss:$16 sps:$4 sm:$0xff]   ;;  %v8332_v60 = vld [vmem:[%s11824_s3 + $0x6c0] ss:$16 sps:$4 sm:$0xff]  }
  0x80   : > { %3008 = vmatpush2.bf16.msra.mxu0 %v8287_v61  ;;  %3049 = vmatpush2.bf16.msra.mxu1 %v8290_v62  ;;  %v8337_v61 = vld [vmem:[%s11824_s3 + $0x4a4] ss:$16 sps:$4 sm:$0xff]  }
  0x81   : > { %3009 = vmatprep.subr.bf16.mxu0 %v8295_v63  ;;  %3050 = vmatprep.subr.bf16.mxu1 %v8298_v0  ;;  %v8340_v62 = vld [vmem:[%s11824_s3 + $0x6a4] ss:$16 sps:$4 sm:$0xff]   ;;  %v8335_v63 = vld [vmem:[%s11824_s3 + $0x4a0] ss:$16 sps:$4 sm:$0xff]  }
  0x82   : > { %v8338_v0 = vld [vmem:[%s11824_s3 + $0x6a0] ss:$16 sps:$4 sm:$0xff]  }
  0x84   : > { %3010 = vmatpush2.bf16.msra.mxu0 %v8293_v1  ;;  %3051 = vmatpush2.bf16.msra.mxu1 %v8296_v2  ;;  %v8343_v1 = vld [vmem:[%s11824_s3 + $0x484] ss:$16 sps:$4 sm:$0xff]   ;;  %v8341_v2 = vld [vmem:[%s11824_s3 + $0x480] ss:$16 sps:$4 sm:$0xff]  }
  0x85   : > { %3011 = vmatprep.subr.bf16.mxu0 %v8301_v3  ;;  %3052 = vmatprep.subr.bf16.mxu1 %v8304_v4  ;;  %v8346_v3 = vld [vmem:[%s11824_s3 + $0x684] ss:$16 sps:$4 sm:$0xff]   ;;  %v8344_v4 = vld [vmem:[%s11824_s3 + $0x680] ss:$16 sps:$4 sm:$0xff]  }
  0x88   : > { %3012 = vmatpush2.bf16.msra.mxu0 %v8299_v5  ;;  %3053 = vmatpush2.bf16.msra.mxu1 %v8302_v6  ;;  %v8349_v5 = vld [vmem:[%s11824_s3 + $0x464] ss:$16 sps:$4 sm:$0xff]   ;;  %v8347_v6 = vld [vmem:[%s11824_s3 + $0x460] ss:$16 sps:$4 sm:$0xff]  }
  0x89   : > { %3013 = vmatprep.subr.bf16.mxu0 %v8307_v7  ;;  %3054 = vmatprep.subr.bf16.mxu1 %v8310_v8  ;;  %v8352_v7 = vld [vmem:[%s11824_s3 + $0x664] ss:$16 sps:$4 sm:$0xff]   ;;  %v8350_v8 = vld [vmem:[%s11824_s3 + $0x660] ss:$16 sps:$4 sm:$0xff]  }
  0x8c   : > { %3014 = vmatpush2.bf16.msra.mxu0 %v8305_v9  ;;  %3055 = vmatpush2.bf16.msra.mxu1 %v8308_v10  ;;  %v8355_v9 = vld [vmem:[%s11824_s3 + $0x444] ss:$16 sps:$4 sm:$0xff]   ;;  %v8353_v10 = vld [vmem:[%s11824_s3 + $0x440] ss:$16 sps:$4 sm:$0xff]  }
  0x8d   : > { %3015 = vmatprep.subr.bf16.mxu0 %v8313_v11  ;;  %3056 = vmatprep.subr.bf16.mxu1 %v8316_v12  ;;  %v8358_v11 = vld [vmem:[%s11824_s3 + $0x644] ss:$16 sps:$4 sm:$0xff]   ;;  %v8356_v12 = vld [vmem:[%s11824_s3 + $0x640] ss:$16 sps:$4 sm:$0xff]  }
  0x90   : > { %3016 = vmatpush2.bf16.msra.mxu0 %v8311_v13  ;;  %3057 = vmatpush2.bf16.msra.mxu1 %v8314_v14  ;;  %v8361_v13 = vld [vmem:[%s11824_s3 + $0x424] ss:$16 sps:$4 sm:$0xff]  }
  0x91   : > { %3017 = vmatprep.subr.bf16.mxu0 %v8319_v15  ;;  %3058 = vmatprep.subr.bf16.mxu1 %v8322_v16  ;;  %v8364_v14 = vld [vmem:[%s11824_s3 + $0x624] ss:$16 sps:$4 sm:$0xff]   ;;  %v8359_v15 = vld [vmem:[%s11824_s3 + $0x420] ss:$16 sps:$4 sm:$0xff]   ;;  %v447_v16 = vsub.s32 5, %v9303_v23 }
  0x94   : > { %3018 = vmatpush2.bf16.msra.mxu0 %v8317_v17  ;;  %3059 = vmatpush2.bf16.msra.mxu1 %v8320_v18  ;;  %v8362_v17 = vld [vmem:[%s11824_s3 + $0x620] ss:$16 sps:$4 sm:$0xff]   ;;  %v8367_v18 = vld [vmem:[%s11824_s3 + $0x404] ss:$16 sps:$4 sm:$0xff]  }
  0x95   : > { %3069 = vmatprep.subr.bf16.mxu0 %v8325_v20  ;;  %3110 = vmatprep.subr.bf16.mxu1 %v8328_v21  ;;  %v455_v20 = vsub.s32 7, %v9303_v23  ;;  %v8370_v21 = vld [vmem:[%s11824_s3 + $0x604] ss:$16 sps:$4 sm:$0xff]  }
  0xf3   : > { %v869_v34 = vpop.f32.mrf.mxu0  ;;  %v910_v37 = vpop.f32.mrf.mxu1 }
  0xf4   : > { %v870_v36 = vadd.f32 %v869_v34, %v428_v19  ;;  %v911_v39 = vadd.f32 %v910_v37, %v436_v32  ;;  %v448_v19 = vrot.slane %v9314_v27, %v447_v16  ;;  %v8368_v32 = vld [vmem:[%s11824_s3 + $0x600] ss:$16 sps:$4 sm:$0xff]  }
  0xf5   : > { %v871_v40 = vpop.f32.mrf.mxu0  ;;  %v912_v42 = vpop.f32.mrf.mxu1 }
  0xf6   : > { %v872_v41 = vadd.f32 %v871_v40, %v432_v33  ;;  %v999_v43 = vmax.f32 %v870_v36, 0.0  ;;  %v1001_v38 = vmax.f32 %v911_v39, 0.0  ;;  %v913_v44 = vadd.f32 %v912_v42, %v440_v35  ;;  %v8373_v33 = vld [vmem:[%s11824_s3 + $0x5e4] ss:$16 sps:$4 sm:$0xff]   ;;  %v8371_v40 = vld [vmem:[%s11824_s3 + $0x5e0] ss:$16 sps:$4 sm:$0xff]  }
  0xf7   : > { %v873_v45 = vpop.f32.mrf.mxu0  ;;  %v914_v47 = vpop.f32.mrf.mxu1  ;;  %v456_v35 = vrot.slane %v9314_v27, %v455_v20  ;;  %v8376_v36 = vld [vmem:[%s11824_s3 + $0x7e4] ss:$16 sps:$4 sm:$0xff]  }
  0xf8   : > { %v1000_v46 = vmax.f32 %v872_v41, 0.0  ;;  %v1002_v49 = vmax.f32 %v913_v44, 0.0  ;;  %v9345_v53 = vpack.c.bf16 %v1001_v38, %v1001_v38  ;;  %v9349_v56 = vpack.c.bf16 %v999_v43, %v999_v43  ;;  %v8374_v43 = vld [vmem:[%s11824_s3 + $0x7e0] ss:$16 sps:$4 sm:$0xff]   ;;  %v8379_v38 = vld [vmem:[%s11824_s3 + $0x5c4] ss:$16 sps:$4 sm:$0xff]  }
  0xf9   : > { %v874_v50 = vpop.f32.mrf.mxu0  ;;  %v915_v55 = vpop.f32.mrf.mxu1 }
  0xfa   : > { %v9347_v54 = vpack.c.bf16 %v1000_v46, %v1000_v46  ;;  %v9351_v57 = vpack.c.bf16 %v1002_v49, %v1002_v49  ;;  %v8382_v46 = vld [vmem:[%s11824_s3 + $0x7c4] ss:$16 sps:$4 sm:$0xff]  }
  0xfc   : > { %3019 = vmatprep.mubr.bf16.mxu0 %v9347_v54  ;;  %3060 = vmatprep.mubr.bf16.mxu1 %v9351_v57 }
  0xfd   : > { %3020 = vmatmul.mubr.bf16.vlgmr.msra.gmra.mxu0 %v9349_v56  ;;  %3061 = vmatmul.mubr.bf16.vlgmr.msra.gmra.mxu1 %v9345_v53 }
  0xfe   : > { %3070 = vmatpush1.bf16.msra.mxu0 %v8323_v48  ;;  %3111 = vmatpush1.bf16.msra.mxu1 %v8326_v51  ;;  %v8377_v51 = vld [vmem:[%s11824_s3 + $0x5c0] ss:$16 sps:$4 sm:$0xff]  }
  0xff   : > { %3071 = vmatprep.subr.bf16.mxu0 %v8331_v52  ;;  %3112 = vmatprep.subr.bf16.mxu1 %v8334_v59  ;;  %v8385_v59 = vld [vmem:[%s11824_s3 + $0x5a4] ss:$16 sps:$4 sm:$0xff]  }
 0x102   : > { %3072 = vmatpush1.bf16.msra.mxu0 %v8329_v58  ;;  %3113 = vmatpush1.bf16.msra.mxu1 %v8332_v60  ;;  %v8380_v58 = vld [vmem:[%s11824_s3 + $0x7c0] ss:$16 sps:$4 sm:$0xff]  }
 0x103   : > { %3073 = vmatprep.subr.bf16.mxu0 %v8337_v61  ;;  %3114 = vmatprep.subr.bf16.mxu1 %v8340_v62  ;;  %v8388_v61 = vld [vmem:[%s11824_s3 + $0x7a4] ss:$16 sps:$4 sm:$0xff]   ;;  %v8383_v62 = vld [vmem:[%s11824_s3 + $0x5a0] ss:$16 sps:$4 sm:$0xff]  }
 0x106   : > { %3074 = vmatpush1.bf16.msra.mxu0 %v8335_v63  ;;  %3115 = vmatpush1.bf16.msra.mxu1 %v8338_v0  ;;  %v8386_v63 = vld [vmem:[%s11824_s3 + $0x7a0] ss:$16 sps:$4 sm:$0xff]   ;;  %v8391_v0 = vld [vmem:[%s11824_s3 + $0x584] ss:$16 sps:$4 sm:$0xff]  }
 0x107   : > { %3075 = vmatprep.subr.bf16.mxu0 %v8343_v1  ;;  %3116 = vmatprep.subr.bf16.mxu1 %v8346_v3  ;;  %v8394_v1 = vld [vmem:[%s11824_s3 + $0x784] ss:$16 sps:$4 sm:$0xff]   ;;  %v8392_v3 = vld [vmem:[%s11824_s3 + $0x780] ss:$16 sps:$4 sm:$0xff]  }
 0x10a   : > { %3076 = vmatpush1.bf16.msra.mxu0 %v8341_v2  ;;  %3117 = vmatpush1.bf16.msra.mxu1 %v8344_v4  ;;  %v8389_v2 = vld [vmem:[%s11824_s3 + $0x580] ss:$16 sps:$4 sm:$0xff]   ;;  %v8397_v4 = vld [vmem:[%s11824_s3 + $0x564] ss:$16 sps:$4 sm:$0xff]  }
 0x10b   : > { %3077 = vmatprep.subr.bf16.mxu0 %v8349_v5  ;;  %3118 = vmatprep.subr.bf16.mxu1 %v8352_v7  ;;  %v8400_v5 = vld [vmem:[%s11824_s3 + $0x764] ss:$16 sps:$4 sm:$0xff]   ;;  %v8398_v7 = vld [vmem:[%s11824_s3 + $0x760] ss:$16 sps:$4 sm:$0xff]  }
 0x10e   : > { %3078 = vmatpush1.bf16.msra.mxu0 %v8347_v6  ;;  %3119 = vmatpush1.bf16.msra.mxu1 %v8350_v8  ;;  %v8395_v6 = vld [vmem:[%s11824_s3 + $0x560] ss:$16 sps:$4 sm:$0xff]   ;;  %v443_v8 = vsub.s32 4, %v9303_v23 }
 0x10f   : > { %3079 = vmatprep.subr.bf16.mxu0 %v8355_v9  ;;  %3120 = vmatprep.subr.bf16.mxu1 %v8358_v11  ;;  %v8403_v9 = vld [vmem:[%s11824_s3 + $0x544] ss:$16 sps:$4 sm:$0xff]  }
 0x110   : > { %v8406_v11 = vld [vmem:[%s11824_s3 + $0x744] ss:$16 sps:$4 sm:$0xff]  }
 0x112   : > { %3080 = vmatpush1.bf16.msra.mxu0 %v8353_v10  ;;  %3121 = vmatpush1.bf16.msra.mxu1 %v8356_v12  ;;  %v451_v10 = vsub.s32 6, %v9303_v23  ;;  %v8401_v12 = vld [vmem:[%s11824_s3 + $0x540] ss:$16 sps:$4 sm:$0xff]  }
 0x113   : > { %3081 = vmatprep.subr.bf16.mxu0 %v8361_v13  ;;  %3122 = vmatprep.subr.bf16.mxu1 %v8364_v14  ;;  %v444_v13 = vrot.slane %v9314_v27, %v443_v8  ;;  %v8404_v14 = vld [vmem:[%s11824_s3 + $0x740] ss:$16 sps:$4 sm:$0xff]  }
 0x114   : > { %v8020_v23 = vld [vmem:[%s11829_s8] ss:$0 sm:$0xff] }
 0x116   : > { %3082 = vmatpush1.bf16.msra.mxu0 %v8359_v15  ;;  %3123 = vmatpush1.bf16.msra.mxu1 %v8362_v17  ;;  %v8409_v15 = vld [vmem:[%s11824_s3 + $0x524] ss:$16 sps:$4 sm:$0xff]   ;;  %v452_v17 = vrot.slane %v9314_v27, %v451_v10 }
 0x117   : > { %3083 = vmatprep.subr.bf16.mxu0 %v8367_v18  ;;  %v9446_v34 = vpop.f32.mrf.mxu0  ;;  %3124 = vmatprep.subr.bf16.mxu1 %v8370_v21  ;;  %v9454_v37 = vpop.f32.mrf.mxu1  ;;  %v8412_v18 = vld [vmem:[%s11824_s3 + $0x724] ss:$16 sps:$4 sm:$0xff]   ;;  %v8458_v21 = vld [vmem:[%s11824_s3 + $0x28] ss:$16 sps:$4 sm:$0xff]  }
 0x118   : > { %v952_v27 = vadd.f32 %v9446_v34, %v444_v13  ;;  %v8413_v34 = vld [vmem:[%s11824_s3 + $0x500] ss:$16 sps:$4 sm:$0xff]  }
 0x119   : > { %v953_v39 = vpop.f32.mrf.mxu0  ;;  %v994_v42 = vpop.f32.mrf.mxu1  ;;  %v8449_v13 = vld [vmem:[%s11824_s3 + $0x840] ss:$16 sps:$4 sm:$0xff]  }
 0x11a   : > { %3084 = vmatpush1.bf16.msra.mxu0 %v8365_v22  ;;  %v954_v41 = vadd.f32 %v953_v39, %v448_v19  ;;  %3125 = vmatpush1.bf16.msra.mxu1 %v8368_v32  ;;  %v995_v45 = vadd.f32 %v994_v42, %v456_v35  ;;  %v8407_v22 = vld [vmem:[%s11824_s3 + $0x520] ss:$16 sps:$4 sm:$0xff]   ;;  %v8418_v35 = vld [vmem:[%s11824_s3 + $0x704] ss:$16 sps:$4 sm:$0xff]   ;;  %v1039_v42 = vsel %vm1038_vm4, 65537, %v8800_v25 }
 0x11b   : > { %3085 = vmatprep.subr.bf16.mxu0 %v8373_v33  ;;  %v955_v44 = vpop.f32.mrf.mxu0  ;;  %3126 = vmatprep.subr.bf16.mxu1 %v8376_v36  ;;  %v996_v48 = vpop.f32.mrf.mxu1  ;;  %v8410_v32 = vld [vmem:[%s11824_s3 + $0x720] ss:$16 sps:$4 sm:$0xff]   ;;  %v993_v33 = vadd.f32 %v9454_v37, %v452_v17  ;;  %v8422_v25 = vld [vmem:[%s11824_s3 + $0xe8] ss:$16 sps:$4 sm:$0xff]   ;;  %v8460_v17 = vld [vmem:[%s11824_s3 + $0x2c] ss:$16 sps:$4 sm:$0xff]  }
 0x11c   : > { %v1004_v47 = vmax.f32 %v954_v41, 0.0  ;;  %v1006_v49 = vmax.f32 %v995_v45, 0.0  ;;  %v8416_v37 = vld [vmem:[%s11824_s3 + $0x700] ss:$16 sps:$4 sm:$0xff]   ;;  %v8421_v41 = vld [vmem:[%s11824_s3 + $0x8e4] ss:$16 sps:$4 sm:$0xff]  }
 0x11d   : > { %v956_v50 = vpop.f32.mrf.mxu0  ;;  %v997_v55 = vpop.f32.mrf.mxu1  ;;  %v8419_v44 = vld [vmem:[%s11824_s3 + $0x8e0] ss:$16 sps:$4 sm:$0xff]   ;;  %v8521_v48 = vld [vmem:[%s11824_s3 + $0x2c8] ss:$16 sps:$4 sm:$0xff]  }
 0x11e   : > { %3086 = vmatpush2.bf16.msra.mxu0 %v8371_v40  ;;  %v9471_v52 = vpack.c.bf16 %v1004_v47, %v1004_v47  ;;  %3127 = vmatpush2.bf16.msra.mxu1 %v8374_v43  ;;  %v9479_v60 = vpack.c.bf16 %v1006_v49, %v1006_v49  ;;  %v1003_v40 = vmax.f32 %v952_v27, 0.0  ;;  %v1005_v43 = vmax.f32 %v993_v33, 0.0  ;;  %v8427_v50 = vld [vmem:[%s11824_s3 + $0x8c4] ss:$16 sps:$4 sm:$0xff]   ;;  %v8425_v55 = vld [vmem:[%s11824_s3 + $0x8c0] ss:$16 sps:$4 sm:$0xff]  }
 0x11f   : > { %3087 = vmatprep.subr.bf16.mxu0 %v8379_v38  ;;  %3128 = vmatprep.subr.bf16.mxu1 %v8382_v46  ;;  %v8424_v38 = vld [vmem:[%s11824_s3 + $0xec] ss:$16 sps:$4 sm:$0xff]   ;;  %v7302_v46 = vcombine.low %v1039_v42, %v1039_v42  ;;  %v8461_v27 = vld [vmem:[%s11824_s3 + $0x800] ss:$16 sps:$4 sm:$0xff]  }
 0x120   : > { %3101 = vmatprep.mubr.bf16.mxu0 %v9471_v52  ;;  %3142 = vmatprep.mubr.bf16.mxu1 %v9479_v60  ;;  %v1023_v19 = vshrl.u32 %v9479_v60, 16  ;;  %v1026_v39 = vshll.u32 %v9479_v60, 16  ;;  %v9583_v47 = vpack.c.bf16 %v1003_v40, %v1003_v40  ;;  %v9592_v49 = vpack.c.bf16 %v1005_v43, %v1005_v43  ;;  %v8472_v33 = vld [vmem:[%s11824_s3 + $0x1ec] ss:$16 sps:$4 sm:$0xff]   ;;  %v8473_v40 = vld [vmem:[%s11824_s3 + $0x9c0] ss:$16 sps:$4 sm:$0xff]  }
 0x121   : > { %vm9609_vm8 = vcmp.ne.s16.totalorder %v7302_v46, 0  ;;  %v8484_v42 = vld [vmem:[%s11824_s3 + $0x1ac] ss:$16 sps:$4 sm:$0xff]   ;;  %v8479_v43 = vld [vmem:[%s11824_s3 + $0x9a0] ss:$16 sps:$4 sm:$0xff]  }
 0x122   : > { %3088 = vmatpush2.bf16.msra.mxu0 %v8377_v51  ;;  %3129 = vmatpush2.bf16.msra.mxu1 %v8380_v58  ;;  %v1025_v36 = vrot.slane %v1023_v19, 7  ;;  %v8430_v51 = vld [vmem:[%s11824_s3 + $0xcc] ss:$16 sps:$4 sm:$0xff]   ;;  %v8485_v46 = vld [vmem:[%s11824_s3 + $0x980] ss:$16 sps:$4 sm:$0xff]  }
 0x123   : > { %3089 = vmatprep.subr.bf16.mxu0 %v8385_v59  ;;  %3130 = vmatprep.subr.bf16.mxu1 %v8388_v61  ;;  %v8428_v61 = vld [vmem:[%s11824_s3 + $0xc8] ss:$16 sps:$4 sm:$0xff]   ;;  %v8466_v19 = vld [vmem:[%s11824_s3 + $0xc] ss:$16 sps:$4 sm:$0xff]  }
 0x124   : > { %v1028_v45 = vor.u32 %v1026_v39, %v1025_v36  ;;  %v8475_v36 = vld [vmem:[%s11824_s3 + $0x9c4] ss:$16 sps:$4 sm:$0xff]   ;;  %v8478_v39 = vld [vmem:[%s11824_s3 + $0x1cc] ss:$16 sps:$4 sm:$0xff]  }
 0x126   : > { %3090 = vmatpush2.bf16.msra.mxu0 %v8383_v62  ;;  %3131 = vmatpush2.bf16.msra.mxu1 %v8386_v63  ;;  %v9607_v58 = vsel %vm9588_vm7, 0, %v1028_v45  ;;  %v8433_v62 = vld [vmem:[%s11824_s3 + $0x8a4] ss:$16 sps:$4 sm:$0xff]   ;;  %v8436_v63 = vld [vmem:[%s11824_s3 + $0xac] ss:$16 sps:$4 sm:$0xff]  }
 0x127   : > { %3091 = vmatprep.subr.bf16.mxu0 %v8391_v0  ;;  %3132 = vmatprep.subr.bf16.mxu1 %v8394_v1  ;;  %v8434_v0 = vld [vmem:[%s11824_s3 + $0xa8] ss:$16 sps:$4 sm:$0xff]   ;;  %v8439_v1 = vld [vmem:[%s11824_s3 + $0x884] ss:$16 sps:$4 sm:$0xff]   ;;  %v8490_v45 = vld [vmem:[%s11824_s3 + $0x18c] ss:$16 sps:$4 sm:$0xff]  }
 0x12a   : > { %3092 = vmatpush2.bf16.msra.mxu0 %v8389_v2  ;;  %3133 = vmatpush2.bf16.msra.mxu1 %v8392_v3  ;;  %v8442_v2 = vld [vmem:[%s11824_s3 + $0x8c] ss:$16 sps:$4 sm:$0xff]   ;;  %v8437_v3 = vld [vmem:[%s11824_s3 + $0x880] ss:$16 sps:$4 sm:$0xff]  }
 0x12b   : > { %3093 = vmatprep.subr.bf16.mxu0 %v8397_v4  ;;  %3134 = vmatprep.subr.bf16.mxu1 %v8400_v5  ;;  %v8440_v4 = vld [vmem:[%s11824_s3 + $0x88] ss:$16 sps:$4 sm:$0xff]   ;;  %v8445_v5 = vld [vmem:[%s11824_s3 + $0x864] ss:$16 sps:$4 sm:$0xff]  }
 0x12e   : > { %3094 = vmatpush2.bf16.msra.mxu0 %v8395_v6  ;;  %3135 = vmatpush2.bf16.msra.mxu1 %v8398_v7  ;;  %v8448_v6 = vld [vmem:[%s11824_s3 + $0x6c] ss:$16 sps:$4 sm:$0xff]   ;;  %v8443_v7 = vld [vmem:[%s11824_s3 + $0x860] ss:$16 sps:$4 sm:$0xff]  }
 0x12f   : > { %3095 = vmatprep.subr.bf16.mxu0 %v8403_v9  ;;  %3136 = vmatprep.subr.bf16.mxu1 %v8406_v11  ;;  %v8446_v9 = vld [vmem:[%s11824_s3 + $0x68] ss:$16 sps:$4 sm:$0xff]   ;;  %v8451_v11 = vld [vmem:[%s11824_s3 + $0x844] ss:$16 sps:$4 sm:$0xff]  }
 0x132   : > { %3096 = vmatpush2.bf16.msra.mxu0 %v8401_v12  ;;  %3137 = vmatpush2.bf16.msra.mxu1 %v8404_v14  ;;  %v8454_v12 = vld [vmem:[%s11824_s3 + $0x4c] ss:$16 sps:$4 sm:$0xff]   ;;  %v8452_v14 = vld [vmem:[%s11824_s3 + $0x48] ss:$16 sps:$4 sm:$0xff]  }
 0x133   : > { %3097 = vmatprep.subr.bf16.mxu0 %v8409_v15  ;;  %3138 = vmatprep.subr.bf16.mxu1 %v8412_v18  ;;  %v8457_v15 = vld [vmem:[%s11824_s3 + $0x824] ss:$16 sps:$4 sm:$0xff]   ;;  %v8455_v18 = vld [vmem:[%s11824_s3 + $0x820] ss:$16 sps:$4 sm:$0xff]  }
 0x136   : > { %3098 = vmatpush2.bf16.msra.mxu0 %v8407_v22  ;;  %3139 = vmatpush2.bf16.msra.mxu1 %v8410_v32  ;;  %v8463_v22 = vld [vmem:[%s11824_s3 + $0x804] ss:$16 sps:$4 sm:$0xff]   ;;  %v8464_v32 = vld [vmem:[%s11824_s3 + $0x8] ss:$16 sps:$4 sm:$0xff]  }
 0x137   : > { %3099 = vmatprep.subr.bf16.mxu0 %v8415_v24  ;;  %3140 = vmatprep.subr.bf16.mxu1 %v8418_v35  ;;  %v8469_v24 = vld [vmem:[%s11824_s3 + $0x9e4] ss:$16 sps:$4 sm:$0xff]   ;;  %v8467_v35 = vld [vmem:[%s11824_s3 + $0x9e0] ss:$16 sps:$4 sm:$0xff]  }
 0x13a   : > { %3100 = vmatpush2.bf16.msra.mxu0 %v8413_v34  ;;  %3141 = vmatpush2.bf16.msra.mxu1 %v8416_v37  ;;  %v8470_v34 = vld [vmem:[%s11824_s3 + $0x1e8] ss:$16 sps:$4 sm:$0xff]  }
 0x13b   : > { %3151 = vmatprep.subr.bf16.mxu0 %v8421_v41  ;;  %3192 = vmatprep.subr.bf16.mxu1 %v8424_v38  ;;  %v8476_v37 = vld [vmem:[%s11824_s3 + $0x1c8] ss:$16 sps:$4 sm:$0xff]   ;;  %v8481_v41 = vld [vmem:[%s11824_s3 + $0x9a4] ss:$16 sps:$4 sm:$0xff]  }
 0x13c   : > { %v8482_v38 = vld [vmem:[%s11824_s3 + $0x1a8] ss:$16 sps:$4 sm:$0xff]  }
 0x13d   : > { %3102 = vmatmul.mubr.bf16.vlgmr.msra.gmra.mxu0 %v9583_v47  ;;  %3143 = vmatmul.mubr.bf16.vlgmr.msra.gmra.mxu1 %v9592_v49 }
 0x13e   : > { %3152 = vmatpush1.bf16.msra.mxu0 %v8419_v44  ;;  %3193 = vmatpush1.bf16.msra.mxu1 %v8422_v25  ;;  %v8487_v44 = vld [vmem:[%s11824_s3 + $0x984] ss:$16 sps:$4 sm:$0xff]   ;;  %v8488_v25 = vld [vmem:[%s11824_s3 + $0x188] ss:$16 sps:$4 sm:$0xff]  }
 0x13f   : > { %3224 = vmatprep.mubr.bf16.mxu1 %v9347_v54  ;;  %3153 = vmatprep.subr.bf16.mxu0 %v8427_v50  ;;  %v8431_v54 = vld [vmem:[%s11824_s3 + $0x8a0] ss:$16 sps:$4 sm:$0xff]   ;;  %v8493_v50 = vld [vmem:[%s11824_s3 + $0x964] ss:$16 sps:$4 sm:$0xff]  }
 0x140   : > { %3194 = vmatprep.subr.bf16.mxu1 %v8430_v51  ;;  %7623 = vmatprep.mubr.msk.bf16.mxu0 %vm9609_vm8, %v9607_v58  ;;  %v8496_v51 = vld [vmem:[%s11824_s3 + $0x16c] ss:$16 sps:$4 sm:$0xff]  }
 0x142   : > { %3154 = vmatpush1.bf16.msra.mxu0 %v8425_v55  ;;  %3195 = vmatpush1.bf16.msra.mxu1 %v8428_v61  ;;  %v8491_v55 = vld [vmem:[%s11824_s3 + $0x960] ss:$16 sps:$4 sm:$0xff]   ;;  %v8494_v61 = vld [vmem:[%s11824_s3 + $0x168] ss:$16 sps:$4 sm:$0xff]  }
 0x143   : > { %3155 = vmatprep.subr.bf16.mxu0 %v8433_v62  ;;  %3196 = vmatprep.subr.bf16.mxu1 %v8436_v63  ;;  %v8499_v62 = vld [vmem:[%s11824_s3 + $0x944] ss:$16 sps:$4 sm:$0xff]   ;;  %v8502_v63 = vld [vmem:[%s11824_s3 + $0x14c] ss:$16 sps:$4 sm:$0xff]  }
 0x146   : > { %3156 = vmatpush1.bf16.msra.mxu0 %v8431_v54  ;;  %3197 = vmatpush1.bf16.msra.mxu1 %v8434_v0  ;;  %v8497_v54 = vld [vmem:[%s11824_s3 + $0x940] ss:$16 sps:$4 sm:$0xff]   ;;  %v8500_v0 = vld [vmem:[%s11824_s3 + $0x148] ss:$16 sps:$4 sm:$0xff]  }
 0x147   : > { %3157 = vmatprep.subr.bf16.mxu0 %v8439_v1  ;;  %3198 = vmatprep.subr.bf16.mxu1 %v8442_v2  ;;  %v8505_v1 = vld [vmem:[%s11824_s3 + $0x924] ss:$16 sps:$4 sm:$0xff]   ;;  %v1016_v2 = vshrl.u32 %v9592_v49, 16 }
 0x14a   : > { %3158 = vmatpush1.bf16.msra.mxu0 %v8437_v3  ;;  %3199 = vmatpush1.bf16.msra.mxu1 %v8440_v4  ;;  %v8508_v3 = vld [vmem:[%s11824_s3 + $0x12c] ss:$16 sps:$4 sm:$0xff]   ;;  %v8503_v4 = vld [vmem:[%s11824_s3 + $0x920] ss:$16 sps:$4 sm:$0xff]  }
 0x14b   : > { %3159 = vmatprep.subr.bf16.mxu0 %v8445_v5  ;;  %3200 = vmatprep.subr.bf16.mxu1 %v8448_v6  ;;  %v8506_v5 = vld [vmem:[%s11824_s3 + $0x128] ss:$16 sps:$4 sm:$0xff]   ;;  %v8511_v6 = vld [vmem:[%s11824_s3 + $0x904] ss:$16 sps:$4 sm:$0xff]  }
 0x14e   : > { %3160 = vmatpush1.bf16.msra.mxu0 %v8443_v7  ;;  %3201 = vmatpush1.bf16.msra.mxu1 %v8446_v9  ;;  %v1018_v7 = vrot.slane %v1016_v2, 7  ;;  %v1019_v9 = vshll.u32 %v9592_v49, 16  ;;  %v8571_v2 = vld [vmem:[%s11824_s3 + $0x3cc] ss:$16 sps:$4 sm:$0xff]  }
 0x14f   : > { %3161 = vmatprep.subr.bf16.mxu0 %v8451_v11  ;;  %3202 = vmatprep.subr.bf16.mxu1 %v8454_v12  ;;  %v8514_v11 = vld [vmem:[%s11824_s3 + $0x10c] ss:$16 sps:$4 sm:$0xff]   ;;  %v8509_v12 = vld [vmem:[%s11824_s3 + $0x900] ss:$16 sps:$4 sm:$0xff]  }
 0x152   : > { %3162 = vmatpush1.bf16.msra.mxu0 %v8449_v13  ;;  %3203 = vmatpush1.bf16.msra.mxu1 %v8452_v14  ;;  %v8512_v13 = vld [vmem:[%s11824_s3 + $0x108] ss:$16 sps:$4 sm:$0xff]   ;;  %v8517_v14 = vld [vmem:[%s11824_s3 + $0x2ec] ss:$16 sps:$4 sm:$0xff]  }
 0x153   : > { %3163 = vmatprep.subr.bf16.mxu0 %v8457_v15  ;;  %3204 = vmatprep.subr.bf16.mxu1 %v8460_v17  ;;  %v1021_v15 = vor.u32 %v1019_v9, %v1018_v7  ;;  %v8520_v17 = vld [vmem:[%s11824_s3 + $0x4ec] ss:$16 sps:$4 sm:$0xff]   ;;  %v8575_v9 = vld [vmem:[%s11824_s3 + $0x3a8] ss:$16 sps:$4 sm:$0xff]  }
 0x154   : > { %v8580_v7 = vld [vmem:[%s11824_s3 + $0x5ac] ss:$16 sps:$4 sm:$0xff]  }
 0x156   : > { %3164 = vmatpush1.bf16.msra.mxu0 %v8455_v18  ;;  %3205 = vmatpush1.bf16.msra.mxu1 %v8458_v21  ;;  %v8515_v18 = vld [vmem:[%s11824_s3 + $0x2e8] ss:$16 sps:$4 sm:$0xff]  }
 0x157   : > { %3165 = vmatprep.subr.bf16.mxu0 %v8463_v22  ;;  %3206 = vmatprep.subr.bf16.mxu1 %v8466_v19  ;;  %v8518_v21 = vld [vmem:[%s11824_s3 + $0x4e8] ss:$16 sps:$4 sm:$0xff]   ;;  %v9804_v22 = vsel %vm9588_vm7, 0, %v1021_v15  ;;  %v8523_v19 = vld [vmem:[%s11824_s3 + $0x2cc] ss:$16 sps:$4 sm:$0xff]  }
 0x158   : > { %v8584_v15 = vld [vmem:[%s11824_s3 + $0x588] ss:$16 sps:$4 sm:$0xff]  }
 0x15a   : > { %3166 = vmatpush1.bf16.msra.mxu0 %v8461_v27  ;;  %3207 = vmatpush1.bf16.msra.mxu1 %v8464_v32  ;;  %v8526_v27 = vld [vmem:[%s11824_s3 + $0x4cc] ss:$16 sps:$4 sm:$0xff]   ;;  %v8524_v32 = vld [vmem:[%s11824_s3 + $0x4c8] ss:$16 sps:$4 sm:$0xff]  }
 0x15b   : > { %3167 = vmatprep.subr.bf16.mxu0 %v8469_v24  ;;  %3208 = vmatprep.subr.bf16.mxu1 %v8472_v33  ;;  %v8529_v24 = vld [vmem:[%s11824_s3 + $0x2ac] ss:$16 sps:$4 sm:$0xff]   ;;  %v8530_v33 = vld [vmem:[%s11824_s3 + $0x4a8] ss:$16 sps:$4 sm:$0xff]  }
 0x15e   : > { %3168 = vmatpush2.bf16.msra.mxu0 %v8467_v35  ;;  %3209 = vmatpush2.bf16.msra.mxu1 %v8470_v34  ;;  %v8538_v35 = vld [vmem:[%s11824_s3 + $0x48c] ss:$16 sps:$4 sm:$0xff]   ;;  %v8533_v34 = vld [vmem:[%s11824_s3 + $0x288] ss:$16 sps:$4 sm:$0xff]  }
 0x15f   : > { %3169 = vmatprep.subr.bf16.mxu0 %v8475_v36  ;;  %3210 = vmatprep.subr.bf16.mxu1 %v8478_v39  ;;  %v8536_v36 = vld [vmem:[%s11824_s3 + $0x488] ss:$16 sps:$4 sm:$0xff]   ;;  %v8541_v39 = vld [vmem:[%s11824_s3 + $0x26c] ss:$16 sps:$4 sm:$0xff]  }
 0x162   : > { %3170 = vmatpush2.bf16.msra.mxu0 %v8473_v40  ;;  %3211 = vmatpush2.bf16.msra.mxu1 %v8476_v37  ;;  %v8544_v40 = vld [vmem:[%s11824_s3 + $0x46c] ss:$16 sps:$4 sm:$0xff]   ;;  %v8539_v37 = vld [vmem:[%s11824_s3 + $0x268] ss:$16 sps:$4 sm:$0xff]  }
 0x163   : > { %3171 = vmatprep.subr.bf16.mxu0 %v8481_v41  ;;  %3212 = vmatprep.subr.bf16.mxu1 %v8484_v42  ;;  %v8542_v41 = vld [vmem:[%s11824_s3 + $0x468] ss:$16 sps:$4 sm:$0xff]   ;;  %v8547_v42 = vld [vmem:[%s11824_s3 + $0x24c] ss:$16 sps:$4 sm:$0xff]  }
 0x166   : > { %3172 = vmatpush2.bf16.msra.mxu0 %v8479_v43  ;;  %3213 = vmatpush2.bf16.msra.mxu1 %v8482_v38  ;;  %v8550_v43 = vld [vmem:[%s11824_s3 + $0x44c] ss:$16 sps:$4 sm:$0xff]   ;;  %v8545_v38 = vld [vmem:[%s11824_s3 + $0x248] ss:$16 sps:$4 sm:$0xff]  }
 0x167   : > { %3173 = vmatprep.subr.bf16.mxu0 %v8487_v44  ;;  %3214 = vmatprep.subr.bf16.mxu1 %v8490_v45  ;;  %v8548_v44 = vld [vmem:[%s11824_s3 + $0x448] ss:$16 sps:$4 sm:$0xff]   ;;  %v8553_v45 = vld [vmem:[%s11824_s3 + $0x22c] ss:$16 sps:$4 sm:$0xff]  }
 0x16a   : > { %3174 = vmatpush2.bf16.msra.mxu0 %v8485_v46  ;;  %3215 = vmatpush2.bf16.msra.mxu1 %v8488_v25  ;;  %v8556_v46 = vld [vmem:[%s11824_s3 + $0x42c] ss:$16 sps:$4 sm:$0xff]   ;;  %v8551_v25 = vld [vmem:[%s11824_s3 + $0x228] ss:$16 sps:$4 sm:$0xff]  }
 0x16b   : > { %3175 = vmatprep.subr.bf16.mxu0 %v8493_v50  ;;  %3216 = vmatprep.subr.bf16.mxu1 %v8496_v51  ;;  %v8554_v50 = vld [vmem:[%s11824_s3 + $0x428] ss:$16 sps:$4 sm:$0xff]   ;;  %v8559_v51 = vld [vmem:[%s11824_s3 + $0x20c] ss:$16 sps:$4 sm:$0xff]  }
 0x16e   : > { %3176 = vmatpush2.bf16.msra.mxu0 %v8491_v55  ;;  %3217 = vmatpush2.bf16.msra.mxu1 %v8494_v61  ;;  %v8562_v55 = vld [vmem:[%s11824_s3 + $0x40c] ss:$16 sps:$4 sm:$0xff]   ;;  %v8557_v61 = vld [vmem:[%s11824_s3 + $0x208] ss:$16 sps:$4 sm:$0xff]  }
 0x16f   : > { %3177 = vmatprep.subr.bf16.mxu0 %v8499_v62  ;;  %3218 = vmatprep.subr.bf16.mxu1 %v8502_v63  ;;  %v8560_v62 = vld [vmem:[%s11824_s3 + $0x408] ss:$16 sps:$4 sm:$0xff]   ;;  %v8565_v63 = vld [vmem:[%s11824_s3 + $0x3ec] ss:$16 sps:$4 sm:$0xff]  }
 0x172   : > { %3178 = vmatpush2.bf16.msra.mxu0 %v8497_v54  ;;  %3219 = vmatpush2.bf16.msra.mxu1 %v8500_v0  ;;  %v8568_v54 = vld [vmem:[%s11824_s3 + $0x5ec] ss:$16 sps:$4 sm:$0xff]   ;;  %v8563_v0 = vld [vmem:[%s11824_s3 + $0x3e8] ss:$16 sps:$4 sm:$0xff]  }
 0x173   : > { %3179 = vmatprep.subr.bf16.mxu0 %v8505_v1  ;;  %3220 = vmatprep.subr.bf16.mxu1 %v8508_v3  ;;  %v8566_v1 = vld [vmem:[%s11824_s3 + $0x5e8] ss:$16 sps:$4 sm:$0xff]   ;;  %v8574_v3 = vld [vmem:[%s11824_s3 + $0x5cc] ss:$16 sps:$4 sm:$0xff]  }
 0x176   : > { %3180 = vmatpush2.bf16.msra.mxu0 %v8503_v4  ;;  %3221 = vmatpush2.bf16.msra.mxu1 %v8506_v5  ;;  %v8569_v4 = vld [vmem:[%s11824_s3 + $0x3c8] ss:$16 sps:$4 sm:$0xff]  }
 0x177   : > { %3181 = vmatprep.subr.bf16.mxu0 %v8511_v6  ;;  %3222 = vmatprep.subr.bf16.mxu1 %v8514_v11  ;;  %v8572_v5 = vld [vmem:[%s11824_s3 + $0x5c8] ss:$16 sps:$4 sm:$0xff]   ;;  %v8577_v6 = vld [vmem:[%s11824_s3 + $0x3ac] ss:$16 sps:$4 sm:$0xff]  }
 0x178   : > { %v8578_v11 = vld [vmem:[%s11824_s3 + $0x5a8] ss:$16 sps:$4 sm:$0xff]  }
 0x17a   : > { %3182 = vmatpush2.bf16.msra.mxu0 %v8509_v12  ;;  %3223 = vmatpush2.bf16.msra.mxu1 %v8512_v13  ;;  %v8583_v12 = vld [vmem:[%s11824_s3 + $0x38c] ss:$16 sps:$4 sm:$0xff]  }
 0x17b   : > { %3233 = vmatprep.subr.bf16.mxu0 %v8517_v14  ;;  %3274 = vmatprep.subr.bf16.mxu1 %v8520_v17  ;;  %v8586_v13 = vld [vmem:[%s11824_s3 + $0x58c] ss:$16 sps:$4 sm:$0xff]   ;;  %v8581_v14 = vld [vmem:[%s11824_s3 + $0x388] ss:$16 sps:$4 sm:$0xff]  }
 0x17c   : > { %v8589_v17 = vld [vmem:[%s11824_s3 + $0x36c] ss:$16 sps:$4 sm:$0xff]  }
 0x17d   : > { %7624 = vmatmul.mubr.msk.bf16.vlgmr.msra.gmra.mxu0 %vm9609_vm8, %v9804_v22  ;;  %3225 = vmatmul.mubr.bf16.vlgmr.msra.gmra.mxu1 %v9349_v56  ;;  %v8532_v56 = vld [vmem:[%s11824_s3 + $0x4ac] ss:$16 sps:$4 sm:$0xff]  }
 0x17e   : > { %3234 = vmatpush1.bf16.msra.mxu0 %v8515_v18  ;;  %3265 = vmatprep.mubr.bf16.mxu0 %v9351_v57  ;;  %v8527_v57 = vld [vmem:[%s11824_s3 + $0x2a8] ss:$16 sps:$4 sm:$0xff]   ;;  %v8592_v18 = vld [vmem:[%s11824_s3 + $0x56c] ss:$16 sps:$4 sm:$0xff]  }
 0x17f   : > { %3275 = vmatpush1.bf16.msra.mxu1 %v8518_v21  ;;  %3306 = vmatprep.mubr.bf16.mxu1 %v9471_v52  ;;  %v8535_v52 = vld [vmem:[%s11824_s3 + $0x28c] ss:$16 sps:$4 sm:$0xff]   ;;  %v8587_v21 = vld [vmem:[%s11824_s3 + $0x368] ss:$16 sps:$4 sm:$0xff]  }
 0x180   : > { %3235 = vmatprep.subr.bf16.mxu0 %v8523_v19  ;;  %3276 = vmatprep.subr.bf16.mxu1 %v8526_v27  ;;  %v8590_v19 = vld [vmem:[%s11824_s3 + $0x568] ss:$16 sps:$4 sm:$0xff]   ;;  %v8595_v27 = vld [vmem:[%s11824_s3 + $0x34c] ss:$16 sps:$4 sm:$0xff]  }
 0x182   : > { %3236 = vmatpush1.bf16.msra.mxu0 %v8521_v48  ;;  %v8598_v48 = vld [vmem:[%s11824_s3 + $0x54c] ss:$16 sps:$4 sm:$0xff]  }
 0x183   : > { %3277 = vmatpush1.bf16.msra.mxu1 %v8524_v32  ;;  %3237 = vmatprep.subr.bf16.mxu0 %v8529_v24  ;;  %v8593_v32 = vld [vmem:[%s11824_s3 + $0x348] ss:$16 sps:$4 sm:$0xff]  }
 0x184   : > { %3278 = vmatprep.subr.bf16.mxu1 %v8532_v56  ;;  %v8596_v24 = vld [vmem:[%s11824_s3 + $0x548] ss:$16 sps:$4 sm:$0xff]   ;;  %v8601_v56 = vld [vmem:[%s11824_s3 + $0x32c] ss:$16 sps:$4 sm:$0xff]  }
 0x186   : > { %3238 = vmatpush1.bf16.msra.mxu0 %v8527_v57  ;;  %v8604_v57 = vld [vmem:[%s11824_s3 + $0x52c] ss:$16 sps:$4 sm:$0xff]  }
 0x187   : > { %3279 = vmatpush1.bf16.msra.mxu1 %v8530_v33  ;;  %3239 = vmatprep.subr.bf16.mxu0 %v8535_v52  ;;  %v8599_v33 = vld [vmem:[%s11824_s3 + $0x328] ss:$16 sps:$4 sm:$0xff]  }
 0x188   : > { %3280 = vmatprep.subr.bf16.mxu1 %v8538_v35  ;;  %v8602_v52 = vld [vmem:[%s11824_s3 + $0x528] ss:$16 sps:$4 sm:$0xff]   ;;  %v8607_v35 = vld [vmem:[%s11824_s3 + $0x30c] ss:$16 sps:$4 sm:$0xff]  }
 0x18a   : > { %3240 = vmatpush1.bf16.msra.mxu0 %v8533_v34  ;;  %v8610_v34 = vld [vmem:[%s11824_s3 + $0x50c] ss:$16 sps:$4 sm:$0xff]  }
 0x18b   : > { %3281 = vmatpush1.bf16.msra.mxu1 %v8536_v36  ;;  %3241 = vmatprep.subr.bf16.mxu0 %v8541_v39  ;;  %v8605_v36 = vld [vmem:[%s11824_s3 + $0x308] ss:$16 sps:$4 sm:$0xff]  }
 0x18c   : > { %3282 = vmatprep.subr.bf16.mxu1 %v8544_v40  ;;  %v8608_v39 = vld [vmem:[%s11824_s3 + $0x508] ss:$16 sps:$4 sm:$0xff]   ;;  %v8613_v40 = vld [vmem:[%s11824_s3 + $0x6ec] ss:$16 sps:$4 sm:$0xff]  }
 0x18e   : > { %3242 = vmatpush1.bf16.msra.mxu0 %v8539_v37  ;;  %v9998_v37 = vld [vmem:[%s11825_s4] sm:$0xf] }
 0x18f   : > { %3283 = vmatpush1.bf16.msra.mxu1 %v8542_v41  ;;  %3243 = vmatprep.subr.bf16.mxu0 %v8547_v42  ;;  %v8616_v41 = vld [vmem:[%s11824_s3 + $0x8ec] ss:$16 sps:$4 sm:$0xff]   ;;  %v8611_v42 = vld [vmem:[%s11824_s3 + $0x6e8] ss:$16 sps:$4 sm:$0xff]  }
 0x190   : > { %3284 = vmatprep.subr.bf16.mxu1 %v8550_v43  ;;  %v1370_v43 = vrot.slane %v9998_v37, %v9317_v28 }
 0x192   : > { %3244 = vmatpush1.bf16.msra.mxu0 %v8545_v38  ;;  %v8614_v38 = vld [vmem:[%s11824_s3 + $0x8e8] ss:$16 sps:$4 sm:$0xff]  }
 0x193   : > { %3285 = vmatpush1.bf16.msra.mxu1 %v8548_v44  ;;  %3245 = vmatprep.subr.bf16.mxu0 %v8553_v45  ;;  %v1374_v44 = vrot.slane %v9998_v37, %v9323_v30  ;;  %v8619_v45 = vld [vmem:[%s11824_s3 + $0x6cc] ss:$16 sps:$4 sm:$0xff]  }
 0x194   : > { %3286 = vmatprep.subr.bf16.mxu1 %v8556_v46 }
 0x196   : > { %3246 = vmatpush1.bf16.msra.mxu0 %v8551_v25  ;;  %v8622_v25 = vld [vmem:[%s11824_s3 + $0x8cc] ss:$16 sps:$4 sm:$0xff]  }
 0x197   : > { %3287 = vmatpush1.bf16.msra.mxu1 %v8554_v50  ;;  %3247 = vmatprep.subr.bf16.mxu0 %v8559_v51 }
 0x198   : > { %3288 = vmatprep.subr.bf16.mxu1 %v8562_v55  ;;  %v8617_v55 = vld [vmem:[%s11824_s3 + $0x6c8] ss:$16 sps:$4 sm:$0xff]  }
 0x19a   : > { %3248 = vmatpush1.bf16.msra.mxu0 %v8557_v61 }
 0x19b   : > { %3289 = vmatpush1.bf16.msra.mxu1 %v8560_v62  ;;  %3249 = vmatprep.subr.bf16.mxu0 %v8565_v63  ;;  %v8625_v62 = vld [vmem:[%s11824_s3 + $0x6ac] ss:$16 sps:$4 sm:$0xff]  }
 0x19c   : > { %3290 = vmatprep.subr.bf16.mxu1 %v8568_v54 }
 0x19e   : > { %3250 = vmatpush2.bf16.msra.mxu0 %v8563_v0 }
 0x19f   : > { %3291 = vmatpush2.bf16.msra.mxu1 %v8566_v1  ;;  %3251 = vmatprep.subr.bf16.mxu0 %v8571_v2 }
 0x1a0   : > { %3292 = vmatprep.subr.bf16.mxu1 %v8574_v3  ;;  %v8623_v3 = vld [vmem:[%s11824_s3 + $0x6a8] ss:$16 sps:$4 sm:$0xff]  }
 0x1a2   : > { %3252 = vmatpush2.bf16.msra.mxu0 %v8569_v4 }
 0x1a3   : > { %3293 = vmatpush2.bf16.msra.mxu1 %v8572_v5  ;;  %3253 = vmatprep.subr.bf16.mxu0 %v8577_v6  ;;  %v8631_v5 = vld [vmem:[%s11824_s3 + $0x68c] ss:$16 sps:$4 sm:$0xff]  }
 0x1a4   : > { %3294 = vmatprep.subr.bf16.mxu1 %v8580_v7  ;;  %v8634_v7 = vld [vmem:[%s11824_s3 + $0x88c] ss:$16 sps:$4 sm:$0xff]  }
 0x1a6   : > { %3254 = vmatpush2.bf16.msra.mxu0 %v8575_v9  ;;  %v8629_v9 = vld [vmem:[%s11824_s3 + $0x688] ss:$16 sps:$4 sm:$0xff]  }
 0x1a7   : > { %3295 = vmatpush2.bf16.msra.mxu1 %v8578_v11  ;;  %3255 = vmatprep.subr.bf16.mxu0 %v8583_v12  ;;  %v8632_v11 = vld [vmem:[%s11824_s3 + $0x888] ss:$16 sps:$4 sm:$0xff]   ;;  %v8637_v12 = vld [vmem:[%s11824_s3 + $0x66c] ss:$16 sps:$4 sm:$0xff]  }
 0x1a8   : > { %3296 = vmatprep.subr.bf16.mxu1 %v8586_v13  ;;  %v8640_v13 = vld [vmem:[%s11824_s3 + $0x86c] ss:$16 sps:$4 sm:$0xff]  }
 0x1aa   : > { %3256 = vmatpush2.bf16.msra.mxu0 %v8581_v14  ;;  %v8635_v14 = vld [vmem:[%s11824_s3 + $0x668] ss:$16 sps:$4 sm:$0xff]  }
 0x1ab   : > { %3297 = vmatpush2.bf16.msra.mxu1 %v8584_v15  ;;  %3257 = vmatprep.subr.bf16.mxu0 %v8589_v17  ;;  %v8638_v15 = vld [vmem:[%s11824_s3 + $0x868] ss:$16 sps:$4 sm:$0xff]   ;;  %v8643_v17 = vld [vmem:[%s11824_s3 + $0x64c] ss:$16 sps:$4 sm:$0xff]  }
 0x1ac   : > { %3298 = vmatprep.subr.bf16.mxu1 %v8592_v18  ;;  %v8646_v18 = vld [vmem:[%s11824_s3 + $0x84c] ss:$16 sps:$4 sm:$0xff]  }
 0x1ae   : > { %3258 = vmatpush2.bf16.msra.mxu0 %v8587_v21  ;;  %v8641_v21 = vld [vmem:[%s11824_s3 + $0x648] ss:$16 sps:$4 sm:$0xff]  }
 0x1af   : > { %3299 = vmatpush2.bf16.msra.mxu1 %v8590_v19  ;;  %3259 = vmatprep.subr.bf16.mxu0 %v8595_v27  ;;  %v8644_v19 = vld [vmem:[%s11824_s3 + $0x848] ss:$16 sps:$4 sm:$0xff]   ;;  %v8649_v27 = vld [vmem:[%s11824_s3 + $0x62c] ss:$16 sps:$4 sm:$0xff]  }
 0x1b0   : > { %3300 = vmatprep.subr.bf16.mxu1 %v8598_v48  ;;  %v8652_v48 = vld [vmem:[%s11824_s3 + $0x82c] ss:$16 sps:$4 sm:$0xff]  }
 0x1b2   : > { %3260 = vmatpush2.bf16.msra.mxu0 %v8593_v32  ;;  %v8647_v32 = vld [vmem:[%s11824_s3 + $0x628] ss:$16 sps:$4 sm:$0xff]  }
 0x1b3   : > { %3301 = vmatpush2.bf16.msra.mxu1 %v8596_v24  ;;  %3261 = vmatprep.subr.bf16.mxu0 %v8601_v56  ;;  %v8650_v24 = vld [vmem:[%s11824_s3 + $0x828] ss:$16 sps:$4 sm:$0xff]   ;;  %v8655_v56 = vld [vmem:[%s11824_s3 + $0x60c] ss:$16 sps:$4 sm:$0xff]  }
 0x1b4   : > { %3302 = vmatprep.subr.bf16.mxu1 %v8604_v57  ;;  %v8658_v57 = vld [vmem:[%s11824_s3 + $0x80c] ss:$16 sps:$4 sm:$0xff]  }
 0x1b6   : > { %3262 = vmatpush2.bf16.msra.mxu0 %v8599_v33  ;;  %v8653_v33 = vld [vmem:[%s11824_s3 + $0x608] ss:$16 sps:$4 sm:$0xff]  }
 0x1b7   : > { %3303 = vmatpush2.bf16.msra.mxu1 %v8602_v52  ;;  %3263 = vmatprep.subr.bf16.mxu0 %v8607_v35  ;;  %v8656_v52 = vld [vmem:[%s11824_s3 + $0x808] ss:$16 sps:$4 sm:$0xff]   ;;  %v8661_v35 = vld [vmem:[%s11824_s3 + $0x7ec] ss:$16 sps:$4 sm:$0xff]  }
 0x1b8   : > { %3304 = vmatprep.subr.bf16.mxu1 %v8610_v34  ;;  %v8664_v34 = vld [vmem:[%s11824_s3 + $0x9ec] ss:$16 sps:$4 sm:$0xff]  }
 0x1ba   : > { %3264 = vmatpush2.bf16.msra.mxu0 %v8605_v36  ;;  %v8659_v36 = vld [vmem:[%s11824_s3 + $0x7e8] ss:$16 sps:$4 sm:$0xff]  }
 0x1bb   : > { %3305 = vmatpush2.bf16.msra.mxu1 %v8608_v39  ;;  %3315 = vmatprep.subr.bf16.mxu0 %v8613_v40  ;;  %v8662_v39 = vld [vmem:[%s11824_s3 + $0x9e8] ss:$16 sps:$4 sm:$0xff]   ;;  %v8667_v40 = vld [vmem:[%s11824_s3 + $0x7cc] ss:$16 sps:$4 sm:$0xff]  }
 0x1bc   : > { %3356 = vmatprep.subr.bf16.mxu1 %v8616_v41  ;;  %v8670_v41 = vld [vmem:[%s11824_s3 + $0x9cc] ss:$16 sps:$4 sm:$0xff]  }
 0x1bd   : > { %3266 = vmatmul.mubr.bf16.vlgmr.msra.gmra.mxu0 %v9345_v53  ;;  %v3021_v46 = vpop.f32.mrf.mxu0  ;;  %v3062_v51 = vpop.f32.mrf.mxu1  ;;  %v8620_v53 = vld [vmem:[%s11824_s3 + $0x8c8] ss:$16 sps:$4 sm:$0xff]  }
 0x1be   : > { %3307 = vmatmul.mubr.bf16.vlgmr.msra.gmra.mxu1 %v9583_v47  ;;  %v3022_v50 = vadd.f32 %v3021_v46, %v1370_v43  ;;  %3316 = vmatpush1.bf16.msra.mxu0 %v8611_v42  ;;  %v8665_v42 = vld [vmem:[%s11824_s3 + $0x7c8] ss:$16 sps:$4 sm:$0xff]  }
 0x1bf   : > { %3347 = vmatprep.mubr.bf16.mxu0 %v9479_v60  ;;  %3357 = vmatpush1.bf16.msra.mxu1 %v8614_v38  ;;  %v3023_v61 = vpop.f32.mrf.mxu0  ;;  %v3064_v54 = vpop.f32.mrf.mxu1  ;;  %v8628_v60 = vld [vmem:[%s11824_s3 + $0x8ac] ss:$16 sps:$4 sm:$0xff]   ;;  %v8668_v43 = vld [vmem:[%s11824_s3 + $0x9c8] ss:$16 sps:$4 sm:$0xff]  }
 0x1c0   : > { %v10031_v47 = vadd.f32 %v3062_v51, %v3022_v50  ;;  %7625 = vmatprep.mubr.msk.bf16.mxu1 %vm9609_vm8, %v9607_v58  ;;  %v3024_v63 = vadd.f32 %v3023_v61, %v1374_v44  ;;  %3317 = vmatprep.subr.bf16.mxu0 %v8619_v45  ;;  %v8626_v58 = vld [vmem:[%s11824_s3 + $0x8a8] ss:$16 sps:$4 sm:$0xff]   ;;  %v8673_v38 = vld [vmem:[%s11824_s3 + $0x7ac] ss:$16 sps:$4 sm:$0xff]  }
 0x1c1   : > { %3358 = vmatprep.subr.bf16.mxu1 %v8622_v25  ;;  %v3025_v0 = vpop.f32.mrf.mxu0  ;;  %v3066_v2 = vpop.f32.mrf.mxu1  ;;  %v8676_v44 = vld [vmem:[%s11824_s3 + $0x9ac] ss:$16 sps:$4 sm:$0xff]   ;;  %v8671_v45 = vld [vmem:[%s11824_s3 + $0x7a8] ss:$16 sps:$4 sm:$0xff]  }
 0x1c2   : > { %v10039_v1 = vadd.f32 %v3064_v54, %v3024_v63  ;;  %3318 = vmatpush1.bf16.msra.mxu0 %v8617_v55  ;;  %v8674_v46 = vld [vmem:[%s11824_s3 + $0x9a8] ss:$16 sps:$4 sm:$0xff]   ;;  %v8679_v25 = vld [vmem:[%s11824_s3 + $0x78c] ss:$16 sps:$4 sm:$0xff]  }
 0x1c3   : > { %3359 = vmatpush1.bf16.msra.mxu1 %v8620_v53  ;;  %v3026_v4 = vpop.f32.mrf.mxu0  ;;  %3319 = vmatprep.subr.bf16.mxu0 %v8625_v62  ;;  %v3067_v6 = vpop.f32.mrf.mxu1  ;;  %v8682_v50 = vld [vmem:[%s11824_s3 + $0x98c] ss:$16 sps:$4 sm:$0xff]   ;;  %v8677_v51 = vld [vmem:[%s11824_s3 + $0x788] ss:$16 sps:$4 sm:$0xff]  }
 0x1c4   : > { %3360 = vmatprep.subr.bf16.mxu1 %v8628_v60  ;;  %v8680_v55 = vld [vmem:[%s11824_s3 + $0x988] ss:$16 sps:$4 sm:$0xff]   ;;  %v8685_v61 = vld [vmem:[%s11824_s3 + $0x76c] ss:$16 sps:$4 sm:$0xff]  }
 0x1c5   : > { %v8688_v53 = vld [vmem:[%s11824_s3 + $0x96c] ss:$16 sps:$4 sm:$0xff]   ;;  %v8683_v62 = vld [vmem:[%s11824_s3 + $0x768] ss:$16 sps:$4 sm:$0xff]  }
 0x1c6   : > { %3320 = vmatpush1.bf16.msra.mxu0 %v8623_v3  ;;  %v8686_v63 = vld [vmem:[%s11824_s3 + $0x968] ss:$16 sps:$4 sm:$0xff]   ;;  %v8691_v54 = vld [vmem:[%s11824_s3 + $0x74c] ss:$16 sps:$4 sm:$0xff]  }
 0x1c7   : > { %3361 = vmatpush1.bf16.msra.mxu1 %v8626_v58  ;;  %3321 = vmatprep.subr.bf16.mxu0 %v8631_v5  ;;  %v8694_v60 = vld [vmem:[%s11824_s3 + $0x94c] ss:$16 sps:$4 sm:$0xff]   ;;  %v8689_v0 = vld [vmem:[%s11824_s3 + $0x748] ss:$16 sps:$4 sm:$0xff]  }
 0x1c8   : > { %3362 = vmatprep.subr.bf16.mxu1 %v8634_v7  ;;  %v8692_v2 = vld [vmem:[%s11824_s3 + $0x948] ss:$16 sps:$4 sm:$0xff]   ;;  %v8697_v3 = vld [vmem:[%s11824_s3 + $0x72c] ss:$16 sps:$4 sm:$0xff]  }
 0x1c9   : > { %v8700_v4 = vld [vmem:[%s11824_s3 + $0x92c] ss:$16 sps:$4 sm:$0xff]   ;;  %v8695_v58 = vld [vmem:[%s11824_s3 + $0x728] ss:$16 sps:$4 sm:$0xff]  }
 0x1ca   : > { %3322 = vmatpush1.bf16.msra.mxu0 %v8629_v9  ;;  %v8698_v5 = vld [vmem:[%s11824_s3 + $0x928] ss:$16 sps:$4 sm:$0xff]   ;;  %v8703_v6 = vld [vmem:[%s11824_s3 + $0x70c] ss:$16 sps:$4 sm:$0xff]   ;;  %v3491_v9 = vld [vmem:[%s11826_s5 + $0x1c0] sm:$0xff] }
 0x1cb   : > { %3363 = vmatpush1.bf16.msra.mxu1 %v8632_v11  ;;  %3323 = vmatprep.subr.bf16.mxu0 %v8637_v12  ;;  %v8706_v7 = vld [vmem:[%s11824_s3 + $0x90c] ss:$16 sps:$4 sm:$0xff]   ;;  %v3495_v11 = vld [vmem:[%s11826_s5 + $0x1e0] sm:$0xff]  ;;  %v8701_v12 = vld [vmem:[%s11824_s3 + $0x708] ss:$16 sps:$4 sm:$0xff]  }
 0x1cc   : > { %3364 = vmatprep.subr.bf16.mxu1 %v8640_v13  ;;  %v8704_v13 = vld [vmem:[%s11824_s3 + $0x908] ss:$16 sps:$4 sm:$0xff]  }
 0x1ce   : > { %3324 = vmatpush1.bf16.msra.mxu0 %v8635_v14  ;;  %v7685_v14 = vcombine.high %v3491_v9, %v3495_v11 }
 0x1cf   : > { %3365 = vmatpush1.bf16.msra.mxu1 %v8638_v15  ;;  %3325 = vmatprep.subr.bf16.mxu0 %v8643_v17  ;;  %v3483_v15 = vld [vmem:[%s11826_s5 + $0x180] sm:$0xff] }
 0x1d0   : > { %3366 = vmatprep.subr.bf16.mxu1 %v8646_v18  ;;  %v3487_v17 = vld [vmem:[%s11826_s5 + $0x1a0] sm:$0xff]  ;;  %v7684_v18 = vcombine.low %v3491_v9, %v3495_v11 }
 0x1d1   : > { %v3439_v9 = vld [vmem:[%s11826_s5 + $0x20] sm:$0xff] }
 0x1d2   : > { %3326 = vmatpush1.bf16.msra.mxu0 %v8641_v21  ;;  %v7677_v21 = vcombine.high %v3483_v15, %v3487_v17  ;;  %v3595_v11 = vld [vmem:[%s11826_s5 + $0x500] sm:$0xff] }
 0x1d3   : > { %3367 = vmatpush1.bf16.msra.mxu1 %v8644_v19  ;;  %3327 = vmatprep.subr.bf16.mxu0 %v8649_v27  ;;  %v3475_v19 = vld [vmem:[%s11826_s5 + $0x140] sm:$0xff] }
 0x1d4   : > { %3368 = vmatprep.subr.bf16.mxu1 %v8652_v48  ;;  %v3479_v27 = vld [vmem:[%s11826_s5 + $0x160] sm:$0xff] }
 0x1d6   : > { %3328 = vmatpush1.bf16.msra.mxu0 %v8647_v32 }
 0x1d7   : > { %3369 = vmatpush1.bf16.msra.mxu1 %v8650_v24  ;;  %3329 = vmatprep.subr.bf16.mxu0 %v8655_v56  ;;  %v7676_v56 = vcombine.low %v3483_v15, %v3487_v17  ;;  %v3555_v17 = vld [vmem:[%s11826_s5 + $0x3c0] sm:$0xff] }
 0x1d8   : > { %3370 = vmatprep.subr.bf16.mxu1 %v8658_v57 }
 0x1da   : > { %3330 = vmatpush1.bf16.msra.mxu0 %v8653_v33  ;;  %v7669_v33 = vcombine.high %v3475_v19, %v3479_v27 }
 0x1db   : > { %3371 = vmatpush1.bf16.msra.mxu1 %v8656_v52  ;;  %3331 = vmatprep.subr.bf16.mxu0 %v8661_v35 }
 0x1dc   : > { %3372 = vmatprep.subr.bf16.mxu1 %v8664_v34  ;;  %v7668_v34 = vcombine.low %v3475_v19, %v3479_v27  ;;  %v3587_v19 = vld [vmem:[%s11826_s5 + $0x4c0] sm:$0xff] }
 0x1dd   : > { %v3591_v27 = vld [vmem:[%s11826_s5 + $0x4e0] sm:$0xff] }
 0x1de   : > { %3332 = vmatpush2.bf16.msra.mxu0 %v8659_v36 }
 0x1df   : > { %3373 = vmatpush2.bf16.msra.mxu1 %v8662_v39  ;;  %3333 = vmatprep.subr.bf16.mxu0 %v8667_v40 }
 0x1e0   : > { %3374 = vmatprep.subr.bf16.mxu1 %v8670_v41  ;;  %v3459_v41 = vld [vmem:[%s11826_s5 + $0xc0] sm:$0xff] }
 0x1e2   : > { %3334 = vmatpush2.bf16.msra.mxu0 %v8665_v42  ;;  %v3463_v42 = vld [vmem:[%s11826_s5 + $0xe0] sm:$0xff] }
 0x1e3   : > { %3375 = vmatpush2.bf16.msra.mxu1 %v8668_v43  ;;  %3335 = vmatprep.subr.bf16.mxu0 %v8673_v38  ;;  %v7653_v38 = vcombine.high %v3459_v41, %v3463_v42 }
 0x1e4   : > { %3376 = vmatprep.subr.bf16.mxu1 %v8676_v44  ;;  %v3451_v44 = vld [vmem:[%s11826_s5 + $0x80] sm:$0xff] }
 0x1e6   : > { %3336 = vmatpush2.bf16.msra.mxu0 %v8671_v45  ;;  %v3619_v45 = vld [vmem:[%s11826_s5 + $0x5c0] sm:$0xff] }
 0x1e7   : > { %3377 = vmatpush2.bf16.msra.mxu1 %v8674_v46  ;;  %3337 = vmatprep.subr.bf16.mxu0 %v8679_v25  ;;  %v3623_v46 = vld [vmem:[%s11826_s5 + $0x5e0] sm:$0xff] }
 0x1e8   : > { %3378 = vmatprep.subr.bf16.mxu1 %v8682_v50  ;;  %v3455_v25 = vld [vmem:[%s11826_s5 + $0xa0] sm:$0xff]  ;;  %v7812_v50 = vcombine.low %v3619_v45, %v3623_v46 }
 0x1ea   : > { %3338 = vmatpush2.bf16.msra.mxu0 %v8677_v51  ;;  %v7813_v51 = vcombine.high %v3619_v45, %v3623_v46  ;;  %v3531_v46 = vld [vmem:[%s11826_s5 + $0x300] sm:$0xff] }
 0x1eb   : > { %3379 = vmatpush2.bf16.msra.mxu1 %v8680_v55  ;;  %3339 = vmatprep.subr.bf16.mxu0 %v8685_v61  ;;  %v3611_v55 = vld [vmem:[%s11826_s5 + $0x580] sm:$0xff] }
 0x1ec   : > { %3380 = vmatprep.subr.bf16.mxu1 %v8688_v53  ;;  %v3615_v61 = vld [vmem:[%s11826_s5 + $0x5a0] sm:$0xff] }
 0x1ed   : > { %v7805_v53 = vcombine.high %v3611_v55, %v3615_v61 }
 0x1ee   : > { %3340 = vmatpush2.bf16.msra.mxu0 %v8683_v62  ;;  %v7652_v62 = vcombine.low %v3459_v41, %v3463_v42  ;;  %v3543_v41 = vld [vmem:[%s11826_s5 + $0x360] sm:$0xff] }
 0x1ef   : > { %3381 = vmatpush2.bf16.msra.mxu1 %v8686_v63  ;;  %3341 = vmatprep.subr.bf16.mxu0 %v8691_v54  ;;  %v7645_v63 = vcombine.high %v3451_v44, %v3455_v25  ;;  %v3443_v54 = vld [vmem:[%s11826_s5 + $0x40] sm:$0xff] }
 0x1f0   : > { %3382 = vmatprep.subr.bf16.mxu1 %v8694_v60  ;;  %v7804_v60 = vcombine.low %v3611_v55, %v3615_v61  ;;  %v3571_v42 = vld [vmem:[%s11826_s5 + $0x440] sm:$0xff] }
 0x1f1   : > { %v3567_v55 = vld [vmem:[%s11826_s5 + $0x420] sm:$0xff] }
 0x1f2   : > { %3342 = vmatpush2.bf16.msra.mxu0 %v8689_v0  ;;  %v3447_v0 = vld [vmem:[%s11826_s5 + $0x60] sm:$0xff] }
 0x1f3   : > { %3383 = vmatpush2.bf16.msra.mxu1 %v8692_v2  ;;  %3343 = vmatprep.subr.bf16.mxu0 %v8697_v3  ;;  %v3603_v2 = vld [vmem:[%s11826_s5 + $0x540] sm:$0xff] }
 0x1f4   : > { %3384 = vmatprep.subr.bf16.mxu1 %v8700_v4  ;;  %v3607_v3 = vld [vmem:[%s11826_s5 + $0x560] sm:$0xff] }
 0x1f5   : > { %v7797_v4 = vcombine.high %v3603_v2, %v3607_v3 }
 0x1f6   : > { %3344 = vmatpush2.bf16.msra.mxu0 %v8695_v58  ;;  %v7644_v58 = vcombine.low %v3451_v44, %v3455_v25 }
 0x1f7   : > { %3385 = vmatpush2.bf16.msra.mxu1 %v8698_v5  ;;  %3345 = vmatprep.subr.bf16.mxu0 %v8703_v6  ;;  %v7637_v5 = vcombine.high %v3443_v54, %v3447_v0  ;;  %v3435_v6 = vld [vmem:[%s11826_s5] sm:$0xff] }
 0x1f8   : > { %3386 = vmatprep.subr.bf16.mxu1 %v8706_v7  ;;  %v7796_v7 = vcombine.low %v3603_v2, %v3607_v3  ;;  %v7629_v15 = vcombine.high %v3435_v6, %v3439_v9  ;;  %v3687_v2 = vld [vmem:[%s11826_s5 + $0x7e0] sm:$0xff] }
 0x1fa   : > { %3346 = vmatpush2.bf16.msra.mxu0 %v8701_v12  ;;  %v3599_v12 = vld [vmem:[%s11826_s5 + $0x520] sm:$0xff] }
 0x1fb   : > { %3387 = vmatpush2.bf16.msra.mxu1 %v8704_v13  ;;  %5781 = vmatprep.subr.bf16.mxu0 %v7685_v14  ;;  %v7789_v13 = vcombine.high %v3595_v11, %v3599_v12  ;;  %v7636_v14 = vcombine.low %v3443_v54, %v3447_v0  ;;  %v3683_v0 = vld [vmem:[%s11826_s5 + $0x7c0] sm:$0xff] }
 0x1fc   : > { %5822 = vmatprep.subr.bf16.mxu1 %v7813_v51  ;;  %v3563_v51 = vld [vmem:[%s11826_s5 + $0x400] sm:$0xff]  ;;  %v7877_v3 = vcombine.high %v3683_v0, %v3687_v2 }
 0x1fd   : > { %v3103_v48 = vpop.f32.mrf.mxu0  ;;  %3348 = vmatmul.mubr.bf16.vlgmr.msra.gmra.mxu0 %v9592_v49  ;;  %v3144_v24 = vpop.f32.mrf.mxu1  ;;  %v3467_v49 = vld [vmem:[%s11826_s5 + $0x100] sm:$0xff]  ;;  %v7757_v61 = vcombine.high %v3563_v51, %v3567_v55  ;;  %v7756_v54 = vcombine.low %v3563_v51, %v3567_v55 }
 0x1fe   : > { %v3104_v32 = vadd.f32 %v3103_v48, %v10031_v47  ;;  %7626 = vmatmul.mubr.msk.bf16.vlgmr.msra.gmra.mxu1 %vm9609_vm8, %v9804_v22  ;;  %5782 = vmatpush1.bf16.msra.mxu0 %v7684_v18  ;;  %v3471_v47 = vld [vmem:[%s11826_s5 + $0x120] sm:$0xff]  ;;  %v7788_v18 = vcombine.low %v3595_v11, %v3599_v12  ;;  %v7781_v48 = vcombine.high %v3587_v19, %v3591_v27 }
 0x1ff   : > { %v10226_v57 = vpop.f32.mrf.mxu0  ;;  %5783 = vmatprep.subr.bf16.mxu0 %v7677_v21  ;;  %v10230_v35 = vpop.f32.mrf.mxu1  ;;  %v7661_v39 = vcombine.high %v3467_v49, %v3471_v47  ;;  %v7660_v43 = vcombine.low %v3467_v49, %v3471_v47  ;;  %5823 = vmatpush1.bf16.msra.mxu1 %v7812_v50  ;;  %v3559_v21 = vld [vmem:[%s11826_s5 + $0x3e0] sm:$0xff] }
 0x200   : > { %v10228_v52 = vadd.f32 %v3144_v24, %v3104_v32  ;;  %5824 = vmatprep.subr.bf16.mxu1 %v7805_v53  ;;  %v7628_v32 = vcombine.low %v3435_v6, %v3439_v9  ;;  %v7749_v24 = vcombine.high %v3555_v17, %v3559_v21  ;;  %v3551_v49 = vld [vmem:[%s11826_s5 + $0x3a0] sm:$0xff]  ;;  %v7876_v6 = vcombine.low %v3683_v0, %v3687_v2 }
 0x201   : > { %v3107_v59 = vpop.f32.mrf.mxu0  ;;  %v3148_v22 = vpop.f32.mrf.mxu1  ;;  %v3579_v47 = vld [vmem:[%s11826_s5 + $0x480] sm:$0xff]  ;;  %v3106_v51 = vadd.f32 %v10226_v57, %v10039_v1 }
 0x202   : > { %5784 = vmatpush1.bf16.msra.mxu0 %v7676_v56  ;;  %v3547_v56 = vld [vmem:[%s11826_s5 + $0x380] sm:$0xff] }
 0x203   : > { %v3108_v36 = vpop.f32.mrf.mxu0  ;;  %5785 = vmatprep.subr.bf16.mxu0 %v7669_v33  ;;  %v3149_v40 = vpop.f32.mrf.mxu1  ;;  %5825 = vmatpush1.bf16.msra.mxu1 %v7804_v60  ;;  %v7780_v33 = vcombine.low %v3587_v19, %v3591_v27  ;;  %v3583_v59 = vld [vmem:[%s11826_s5 + $0x4a0] sm:$0xff]  ;;  %v7740_v44 = vcombine.low %v3547_v56, %v3551_v49 }
 0x204   : > { %5826 = vmatprep.subr.bf16.mxu1 %v7797_v4  ;;  %v7773_v22 = vcombine.high %v3579_v47, %v3583_v59  ;;  %v7741_v36 = vcombine.high %v3547_v56, %v3551_v49  ;;  %v7772_v40 = vcombine.low %v3579_v47, %v3583_v59  ;;  %v3535_v50 = vld [vmem:[%s11826_s5 + $0x320] sm:$0xff] }
 0x205   : > { %v3527_v60 = vld [vmem:[%s11826_s5 + $0x2e0] sm:$0xff]  ;;  %v7724_v4 = vcombine.low %v3531_v46, %v3535_v50 }
 0x206   : > { %5786 = vmatpush1.bf16.msra.mxu0 %v7668_v34  ;;  %v7748_v34 = vcombine.low %v3555_v17, %v3559_v21  ;;  %v3675_v9 = vld [vmem:[%s11826_s5 + $0x780] sm:$0xff] }
 0x207   : > { %5787 = vmatprep.subr.bf16.mxu0 %v7661_v39  ;;  %5827 = vmatpush1.bf16.msra.mxu1 %v7796_v7  ;;  %v3539_v39 = vld [vmem:[%s11826_s5 + $0x340] sm:$0xff] }
 0x208   : > { %5828 = vmatprep.subr.bf16.mxu1 %v7789_v13  ;;  %v7733_v45 = vcombine.high %v3539_v39, %v3543_v41  ;;  %v7732_v53 = vcombine.low %v3539_v39, %v3543_v41  ;;  %v3519_v7 = vld [vmem:[%s11826_s5 + $0x2a0] sm:$0xff] }
 0x209   : > { %v3679_v11 = vld [vmem:[%s11826_s5 + $0x7a0] sm:$0xff] }
 0x20a   : > { %5788 = vmatpush1.bf16.msra.mxu0 %v7660_v43  ;;  %v3575_v43 = vld [vmem:[%s11826_s5 + $0x460] sm:$0xff]  ;;  %v7869_v12 = vcombine.high %v3675_v9, %v3679_v11  ;;  %v7868_v17 = vcombine.low %v3675_v9, %v3679_v11 }
 0x20b   : > { %5789 = vmatprep.subr.bf16.mxu0 %v7653_v38  ;;  %5829 = vmatpush1.bf16.msra.mxu1 %v7788_v18  ;;  %v7765_v38 = vcombine.high %v3571_v42, %v3575_v43  ;;  %v7764_v25 = vcombine.low %v3571_v42, %v3575_v43  ;;  %v3511_v18 = vld [vmem:[%s11826_s5 + $0x260] sm:$0xff] }
 0x20c   : > { %5830 = vmatprep.subr.bf16.mxu1 %v7781_v48  ;;  %v3667_v21 = vld [vmem:[%s11826_s5 + $0x740] sm:$0xff] }
 0x20d   : > { %v3671_v19 = vld [vmem:[%s11826_s5 + $0x760] sm:$0xff] }
 0x20e   : > { %5790 = vmatpush1.bf16.msra.mxu0 %v7652_v62  ;;  %v7725_v62 = vcombine.high %v3531_v46, %v3535_v50  ;;  %v7861_v27 = vcombine.high %v3667_v21, %v3671_v19  ;;  %v7860_v56 = vcombine.low %v3667_v21, %v3671_v19  ;;  %v3659_v49 = vld [vmem:[%s11826_s5 + $0x700] sm:$0xff]  ;;  %v7627_v19 = vcombine.low %v9309_v26, %v9309_v26  ;;  %v10452_v26 = vld [vmem:[%s11826_s5 + $0x1c8] sm:$0xff] }
 0x20f   : > { %5791 = vmatprep.subr.bf16.mxu0 %v7645_v63  ;;  %5831 = vmatpush1.bf16.msra.mxu1 %v7780_v33  ;;  %v3523_v63 = vld [vmem:[%s11826_s5 + $0x2c0] sm:$0xff] }
 0x210   : > { %5832 = vmatprep.subr.bf16.mxu1 %v7773_v22  ;;  %v7716_v13 = vcombine.low %v3523_v63, %v3527_v60  ;;  %v3503_v33 = vld [vmem:[%s11826_s5 + $0x220] sm:$0xff]  ;;  %vm10464_vm11 = vcmp.ne.s16.totalorder %v7627_v19, 0 }
 0x211   : > { %v3663_v47 = vld [vmem:[%s11826_s5 + $0x720] sm:$0xff] }
 0x212   : > { %5792 = vmatpush1.bf16.msra.mxu0 %v7644_v58  ;;  %v7717_v58 = vcombine.high %v3523_v63, %v3527_v60  ;;  %v7853_v59 = vcombine.high %v3659_v49, %v3663_v47  ;;  %v7852_v39 = vcombine.low %v3659_v49, %v3663_v47  ;;  %v3651_v41 = vld [vmem:[%s11826_s5 + $0x6c0] sm:$0xff] }
 0x213   : > { %5793 = vmatprep.subr.bf16.mxu0 %v7637_v5  ;;  %5833 = vmatpush1.bf16.msra.mxu1 %v7772_v40  ;;  %v3515_v5 = vld [vmem:[%s11826_s5 + $0x280] sm:$0xff] }
 0x214   : > { %5834 = vmatprep.subr.bf16.mxu1 %v7765_v38  ;;  %v7708_v48 = vcombine.low %v3515_v5, %v3519_v7  ;;  %v10390_v40 = vld [vmem:[%s11826_s5 + $0x9e0] sm:$0xff] }
 0x215   : > { %v3655_v42 = vld [vmem:[%s11826_s5 + $0x6e0] sm:$0xff] }
 0x216   : > { %5794 = vmatpush1.bf16.msra.mxu0 %v7636_v14  ;;  %v7709_v14 = vcombine.high %v3515_v5, %v3519_v7  ;;  %v7845_v43 = vcombine.high %v3651_v41, %v3655_v42  ;;  %v3643_v46 = vld [vmem:[%s11826_s5 + $0x680] sm:$0xff] }
 0x217   : > { %5795 = vmatprep.subr.bf16.mxu0 %v7629_v15  ;;  %5835 = vmatpush1.bf16.msra.mxu1 %v7764_v25  ;;  %v3507_v15 = vld [vmem:[%s11826_s5 + $0x240] sm:$0xff] }
 0x218   : > { %5836 = vmatprep.subr.bf16.mxu1 %v7757_v61  ;;  %v7700_v22 = vcombine.low %v3507_v15, %v3511_v18  ;;  %v3647_v25 = vld [vmem:[%s11826_s5 + $0x6a0] sm:$0xff] }
 0x219   : > { %v7837_v50 = vcombine.high %v3643_v46, %v3647_v25  ;;  %v7836_v55 = vcombine.low %v3643_v46, %v3647_v25  ;;  %v3635_v60 = vld [vmem:[%s11826_s5 + $0x640] sm:$0xff] }
 0x21a   : > { %5796 = vmatpush1.bf16.msra.mxu0 %v7628_v32  ;;  %v7701_v32 = vcombine.high %v3507_v15, %v3511_v18  ;;  %v3639_v1 = vld [vmem:[%s11826_s5 + $0x660] sm:$0xff] }
 0x21b   : > { %5797 = vmatprep.subr.bf16.mxu0 %v7749_v24  ;;  %5837 = vmatpush1.bf16.msra.mxu1 %v7756_v54  ;;  %v3499_v24 = vld [vmem:[%s11826_s5 + $0x200] sm:$0xff]  ;;  %v7829_v2 = vcombine.high %v3635_v60, %v3639_v1 }
 0x21c   : > { %5838 = vmatprep.subr.bf16.mxu1 %v7877_v3  ;;  %v7692_v38 = vcombine.low %v3499_v24, %v3503_v33  ;;  %v3739_v5 = vld [vmem:[%s11826_s5 + $0x980] sm:$0xff] }
 0x21d   : > { %v3627_v9 = vld [vmem:[%s11826_s5 + $0x600] sm:$0xff] }
 0x21e   : > { %5798 = vmatpush2.bf16.msra.mxu0 %v7748_v34  ;;  %v7693_v34 = vcombine.high %v3499_v24, %v3503_v33  ;;  %v3631_v11 = vld [vmem:[%s11826_s5 + $0x620] sm:$0xff] }
 0x21f   : > { %5799 = vmatprep.subr.bf16.mxu0 %v7741_v36  ;;  %5839 = vmatpush2.bf16.msra.mxu1 %v7876_v6  ;;  %v10385_v36 = vld [vmem:[%s11826_s5 + $0x9c0] sm:$0xff]  ;;  %v7821_v15 = vcombine.high %v3627_v9, %v3631_v11  ;;  %v7820_v21 = vcombine.low %v3627_v9, %v3631_v11 }
 0x220   : > { %5840 = vmatprep.subr.bf16.mxu1 %v7869_v12  ;;  %v3743_v6 = vld [vmem:[%s11826_s5 + $0x9a0] sm:$0xff] }
 0x221   : > { %v7933_v18 = vcombine.high %v3739_v5, %v3743_v6  ;;  %v7932_v24 = vcombine.low %v3739_v5, %v3743_v6  ;;  %v3803_v5 = vld [vmem:[%s11826_s5 + $0xb80] sm:$0xff] }
 0x222   : > { %5800 = vmatpush2.bf16.msra.mxu0 %v7740_v44  ;;  %v7941_v44 = vcombine.high %v10385_v36, %v10390_v40  ;;  %v3807_v6 = vld [vmem:[%s11826_s5 + $0xba0] sm:$0xff] }
 0x223   : > { %5801 = vmatprep.subr.bf16.mxu0 %v7733_v45  ;;  %5841 = vmatpush2.bf16.msra.mxu1 %v7868_v17  ;;  %v7844_v45 = vcombine.low %v3651_v41, %v3655_v42  ;;  %v7997_v9 = vcombine.high %v3803_v5, %v3807_v6  ;;  %v3795_v11 = vld [vmem:[%s11826_s5 + $0xb40] sm:$0xff] }
 0x224   : > { %5842 = vmatprep.subr.bf16.mxu1 %v7861_v27 }
 0x226   : > { %5802 = vmatpush2.bf16.msra.mxu0 %v7732_v53  ;;  %v3147_v53 = vadd.f32 %v10230_v35, %v3106_v51  ;;  %v3711_v51 = vld [vmem:[%s11826_s5 + $0x8a0] sm:$0xff] }
 0x227   : > { %5803 = vmatprep.subr.bf16.mxu0 %v7725_v62  ;;  %5843 = vmatpush2.bf16.msra.mxu1 %v7860_v56  ;;  %v10457_v56 = vld [vmem:[%s11826_s5 + $0x1e8] sm:$0xff] }
 0x228   : > { %5844 = vmatprep.subr.bf16.mxu1 %v7853_v59  ;;  %v7686_v47 = vcombine.low %v10452_v26, %v10457_v56  ;;  %v7687_v59 = vcombine.high %v10452_v26, %v10457_v56  ;;  %v3472_v26 = vld [vmem:[%s11826_s5 + $0x128] sm:$0xff]  ;;  %v3469_v56 = vld [vmem:[%s11826_s5 + $0x110] sm:$0xff] }
 0x22a   : > { %5804 = vmatpush2.bf16.msra.mxu0 %v7724_v4  ;;  %v7828_v4 = vcombine.low %v3635_v60, %v3639_v1  ;;  %v3691_v1 = vld [vmem:[%s11826_s5 + $0x800] sm:$0xff] }
 0x22b   : > { %5805 = vmatprep.subr.bf16.mxu0 %v7717_v58  ;;  %5845 = vmatpush2.bf16.msra.mxu1 %v7852_v39  ;;  %v3723_v39 = vld [vmem:[%s11826_s5 + $0x900] sm:$0xff] }
 0x22c   : > { %5846 = vmatprep.subr.bf16.mxu1 %v7845_v43 }
 0x22e   : > { %5806 = vmatpush2.bf16.msra.mxu0 %v7716_v13 }
 0x22f   : > { %5807 = vmatprep.subr.bf16.mxu0 %v7709_v14  ;;  %5847 = vmatpush2.bf16.msra.mxu1 %v7844_v45  ;;  %v7940_v14 = vcombine.low %v10385_v36, %v10390_v40  ;;  %v3727_v40 = vld [vmem:[%s11826_s5 + $0x920] sm:$0xff] }
 0x230   : > { %5848 = vmatprep.subr.bf16.mxu1 %v7837_v50  ;;  %v3719_v45 = vld [vmem:[%s11826_s5 + $0x8e0] sm:$0xff]  ;;  %v7916_v46 = vcombine.low %v3723_v39, %v3727_v40 }
 0x231   : > { %v3707_v50 = vld [vmem:[%s11826_s5 + $0x880] sm:$0xff] }
 0x232   : > { %5808 = vmatpush2.bf16.msra.mxu0 %v7708_v48  ;;  %v3731_v48 = vld [vmem:[%s11826_s5 + $0x940] sm:$0xff] }
 0x233   : > { %5809 = vmatprep.subr.bf16.mxu0 %v7701_v32  ;;  %5849 = vmatpush2.bf16.msra.mxu1 %v7836_v55  ;;  %v3735_v32 = vld [vmem:[%s11826_s5 + $0x960] sm:$0xff] }
 0x234   : > { %5850 = vmatprep.subr.bf16.mxu1 %v7829_v2  ;;  %v7924_v43 = vcombine.low %v3731_v48, %v3735_v32 }
 0x236   : > { %5810 = vmatpush2.bf16.msra.mxu0 %v7700_v22  ;;  %v7925_v22 = vcombine.high %v3731_v48, %v3735_v32  ;;  %v3779_v48 = vld [vmem:[%s11826_s5 + $0xac0] sm:$0xff] }
 0x237   : > { %5811 = vmatprep.subr.bf16.mxu0 %v7693_v34  ;;  %5851 = vmatpush2.bf16.msra.mxu1 %v7828_v4  ;;  %v3815_v4 = vld [vmem:[%s11826_s5 + $0xbe0] sm:$0xff] }
 0x238   : > { %5852 = vmatprep.subr.bf16.mxu1 %v7821_v15  ;;  %v3783_v32 = vld [vmem:[%s11826_s5 + $0xae0] sm:$0xff] }
 0x23a   : > { %5812 = vmatpush2.bf16.msra.mxu0 %v7692_v38  ;;  %v7917_v38 = vcombine.high %v3723_v39, %v3727_v40  ;;  %v3763_v39 = vld [vmem:[%s11826_s5 + $0xa40] sm:$0xff] }
 0x23b   : > { %5863 = vmatprep.subr.bf16.mxu0 %v7941_v44  ;;  %5853 = vmatpush2.bf16.msra.mxu1 %v7820_v21  ;;  %v3715_v44 = vld [vmem:[%s11826_s5 + $0x8c0] sm:$0xff] }
 0x23c   : > { %5904 = vmatprep.subr.bf16.mxu1 %v7687_v59  ;;  %v7909_v25 = vcombine.high %v3715_v44, %v3719_v45  ;;  %v7908_v55 = vcombine.low %v3715_v44, %v3719_v45  ;;  %v3791_v21 = vld [vmem:[%s11826_s5 + $0xb20] sm:$0xff] }
 0x23d   : > { %v3185_v61 = vpop.f32.mrf.mxu0  ;;  %v10410_v63 = vpop.f32.mrf.mxu1  ;;  %v3775_v59 = vld [vmem:[%s11826_s5 + $0xaa0] sm:$0xff] }
 0x23e   : > { %v3186_v62 = vadd.f32 %v3185_v61, %v10228_v52  ;;  %v7901_v61 = vcombine.high %v3707_v50, %v3711_v51  ;;  %v3767_v40 = vld [vmem:[%s11826_s5 + $0xa60] sm:$0xff] }
 0x23f   : > { %v3187_v54 = vpop.f32.mrf.mxu0  ;;  %v10418_v0 = vpop.f32.mrf.mxu1  ;;  %v7957_v44 = vcombine.high %v3763_v39, %v3767_v40  ;;  %v3755_v45 = vld [vmem:[%s11826_s5 + $0xa00] sm:$0xff] }
 0x240   : > { %v3188_v57 = vadd.f32 %v3187_v54, %v3147_v53  ;;  %v3397_v3 = vmax.f32 %v3186_v62, 0.0  ;;  %v3699_v53 = vld [vmem:[%s11826_s5 + $0x840] sm:$0xff]  ;;  %v7900_v54 = vcombine.low %v3707_v50, %v3711_v51  ;;  %v7956_v51 = vcombine.low %v3763_v39, %v3767_v40  ;;  %v3584_v39 = vld [vmem:[%s11826_s5 + $0x4a8] sm:$0xff] }
 0x241   : > { %v3189_v35 = vpop.f32.mrf.mxu0  ;;  %v3230_v58 = vpop.f32.mrf.mxu1  ;;  %v3703_v62 = vld [vmem:[%s11826_s5 + $0x860] sm:$0xff] }
 0x242   : > { %v3398_v52 = vmax.f32 %v3188_v57, 0.0  ;;  %v10436_v17 = vpack.c.bf16 %v3397_v3, %v3397_v3  ;;  %v7893_v60 = vcombine.high %v3699_v53, %v3703_v62  ;;  %v3695_v57 = vld [vmem:[%s11826_s5 + $0x820] sm:$0xff]  ;;  %v7892_v2 = vcombine.low %v3699_v53, %v3703_v62 }
 0x243   : > { %v3190_v7 = vpop.f32.mrf.mxu0  ;;  %v3231_v13 = vpop.f32.mrf.mxu1  ;;  %v7885_v3 = vcombine.high %v3691_v1, %v3695_v57  ;;  %v3811_v35 = vld [vmem:[%s11826_s5 + $0xbc0] sm:$0xff] }
 0x244   : > { %v10432_v12 = vpack.c.bf16 %v3398_v52, %v3398_v52  ;;  %v7884_v52 = vcombine.low %v3691_v1, %v3695_v57  ;;  %v8005_v58 = vcombine.high %v3811_v35, %v3815_v4  ;;  %v8004_v7 = vcombine.low %v3811_v35, %v3815_v4  ;;  %v3799_v13 = vld [vmem:[%s11826_s5 + $0xb60] sm:$0xff] }
 0x245   : > { %v7989_v15 = vcombine.high %v3795_v11, %v3799_v13  ;;  %v7988_v19 = vcombine.low %v3795_v11, %v3799_v13 }
 0x246   : > { %5813 = vmatprep.mubr.bf16.mxu0 %v10432_v12  ;;  %v3415_v27 = vshll.u32 %v10432_v12, 16  ;;  %v3413_v33 = vshrl.u32 %v10432_v12, 16 }
 0x247   : > { %5814 = vmatmul.mubr.bf16.vlgmr.msra.gmra.mxu0 %v10436_v17 }
 0x248   : > { %5864 = vmatpush1.bf16.msra.mxu0 %v7940_v14  ;;  %v3417_v49 = vrot.slane %v3415_v27, 1  ;;  %v7996_v14 = vcombine.low %v3803_v5, %v3807_v6  ;;  %v3612_v5 = vld [vmem:[%s11826_s5 + $0x588] sm:$0xff] }
 0x249   : > { %5865 = vmatprep.subr.bf16.mxu0 %v7933_v18  ;;  %v3787_v18 = vld [vmem:[%s11826_s5 + $0xb00] sm:$0xff]  ;;  %v3616_v6 = vld [vmem:[%s11826_s5 + $0x5a8] sm:$0xff] }
 0x24a   : > { %v3418_v36 = vor.u32 %v3417_v49, %v3413_v33  ;;  %v7981_v27 = vcombine.high %v3787_v18, %v3791_v21  ;;  %v7973_v33 = vcombine.high %v3779_v48, %v3783_v32  ;;  %v3771_v49 = vld [vmem:[%s11826_s5 + $0xa80] sm:$0xff]  ;;  %v7807_v13 = vcombine.high %v3612_v5, %v3616_v6 }
 0x24c   : > { %5866 = vmatpush1.bf16.msra.mxu0 %v7932_v24  ;;  %v10482_v42 = vsel %vm10476_vm12, %v3418_v36, 0  ;;  %v7980_v24 = vcombine.low %v3787_v18, %v3791_v21  ;;  %v7965_v36 = vcombine.high %v3771_v49, %v3775_v59  ;;  %v3608_v18 = vld [vmem:[%s11826_s5 + $0x568] sm:$0xff]  ;;  %v7806_v21 = vcombine.low %v3612_v5, %v3616_v6 }
 0x24d   : > { %8012 = vmatprep.mubr.msk.bf16.mxu0 %vm10464_vm11, %v10482_v42  ;;  %5867 = vmatprep.subr.bf16.mxu0 %v7925_v22  ;;  %v7972_v22 = vcombine.low %v3779_v48, %v3783_v32  ;;  %v3600_v48 = vld [vmem:[%s11826_s5 + $0x528] sm:$0xff] }
 0x24e   : > { %v3660_v5 = vld [vmem:[%s11826_s5 + $0x708] sm:$0xff] }
 0x24f   : > { %v3664_v6 = vld [vmem:[%s11826_s5 + $0x728] sm:$0xff] }
 0x250   : > { %5868 = vmatpush1.bf16.msra.mxu0 %v7924_v43  ;;  %v1378_v43 = vrot.slane %v9998_v37, %v9320_v29 }
 0x251   : > { %5869 = vmatprep.subr.bf16.mxu0 %v7917_v38  ;;  %v7964_v38 = vcombine.low %v3771_v49, %v3775_v59  ;;  %v3592_v49 = vld [vmem:[%s11826_s5 + $0x4e8] sm:$0xff] }
 0x252   : > { %v3227_v50 = vadd.f32 %v10410_v63, %v1378_v43 }
 0x254   : > { %5870 = vmatpush1.bf16.msra.mxu0 %v7916_v46  ;;  %v3759_v46 = vld [vmem:[%s11826_s5 + $0xa20] sm:$0xff] }
 0x255   : > { %5871 = vmatprep.subr.bf16.mxu0 %v7909_v25  ;;  %v3408_v25 = vshll.u32 %v10436_v17, 16  ;;  %v7949_v37 = vcombine.high %v3755_v45, %v3759_v46 }
 0x257   : > { %v3410_v62 = vrot.slane %v3408_v25, 1  ;;  %v3564_v25 = vld [vmem:[%s11826_s5 + $0x408] sm:$0xff] }
 0x258   : > { %5872 = vmatpush1.bf16.msra.mxu0 %v7908_v55 }
 0x259   : > { %5873 = vmatprep.subr.bf16.mxu0 %v7901_v61 }
 0x25c   : > { %5874 = vmatpush1.bf16.msra.mxu0 %v7900_v54  ;;  %v3620_v54 = vld [vmem:[%s11826_s5 + $0x5c8] sm:$0xff] }
 0x25d   : > { %5875 = vmatprep.subr.bf16.mxu0 %v7893_v60  ;;  %v3624_v60 = vld [vmem:[%s11826_s5 + $0x5e8] sm:$0xff] }
 0x25e   : > { %v7815_v4 = vcombine.high %v3620_v54, %v3624_v60  ;;  %v7814_v11 = vcombine.low %v3620_v54, %v3624_v60  ;;  %v3676_v54 = vld [vmem:[%s11826_s5 + $0x788] sm:$0xff] }
 0x25f   : > { %v3680_v60 = vld [vmem:[%s11826_s5 + $0x7a8] sm:$0xff] }
 0x260   : > { %5876 = vmatpush1.bf16.msra.mxu0 %v7892_v2  ;;  %v7948_v2 = vcombine.low %v3755_v45, %v3759_v46 }
 0x261   : > { %5877 = vmatprep.subr.bf16.mxu0 %v7885_v3  ;;  %v3406_v3 = vshrl.u32 %v10436_v17, 16 }
 0x264   : > { %5878 = vmatpush1.bf16.msra.mxu0 %v7884_v52 }
 0x265   : > { %5879 = vmatprep.subr.bf16.mxu0 %v8005_v58  ;;  %v3411_v58 = vor.u32 %v3410_v62, %v3406_v3  ;;  %v7871_v3 = vcombine.high %v3676_v54, %v3680_v60 }
 0x268   : > { %5880 = vmatpush2.bf16.msra.mxu0 %v8004_v7 }
 0x269   : > { %5881 = vmatprep.subr.bf16.mxu0 %v7997_v9 }
 0x26c   : > { %5882 = vmatpush2.bf16.msra.mxu0 %v7996_v14  ;;  %v10584_v14 = vsel %vm10476_vm12, %v3411_v58, 0 }
 0x26d   : > { %5883 = vmatprep.subr.bf16.mxu0 %v7989_v15  ;;  %v3604_v15 = vld [vmem:[%s11826_s5 + $0x548] sm:$0xff] }
 0x26e   : > { %v7798_v32 = vcombine.low %v3604_v15, %v3608_v18 }
 0x270   : > { %5884 = vmatpush2.bf16.msra.mxu0 %v7988_v19  ;;  %v7799_v19 = vcombine.high %v3604_v15, %v3608_v18  ;;  %v7854_v15 = vcombine.low %v3660_v5, %v3664_v6 }
 0x271   : > { %5885 = vmatprep.subr.bf16.mxu0 %v7981_v27  ;;  %v3596_v27 = vld [vmem:[%s11826_s5 + $0x508] sm:$0xff] }
 0x272   : > { %v7790_v59 = vcombine.low %v3596_v27, %v3600_v48 }
 0x274   : > { %5886 = vmatpush2.bf16.msra.mxu0 %v7980_v24  ;;  %v7791_v24 = vcombine.high %v3596_v27, %v3600_v48  ;;  %v8791_v27 = vld [vmem:[%s11825_s4] sm:$0xf] }
 0x275   : > { %5887 = vmatprep.subr.bf16.mxu0 %v7973_v33  ;;  %v3588_v33 = vld [vmem:[%s11826_s5 + $0x4c8] sm:$0xff]  ;;  %v1382_v48 = vrot.slane %v8791_v27, %v9326_v31 }
 0x276   : > { %v7782_v40 = vcombine.low %v3588_v33, %v3592_v49 }
 0x278   : > { %5888 = vmatpush2.bf16.msra.mxu0 %v7972_v22  ;;  %v7783_v22 = vcombine.high %v3588_v33, %v3592_v49  ;;  %v3636_v33 = vld [vmem:[%s11826_s5 + $0x648] sm:$0xff] }
 0x279   : > { %5889 = vmatprep.subr.bf16.mxu0 %v7965_v36  ;;  %v3580_v36 = vld [vmem:[%s11826_s5 + $0x488] sm:$0xff] }
 0x27a   : > { %v7775_v43 = vcombine.high %v3580_v36, %v3584_v39  ;;  %v7774_v45 = vcombine.low %v3580_v36, %v3584_v39  ;;  %v3640_v49 = vld [vmem:[%s11826_s5 + $0x668] sm:$0xff] }
 0x27b   : > { %v7831_v36 = vcombine.high %v3636_v33, %v3640_v49 }
 0x27c   : > { %5890 = vmatpush2.bf16.msra.mxu0 %v7964_v38  ;;  %v3572_v38 = vld [vmem:[%s11826_s5 + $0x448] sm:$0xff] }
 0x27d   : > { %v3267_v55 = vpop.f32.mrf.mxu0  ;;  %5891 = vmatprep.subr.bf16.mxu0 %v7957_v44  ;;  %v3576_v44 = vld [vmem:[%s11826_s5 + $0x468] sm:$0xff] }
 0x27e   : > { %v3268_v61 = vadd.f32 %v3267_v55, %v3227_v50  ;;  %v3308_v53 = vpop.f32.mrf.mxu1  ;;  %v7767_v46 = vcombine.high %v3572_v38, %v3576_v44  ;;  %v3568_v50 = vld [vmem:[%s11826_s5 + $0x428] sm:$0xff] }
 0x27f   : > { %v10569_v1 = vpop.f32.mrf.mxu0  ;;  %v7759_v55 = vcombine.high %v3564_v25, %v3568_v50 }
 0x280   : > { %v10571_v57 = vadd.f32 %v3308_v53, %v3268_v61  ;;  %v10573_v63 = vpop.f32.mrf.mxu1  ;;  %5892 = vmatpush2.bf16.msra.mxu0 %v7956_v51  ;;  %v7766_v51 = vcombine.low %v3572_v38, %v3576_v44  ;;  %v3688_v61 = vld [vmem:[%s11826_s5 + $0x7e8] sm:$0xff]  ;;  %v7758_v53 = vcombine.low %v3564_v25, %v3568_v50  ;;  %v7830_v38 = vcombine.low %v3636_v33, %v3640_v49  ;;  %v3497_v50 = vld [vmem:[%s11826_s5 + $0x1f0] sm:$0xff] }
 0x281   : > { %v3271_v35 = vpop.f32.mrf.mxu0  ;;  %5893 = vmatprep.subr.bf16.mxu0 %v7949_v37  ;;  %v3684_v37 = vld [vmem:[%s11826_s5 + $0x7c8] sm:$0xff] }
 0x282   : > { %v3312_v52 = vpop.f32.mrf.mxu1  ;;  %v7879_v62 = vcombine.high %v3684_v37, %v3688_v61  ;;  %v3668_v35 = vld [vmem:[%s11826_s5 + $0x748] sm:$0xff] }
 0x283   : > { %v3272_v7 = vpop.f32.mrf.mxu0  ;;  %v7870_v52 = vcombine.low %v3676_v54, %v3680_v60  ;;  %v3468_v33 = vld [vmem:[%s11826_s5 + $0x108] sm:$0xff] }
 0x284   : > { %v3313_v9 = vpop.f32.mrf.mxu1  ;;  %5894 = vmatpush2.bf16.msra.mxu0 %v7948_v2  ;;  %v7878_v2 = vcombine.low %v3684_v37, %v3688_v61 }
 0x285   : > { %5945 = vmatprep.subr.bf16.mxu0 %v7815_v4  ;;  %v3672_v4 = vld [vmem:[%s11826_s5 + $0x768] sm:$0xff]  ;;  %v7855_v9 = vcombine.high %v3660_v5, %v3664_v6  ;;  %v3489_v5 = vld [vmem:[%s11826_s5 + $0x1b0] sm:$0xff] }
 0x286   : > { %v7863_v58 = vcombine.high %v3668_v35, %v3672_v4  ;;  %v7862_v7 = vcombine.low %v3668_v35, %v3672_v4  ;;  %v3484_v4 = vld [vmem:[%s11826_s5 + $0x188] sm:$0xff] }
 0x287   : > { %8013 = vmatmul.mubr.msk.bf16.vlgmr.msra.gmra.mxu0 %vm10464_vm11, %v10584_v14 }
 0x288   : > { %5946 = vmatpush1.bf16.msra.mxu0 %v7814_v11  ;;  %v3652_v11 = vld [vmem:[%s11826_s5 + $0x6c8] sm:$0xff] }
 0x289   : > { %5947 = vmatprep.subr.bf16.mxu0 %v7807_v13  ;;  %v3656_v13 = vld [vmem:[%s11826_s5 + $0x6e8] sm:$0xff] }
 0x28a   : > { %v7847_v18 = vcombine.high %v3652_v11, %v3656_v13 }
 0x28c   : > { %5948 = vmatpush1.bf16.msra.mxu0 %v7806_v21  ;;  %v3644_v21 = vld [vmem:[%s11826_s5 + $0x688] sm:$0xff] }
 0x28d   : > { %5949 = vmatprep.subr.bf16.mxu0 %v7799_v19  ;;  %v3648_v19 = vld [vmem:[%s11826_s5 + $0x6a8] sm:$0xff] }
 0x290   : > { %5950 = vmatpush1.bf16.msra.mxu0 %v7798_v32  ;;  %v7846_v32 = vcombine.low %v3652_v11, %v3656_v13  ;;  %v3476_v11 = vld [vmem:[%s11826_s5 + $0x148] sm:$0xff] }
 0x291   : > { %5951 = vmatprep.subr.bf16.mxu0 %v7791_v24  ;;  %v7839_v24 = vcombine.high %v3644_v21, %v3648_v19 }
 0x294   : > { %5952 = vmatpush1.bf16.msra.mxu0 %v7790_v59  ;;  %v3229_v59 = vadd.f32 %v10418_v0, %v1382_v48 }
 0x295   : > { %5953 = vmatprep.subr.bf16.mxu0 %v7783_v22  ;;  %v7838_v22 = vcombine.low %v3644_v21, %v3648_v19  ;;  %v3477_v21 = vld [vmem:[%s11826_s5 + $0x150] sm:$0xff] }
 0x296   : > { %v3270_v39 = vadd.f32 %v10569_v1, %v3229_v59  ;;  %v3493_v1 = vld [vmem:[%s11826_s5 + $0x1d0] sm:$0xff] }
 0x297   : > { %v3481_v19 = vld [vmem:[%s11826_s5 + $0x170] sm:$0xff] }
 0x298   : > { %5954 = vmatpush1.bf16.msra.mxu0 %v7782_v40  ;;  %v3628_v40 = vld [vmem:[%s11826_s5 + $0x608] sm:$0xff]  ;;  %v3311_v0 = vadd.f32 %v10573_v63, %v3270_v39  ;;  %v7689_v63 = vcombine.high %v3493_v1, %v3497_v50  ;;  %v7672_v59 = vcombine.low %v3477_v21, %v3481_v19 }
 0x299   : > { %5955 = vmatprep.subr.bf16.mxu0 %v7775_v43  ;;  %v3632_v43 = vld [vmem:[%s11826_s5 + $0x628] sm:$0xff] }
 0x29a   : > { %v3460_v39 = vld [vmem:[%s11826_s5 + $0xc8] sm:$0xff] }
 0x29c   : > { %5956 = vmatpush1.bf16.msra.mxu0 %v7774_v45  ;;  %v7823_v45 = vcombine.high %v3628_v40, %v3632_v43 }
 0x29d   : > { %5957 = vmatprep.subr.bf16.mxu0 %v7767_v46 }
 0x2a0   : > { %5958 = vmatpush1.bf16.msra.mxu0 %v7766_v51 }
 0x2a1   : > { %5959 = vmatprep.subr.bf16.mxu0 %v7759_v55 }
 0x2a4   : > { %5960 = vmatpush1.bf16.msra.mxu0 %v7758_v53  ;;  %v7822_v53 = vcombine.low %v3628_v40, %v3632_v43  ;;  %v3464_v40 = vld [vmem:[%s11826_s5 + $0xe8] sm:$0xff]  ;;  %v3461_v43 = vld [vmem:[%s11826_s5 + $0xd0] sm:$0xff] }
 0x2a5   : > { %5961 = vmatprep.subr.bf16.mxu0 %v7879_v62 }
 0x2a8   : > { %5962 = vmatpush2.bf16.msra.mxu0 %v7878_v2 }
 0x2a9   : > { %5963 = vmatprep.subr.bf16.mxu0 %v7871_v3 }
 0x2ac   : > { %5964 = vmatpush2.bf16.msra.mxu0 %v7870_v52  ;;  %v3488_v52 = vld [vmem:[%s11826_s5 + $0x1a8] sm:$0xff] }
 0x2ad   : > { %5965 = vmatprep.subr.bf16.mxu0 %v7863_v58  ;;  %v3485_v58 = vld [vmem:[%s11826_s5 + $0x190] sm:$0xff]  ;;  %v7679_v13 = vcombine.high %v3484_v4, %v3488_v52  ;;  %v7678_v27 = vcombine.low %v3484_v4, %v3488_v52  ;;  %v3436_v4 = vld [vmem:[%s11826_s5 + $0x8] sm:$0xff] }
 0x2ae   : > { %v7680_v48 = vcombine.low %v3485_v58, %v3489_v5  ;;  %v3440_v52 = vld [vmem:[%s11826_s5 + $0x28] sm:$0xff] }
 0x2b0   : > { %5966 = vmatpush2.bf16.msra.mxu0 %v7862_v7  ;;  %v7688_v7 = vcombine.low %v3493_v1, %v3497_v50  ;;  %v3456_v1 = vld [vmem:[%s11826_s5 + $0xa8] sm:$0xff]  ;;  %v3453_v50 = vld [vmem:[%s11826_s5 + $0x90] sm:$0xff] }
 0x2b1   : > { %5967 = vmatprep.subr.bf16.mxu0 %v7855_v9 }
 0x2b4   : > { %5968 = vmatpush2.bf16.msra.mxu0 %v7854_v15  ;;  %v7681_v15 = vcombine.high %v3485_v58, %v3489_v5  ;;  %v3437_v58 = vld [vmem:[%s11826_s5 + $0x10] sm:$0xff] }
 0x2b5   : > { %5969 = vmatprep.subr.bf16.mxu0 %v7847_v18  ;;  %v3480_v18 = vld [vmem:[%s11826_s5 + $0x168] sm:$0xff]  ;;  %v3441_v5 = vld [vmem:[%s11826_s5 + $0x30] sm:$0xff] }
 0x2b6   : > { %v7670_v49 = vcombine.low %v3476_v11, %v3480_v18 }
 0x2b8   : > { %5970 = vmatpush2.bf16.msra.mxu0 %v7846_v32  ;;  %v7671_v32 = vcombine.high %v3476_v11, %v3480_v18  ;;  %v3556_v18 = vld [vmem:[%s11826_s5 + $0x3c8] sm:$0xff] }
 0x2b9   : > { %5971 = vmatprep.subr.bf16.mxu0 %v7839_v24  ;;  %v7673_v24 = vcombine.high %v3477_v21, %v3481_v19  ;;  %v3560_v21 = vld [vmem:[%s11826_s5 + $0x3e8] sm:$0xff]  ;;  %v3557_v19 = vld [vmem:[%s11826_s5 + $0x3d0] sm:$0xff] }
 0x2bc   : > { %5972 = vmatpush2.bf16.msra.mxu0 %v7838_v22  ;;  %v7663_v22 = vcombine.high %v3468_v33, %v3472_v26 }
 0x2bd   : > { %v3349_v44 = vpop.f32.mrf.mxu0  ;;  %5973 = vmatprep.subr.bf16.mxu0 %v7831_v36 }
 0x2be   : > { %v3350_v46 = vadd.f32 %v3349_v44, %v10571_v57  ;;  %v3390_v25 = vpop.f32.mrf.mxu1  ;;  %v7662_v44 = vcombine.low %v3468_v33, %v3472_v26  ;;  %v3548_v26 = vld [vmem:[%s11826_s5 + $0x388] sm:$0xff] }
 0x2bf   : > { %v3351_v51 = vpop.f32.mrf.mxu0 }
 0x2c0   : > { %v3391_v55 = vadd.f32 %v3390_v25, %v3350_v46  ;;  %v3352_v37 = vadd.f32 %v3351_v51, %v3311_v0  ;;  %v3392_v61 = vpop.f32.mrf.mxu1  ;;  %5974 = vmatpush2.bf16.msra.mxu0 %v7830_v38  ;;  %v3465_v38 = vld [vmem:[%s11826_s5 + $0xf0] sm:$0xff]  ;;  %v7655_v0 = vcombine.high %v3460_v39, %v3464_v40  ;;  %v3452_v25 = vld [vmem:[%s11826_s5 + $0x88] sm:$0xff] }
 0x2c1   : > { %v3353_v62 = vpop.f32.mrf.mxu0  ;;  %5975 = vmatprep.subr.bf16.mxu0 %v7823_v45  ;;  %v7657_v46 = vcombine.high %v3461_v43, %v3465_v38  ;;  %v3457_v51 = vld [vmem:[%s11826_s5 + $0xb0] sm:$0xff] }
 0x2c2   : > { %v3393_v54 = vadd.f32 %v3392_v61, %v3352_v37  ;;  %v3394_v57 = vpop.f32.mrf.mxu1  ;;  %v3399_v60 = vmax.f32 %v3391_v55, 0.0  ;;  %v7654_v55 = vcombine.low %v3460_v39, %v3464_v40  ;;  %v7656_v37 = vcombine.low %v3461_v43, %v3465_v38  ;;  %v3444_v62 = vld [vmem:[%s11826_s5 + $0x48] sm:$0xff]  ;;  %v3541_v38 = vld [vmem:[%s11826_s5 + $0x350] sm:$0xff] }
 0x2c3   : > { %v3354_v2 = vpop.f32.mrf.mxu0  ;;  %v7647_v61 = vcombine.high %v3452_v25, %v3456_v1  ;;  %v3449_v57 = vld [vmem:[%s11826_s5 + $0x70] sm:$0xff]  ;;  %v3540_v40 = vld [vmem:[%s11826_s5 + $0x348] sm:$0xff] }
 0x2c4   : > { %v3400_v3 = vmax.f32 %v3393_v54, 0.0  ;;  %v3395_v35 = vpop.f32.mrf.mxu1  ;;  %5976 = vmatpush2.bf16.msra.mxu0 %v7822_v53  ;;  %v10701_v9 = vpack.c.bf16 %v3399_v60, %v3399_v60  ;;  %v7649_v53 = vcombine.high %v3453_v50, %v3457_v51  ;;  %v3445_v54 = vld [vmem:[%s11826_s5 + $0x50] sm:$0xff]  ;;  %v7646_v60 = vcombine.low %v3452_v25, %v3456_v1  ;;  %v3544_v43 = vld [vmem:[%s11826_s5 + $0x368] sm:$0xff] }
 0x2c5   : > { %6027 = vmatprep.subr.bf16.mxu0 %v7689_v63  ;;  %v3448_v63 = vld [vmem:[%s11826_s5 + $0x68] sm:$0xff]  ;;  %v7648_v2 = vcombine.low %v3453_v50, %v3457_v51  ;;  %v7641_v35 = vcombine.high %v3445_v54, %v3449_v57  ;;  %v7640_v11 = vcombine.low %v3445_v54, %v3449_v57  ;;  %v3533_v51 = vld [vmem:[%s11826_s5 + $0x310] sm:$0xff] }
 0x2c6   : > { %v10699_v6 = vpack.c.bf16 %v3400_v3, %v3400_v3  ;;  %v7639_v3 = vcombine.high %v3444_v62, %v3448_v63  ;;  %v3532_v1 = vld [vmem:[%s11826_s5 + $0x308] sm:$0xff]  ;;  %v3525_v57 = vld [vmem:[%s11826_s5 + $0x2d0] sm:$0xff] }
 0x2c7   : > { %v3536_v50 = vld [vmem:[%s11826_s5 + $0x328] sm:$0xff] }
 0x2c8   : > { %5854 = vmatprep.mubr.bf16.mxu1 %v10699_v6  ;;  %5977 = vmatprep.mubr.bf16.mxu0 %v10699_v6  ;;  %v3528_v54 = vld [vmem:[%s11826_s5 + $0x2e8] sm:$0xff] }
 0x2c9   : > { %5855 = vmatmul.mubr.bf16.vlgmr.msra.gmra.mxu1 %v10701_v9  ;;  %5978 = vmatmul.mubr.bf16.vlgmr.msra.gmra.mxu0 %v10701_v9 }
 0x2ca   : > { %5905 = vmatpush1.bf16.msra.mxu1 %v7686_v47  ;;  %6028 = vmatpush1.bf16.msra.mxu0 %v7688_v7  ;;  %v3473_v47 = vld [vmem:[%s11826_s5 + $0x130] sm:$0xff]  ;;  %v7638_v7 = vcombine.low %v3444_v62, %v3448_v63  ;;  %v3524_v63 = vld [vmem:[%s11826_s5 + $0x2c8] sm:$0xff] }
 0x2cb   : > { %5936 = vmatprep.mubr.bf16.mxu1 %v10432_v12  ;;  %6059 = vmatprep.mubr.bf16.mxu0 %v10432_v12  ;;  %v7665_v36 = vcombine.high %v3469_v56, %v3473_v47  ;;  %v7664_v45 = vcombine.low %v3469_v56, %v3473_v47  ;;  %v3552_v56 = vld [vmem:[%s11826_s5 + $0x3a8] sm:$0xff]  ;;  %v3549_v47 = vld [vmem:[%s11826_s5 + $0x390] sm:$0xff] }
 0x2cc   : > { %5906 = vmatprep.subr.bf16.mxu1 %v7679_v13  ;;  %6029 = vmatprep.subr.bf16.mxu0 %v7681_v15  ;;  %v7631_v13 = vcombine.high %v3436_v4, %v3440_v52  ;;  %v7633_v15 = vcombine.high %v3437_v58, %v3441_v5 }
 0x2ce   : > { %5907 = vmatpush1.bf16.msra.mxu1 %v7678_v27  ;;  %6030 = vmatpush1.bf16.msra.mxu0 %v7680_v48  ;;  %v3561_v27 = vld [vmem:[%s11826_s5 + $0x3f0] sm:$0xff]  ;;  %v7630_v48 = vcombine.low %v3436_v4, %v3440_v52  ;;  %v3516_v52 = vld [vmem:[%s11826_s5 + $0x288] sm:$0xff] }
 0x2cf   : > { %5908 = vmatprep.subr.bf16.mxu1 %v7671_v32  ;;  %6031 = vmatprep.subr.bf16.mxu0 %v7673_v24  ;;  %v7632_v32 = vcombine.low %v3437_v58, %v3441_v5  ;;  %v7751_v24 = vcombine.high %v3556_v18, %v3560_v21  ;;  %v7753_v33 = vcombine.high %v3557_v19, %v3561_v27  ;;  %v3520_v58 = vld [vmem:[%s11826_s5 + $0x2a8] sm:$0xff]  ;;  %v3517_v5 = vld [vmem:[%s11826_s5 + $0x290] sm:$0xff] }
 0x2d2   : > { %5909 = vmatpush1.bf16.msra.mxu1 %v7670_v49  ;;  %6032 = vmatpush1.bf16.msra.mxu0 %v7672_v59  ;;  %v3553_v49 = vld [vmem:[%s11826_s5 + $0x3b0] sm:$0xff]  ;;  %v7750_v59 = vcombine.low %v3556_v18, %v3560_v21  ;;  %v3508_v21 = vld [vmem:[%s11826_s5 + $0x248] sm:$0xff] }
 0x2d3   : > { %5910 = vmatprep.subr.bf16.mxu1 %v7663_v22  ;;  %6033 = vmatprep.subr.bf16.mxu0 %v7665_v36  ;;  %v7752_v22 = vcombine.low %v3557_v19, %v3561_v27  ;;  %v7743_v36 = vcombine.high %v3548_v26, %v3552_v56  ;;  %v7745_v39 = vcombine.high %v3549_v47, %v3553_v49  ;;  %v3512_v19 = vld [vmem:[%s11826_s5 + $0x268] sm:$0xff]  ;;  %v3509_v27 = vld [vmem:[%s11826_s5 + $0x250] sm:$0xff] }
 0x2d6   : > { %5911 = vmatpush1.bf16.msra.mxu1 %v7662_v44  ;;  %6034 = vmatpush1.bf16.msra.mxu0 %v7664_v45  ;;  %v3545_v44 = vld [vmem:[%s11826_s5 + $0x370] sm:$0xff]  ;;  %v7742_v45 = vcombine.low %v3548_v26, %v3552_v56  ;;  %v3500_v56 = vld [vmem:[%s11826_s5 + $0x208] sm:$0xff] }
 0x2d7   : > { %5912 = vmatprep.subr.bf16.mxu1 %v7655_v0  ;;  %6035 = vmatprep.subr.bf16.mxu0 %v7657_v46  ;;  %v7744_v0 = vcombine.low %v3549_v47, %v3553_v49  ;;  %v7735_v46 = vcombine.high %v3540_v40, %v3544_v43  ;;  %v7737_v25 = vcombine.high %v3541_v38, %v3545_v44  ;;  %v3504_v47 = vld [vmem:[%s11826_s5 + $0x228] sm:$0xff]  ;;  %v3501_v49 = vld [vmem:[%s11826_s5 + $0x210] sm:$0xff] }
 0x2da   : > { %5913 = vmatpush1.bf16.msra.mxu1 %v7654_v55  ;;  %6036 = vmatpush1.bf16.msra.mxu0 %v7656_v37  ;;  %v3537_v55 = vld [vmem:[%s11826_s5 + $0x330] sm:$0xff]  ;;  %v7734_v37 = vcombine.low %v3540_v40, %v3544_v43  ;;  %v3748_v43 = vld [vmem:[%s11826_s5 + $0x9c8] sm:$0xff] }
 0x2db   : > { %5914 = vmatprep.subr.bf16.mxu1 %v7647_v61  ;;  %6037 = vmatprep.subr.bf16.mxu0 %v7649_v53  ;;  %v7736_v61 = vcombine.low %v3541_v38, %v3545_v44  ;;  %v7727_v53 = vcombine.high %v3532_v1, %v3536_v50  ;;  %v7729_v62 = vcombine.high %v3533_v51, %v3537_v55  ;;  %v3752_v38 = vld [vmem:[%s11826_s5 + $0x9e8] sm:$0xff]  ;;  %v3749_v44 = vld [vmem:[%s11826_s5 + $0x9d0] sm:$0xff] }
 0x2de   : > { %5915 = vmatpush1.bf16.msra.mxu1 %v7646_v60  ;;  %6038 = vmatpush1.bf16.msra.mxu0 %v7648_v2  ;;  %v3529_v60 = vld [vmem:[%s11826_s5 + $0x2f0] sm:$0xff]  ;;  %v7726_v2 = vcombine.low %v3532_v1, %v3536_v50  ;;  %v3740_v50 = vld [vmem:[%s11826_s5 + $0x988] sm:$0xff] }
 0x2df   : > { %5916 = vmatprep.subr.bf16.mxu1 %v7639_v3  ;;  %6039 = vmatprep.subr.bf16.mxu0 %v7641_v35  ;;  %v7728_v3 = vcombine.low %v3533_v51, %v3537_v55  ;;  %v7719_v35 = vcombine.high %v3524_v63, %v3528_v54  ;;  %v7721_v4 = vcombine.high %v3525_v57, %v3529_v60  ;;  %v3744_v51 = vld [vmem:[%s11826_s5 + $0x9a8] sm:$0xff]  ;;  %v3741_v55 = vld [vmem:[%s11826_s5 + $0x990] sm:$0xff] }
 0x2e2   : > { %5917 = vmatpush1.bf16.msra.mxu1 %v7638_v7  ;;  %6040 = vmatpush1.bf16.msra.mxu0 %v7640_v11  ;;  %v3521_v7 = vld [vmem:[%s11826_s5 + $0x2b0] sm:$0xff]  ;;  %v7718_v11 = vcombine.low %v3524_v63, %v3528_v54  ;;  %v7935_v63 = vcombine.high %v3740_v50, %v3744_v51 }
 0x2e3   : > { %5918 = vmatprep.subr.bf16.mxu1 %v7631_v13  ;;  %6041 = vmatprep.subr.bf16.mxu0 %v7633_v15  ;;  %v7720_v13 = vcombine.low %v3525_v57, %v3529_v60  ;;  %v7711_v15 = vcombine.high %v3516_v52, %v3520_v58  ;;  %v7713_v18 = vcombine.high %v3517_v5, %v3521_v7  ;;  %v3732_v57 = vld [vmem:[%s11826_s5 + $0x948] sm:$0xff] }
 0x2e4   : > { %v3736_v60 = vld [vmem:[%s11826_s5 + $0x968] sm:$0xff] }
 0x2e6   : > { %5919 = vmatpush1.bf16.msra.mxu1 %v7630_v48  ;;  %6042 = vmatpush1.bf16.msra.mxu0 %v7632_v32  ;;  %v3513_v48 = vld [vmem:[%s11826_s5 + $0x270] sm:$0xff]  ;;  %v7710_v32 = vcombine.low %v3516_v52, %v3520_v58 }
 0x2e7   : > { %5920 = vmatprep.subr.bf16.mxu1 %v7751_v24  ;;  %6043 = vmatprep.subr.bf16.mxu0 %v7753_v33  ;;  %v7712_v24 = vcombine.low %v3517_v5, %v3521_v7  ;;  %v7703_v33 = vcombine.high %v3508_v21, %v3512_v19  ;;  %v7705_v26 = vcombine.high %v3509_v27, %v3513_v48 }
 0x2e8   : > { %v7927_v5 = vcombine.high %v3732_v57, %v3736_v60 }
 0x2ea   : > { %5921 = vmatpush2.bf16.msra.mxu1 %v7750_v59  ;;  %6044 = vmatpush2.bf16.msra.mxu0 %v7752_v22  ;;  %v3505_v59 = vld [vmem:[%s11826_s5 + $0x230] sm:$0xff]  ;;  %v7702_v22 = vcombine.low %v3508_v21, %v3512_v19  ;;  %v7926_v19 = vcombine.low %v3732_v57, %v3736_v60 }
 0x2eb   : > { %5922 = vmatprep.subr.bf16.mxu1 %v7743_v36  ;;  %6045 = vmatprep.subr.bf16.mxu0 %v7745_v39  ;;  %v7704_v36 = vcombine.low %v3509_v27, %v3513_v48  ;;  %v7695_v39 = vcombine.high %v3500_v56, %v3504_v47  ;;  %v7697_v40 = vcombine.high %v3501_v49, %v3505_v59  ;;  %v3729_v21 = vld [vmem:[%s11826_s5 + $0x930] sm:$0xff] }
 0x2ec   : > { %v3697_v57 = vld [vmem:[%s11826_s5 + $0x830] sm:$0xff] }
 0x2ee   : > { %5923 = vmatpush2.bf16.msra.mxu1 %v7742_v45  ;;  %6046 = vmatpush2.bf16.msra.mxu0 %v7744_v0  ;;  %v3753_v45 = vld [vmem:[%s11826_s5 + $0x9f0] sm:$0xff]  ;;  %v7694_v0 = vcombine.low %v3500_v56, %v3504_v47 }
 0x2ef   : > { %5924 = vmatprep.subr.bf16.mxu1 %v7735_v46  ;;  %6047 = vmatprep.subr.bf16.mxu0 %v7737_v25  ;;  %v7696_v46 = vcombine.low %v3501_v49, %v3505_v59  ;;  %v7943_v25 = vcombine.high %v3748_v43, %v3752_v38  ;;  %v7945_v1 = vcombine.high %v3749_v44, %v3753_v45  ;;  %v3721_v56 = vld [vmem:[%s11826_s5 + $0x8f0] sm:$0xff] }
 0x2f2   : > { %5925 = vmatpush2.bf16.msra.mxu1 %v7734_v37  ;;  %6048 = vmatpush2.bf16.msra.mxu0 %v7736_v61  ;;  %v3745_v37 = vld [vmem:[%s11826_s5 + $0x9b0] sm:$0xff]  ;;  %v7942_v61 = vcombine.low %v3748_v43, %v3752_v38 }
 0x2f3   : > { %5926 = vmatprep.subr.bf16.mxu1 %v7727_v53  ;;  %6049 = vmatprep.subr.bf16.mxu0 %v7729_v62  ;;  %v7944_v62 = vcombine.low %v3749_v44, %v3753_v45  ;;  %v7937_v54 = vcombine.high %v3741_v55, %v3745_v37  ;;  %v7936_v58 = vcombine.low %v3741_v55, %v3745_v37  ;;  %v3713_v43 = vld [vmem:[%s11826_s5 + $0x8b0] sm:$0xff] }
 0x2f6   : > { %5927 = vmatpush2.bf16.msra.mxu1 %v7726_v2  ;;  %6050 = vmatpush2.bf16.msra.mxu0 %v7728_v3  ;;  %v3733_v3 = vld [vmem:[%s11826_s5 + $0x950] sm:$0xff] }
 0x2f7   : > { %5928 = vmatprep.subr.bf16.mxu1 %v7719_v35  ;;  %6051 = vmatprep.subr.bf16.mxu0 %v7721_v4  ;;  %v3737_v35 = vld [vmem:[%s11826_s5 + $0x970] sm:$0xff]  ;;  %v7934_v4 = vcombine.low %v3740_v50, %v3744_v51 }
 0x2f8   : > { %v7929_v7 = vcombine.high %v3733_v3, %v3737_v35  ;;  %v7928_v27 = vcombine.low %v3733_v3, %v3737_v35  ;;  %v3705_v50 = vld [vmem:[%s11826_s5 + $0x870] sm:$0xff] }
 0x2fa   : > { %5929 = vmatpush2.bf16.msra.mxu1 %v7718_v11  ;;  %6052 = vmatpush2.bf16.msra.mxu0 %v7720_v13  ;;  %v3724_v11 = vld [vmem:[%s11826_s5 + $0x908] sm:$0xff] }
 0x2fb   : > { %5930 = vmatprep.subr.bf16.mxu1 %v7711_v15  ;;  %6053 = vmatprep.subr.bf16.mxu0 %v7713_v18  ;;  %v3728_v13 = vld [vmem:[%s11826_s5 + $0x928] sm:$0xff]  ;;  %v3725_v18 = vld [vmem:[%s11826_s5 + $0x910] sm:$0xff] }
 0x2fc   : > { %v7919_v48 = vcombine.high %v3724_v11, %v3728_v13  ;;  %v7918_v47 = vcombine.low %v3724_v11, %v3728_v13  ;;  %v7920_v49 = vcombine.low %v3725_v18, %v3729_v21 }
 0x2fe   : > { %5931 = vmatpush2.bf16.msra.mxu1 %v7710_v32  ;;  %6054 = vmatpush2.bf16.msra.mxu0 %v7712_v24  ;;  %v7921_v32 = vcombine.high %v3725_v18, %v3729_v21  ;;  %v3716_v24 = vld [vmem:[%s11826_s5 + $0x8c8] sm:$0xff] }
 0x2ff   : > { %5932 = vmatprep.subr.bf16.mxu1 %v7703_v33  ;;  %6055 = vmatprep.subr.bf16.mxu0 %v7705_v26  ;;  %v3720_v33 = vld [vmem:[%s11826_s5 + $0x8e8] sm:$0xff]  ;;  %v3717_v26 = vld [vmem:[%s11826_s5 + $0x8d0] sm:$0xff] }
 0x300   : > { %v7911_v59 = vcombine.high %v3716_v24, %v3720_v33  ;;  %v7910_v38 = vcombine.low %v3716_v24, %v3720_v33  ;;  %v7912_v44 = vcombine.low %v3717_v26, %v3721_v56  ;;  %v3804_v21 = vld [vmem:[%s11826_s5 + $0xb88] sm:$0xff] }
 0x302   : > { %5933 = vmatpush2.bf16.msra.mxu1 %v7702_v22  ;;  %6056 = vmatpush2.bf16.msra.mxu0 %v7704_v36  ;;  %v7913_v22 = vcombine.high %v3717_v26, %v3721_v56  ;;  %v3708_v36 = vld [vmem:[%s11826_s5 + $0x888] sm:$0xff] }
 0x303   : > { %5934 = vmatprep.subr.bf16.mxu1 %v7695_v39  ;;  %6057 = vmatprep.subr.bf16.mxu0 %v7697_v40  ;;  %v3712_v39 = vld [vmem:[%s11826_s5 + $0x8a8] sm:$0xff]  ;;  %v3709_v40 = vld [vmem:[%s11826_s5 + $0x890] sm:$0xff] }
 0x304   : > { %v7903_v45 = vcombine.high %v3708_v36, %v3712_v39  ;;  %v7902_v51 = vcombine.low %v3708_v36, %v3712_v39  ;;  %v7904_v55 = vcombine.low %v3709_v40, %v3713_v43  ;;  %v3796_v56 = vld [vmem:[%s11826_s5 + $0xb48] sm:$0xff] }
 0x306   : > { %5935 = vmatpush2.bf16.msra.mxu1 %v7694_v0  ;;  %6058 = vmatpush2.bf16.msra.mxu0 %v7696_v46  ;;  %v7905_v0 = vcombine.high %v3709_v40, %v3713_v43  ;;  %v3700_v46 = vld [vmem:[%s11826_s5 + $0x848] sm:$0xff] }
 0x307   : > { %v10904_v53 = vpop.f32.mrf.mxu0  ;;  %5986 = vmatprep.subr.bf16.mxu1 %v7943_v25  ;;  %6109 = vmatprep.subr.bf16.mxu0 %v7945_v1  ;;  %v3704_v25 = vld [vmem:[%s11826_s5 + $0x868] sm:$0xff]  ;;  %v3701_v1 = vld [vmem:[%s11826_s5 + $0x850] sm:$0xff] }
 0x308   : > { %v7895_v37 = vcombine.high %v3700_v46, %v3704_v25  ;;  %v7894_v60 = vcombine.low %v3700_v46, %v3704_v25  ;;  %v7896_v3 = vcombine.low %v3701_v1, %v3705_v50  ;;  %v3788_v43 = vld [vmem:[%s11826_s5 + $0xb08] sm:$0xff] }
 0x309   : > { %5937 = vmatmul.mubr.bf16.vlgmr.msra.gmra.mxu1 %v10436_v17  ;;  %6060 = vmatmul.mubr.bf16.vlgmr.msra.gmra.mxu0 %v10436_v17  ;;  %v10914_v2 = vpop.f32.mrf.mxu0 }
 0x30a   : > { %5987 = vmatpush1.bf16.msra.mxu1 %v7942_v61  ;;  %8014 = vmatprep.mubr.msk.bf16.mxu1 %vm10464_vm11, %v10482_v42  ;;  %v7897_v61 = vcombine.high %v3701_v1, %v3705_v50  ;;  %v3780_v50 = vld [vmem:[%s11826_s5 + $0xac8] sm:$0xff] }
 0x30b   : > { %6110 = vmatpush1.bf16.msra.mxu0 %v7944_v62  ;;  %8016 = vmatprep.mubr.msk.bf16.mxu0 %vm10464_vm11, %v10482_v42  ;;  %v5819_v52 = vpop.f32.mrf.mxu0  ;;  %v3692_v62 = vld [vmem:[%s11826_s5 + $0x808] sm:$0xff] }
 0x30c   : > { %5988 = vmatprep.subr.bf16.mxu1 %v7935_v63  ;;  %6111 = vmatprep.subr.bf16.mxu0 %v7937_v54  ;;  %v3696_v63 = vld [vmem:[%s11826_s5 + $0x828] sm:$0xff]  ;;  %v3693_v54 = vld [vmem:[%s11826_s5 + $0x810] sm:$0xff] }
 0x30d   : > { %v5820_v15 = vpop.f32.mrf.mxu0  ;;  %v7887_v35 = vcombine.high %v3692_v62, %v3696_v63  ;;  %v3812_v52 = vld [vmem:[%s11826_s5 + $0xbc8] sm:$0xff]  ;;  %v7886_v11 = vcombine.low %v3692_v62, %v3696_v63  ;;  %v7888_v13 = vcombine.low %v3693_v54, %v3697_v57 }
 0x30e   : > { %5989 = vmatpush1.bf16.msra.mxu1 %v7934_v4  ;;  %v7889_v4 = vcombine.high %v3693_v54, %v3697_v57  ;;  %v3772_v57 = vld [vmem:[%s11826_s5 + $0xa88] sm:$0xff] }
 0x30f   : > { %6112 = vmatpush1.bf16.msra.mxu0 %v7936_v58  ;;  %5990 = vmatprep.subr.bf16.mxu1 %v7927_v5  ;;  %v3816_v58 = vld [vmem:[%s11826_s5 + $0xbe8] sm:$0xff]  ;;  %v3813_v5 = vld [vmem:[%s11826_s5 + $0xbd0] sm:$0xff] }
 0x310   : > { %6113 = vmatprep.subr.bf16.mxu0 %v7929_v7  ;;  %v3817_v7 = vld [vmem:[%s11826_s5 + $0xbf0] sm:$0xff]  ;;  %v8007_v15 = vcombine.high %v3812_v52, %v3816_v58 }
 0x311   : > { %v8009_v18 = vcombine.high %v3813_v5, %v3817_v7  ;;  %v8008_v24 = vcombine.low %v3813_v5, %v3817_v7  ;;  %v3764_v7 = vld [vmem:[%s11826_s5 + $0xa48] sm:$0xff] }
 0x312   : > { %5991 = vmatpush1.bf16.msra.mxu1 %v7926_v19  ;;  %v3808_v19 = vld [vmem:[%s11826_s5 + $0xba8] sm:$0xff] }
 0x313   : > { %6114 = vmatpush1.bf16.msra.mxu0 %v7928_v27  ;;  %5992 = vmatprep.subr.bf16.mxu1 %v7919_v48  ;;  %v3805_v27 = vld [vmem:[%s11826_s5 + $0xb90] sm:$0xff]  ;;  %v7999_v33 = vcombine.high %v3804_v21, %v3808_v19 }
 0x314   : > { %6115 = vmatprep.subr.bf16.mxu0 %v7921_v32  ;;  %v3809_v48 = vld [vmem:[%s11826_s5 + $0xbb0] sm:$0xff]  ;;  %v8006_v32 = vcombine.low %v3812_v52, %v3816_v58 }
 0x315   : > { %v8001_v26 = vcombine.high %v3805_v27, %v3809_v48  ;;  %v8000_v36 = vcombine.low %v3805_v27, %v3809_v48  ;;  %v3756_v48 = vld [vmem:[%s11826_s5 + $0xa08] sm:$0xff] }
 0x316   : > { %5993 = vmatpush1.bf16.msra.mxu1 %v7918_v47  ;;  %v3800_v47 = vld [vmem:[%s11826_s5 + $0xb68] sm:$0xff] }
 0x317   : > { %6116 = vmatpush1.bf16.msra.mxu0 %v7920_v49  ;;  %5994 = vmatprep.subr.bf16.mxu1 %v7911_v59  ;;  %v3797_v49 = vld [vmem:[%s11826_s5 + $0xb50] sm:$0xff]  ;;  %v7991_v39 = vcombine.high %v3796_v56, %v3800_v47 }
 0x318   : > { %6117 = vmatprep.subr.bf16.mxu0 %v7913_v22  ;;  %v3801_v59 = vld [vmem:[%s11826_s5 + $0xb70] sm:$0xff]  ;;  %v7998_v22 = vcombine.low %v3804_v21, %v3808_v19 }
 0x319   : > { %v7993_v40 = vcombine.high %v3797_v49, %v3801_v59  ;;  %v7992_v46 = vcombine.low %v3797_v49, %v3801_v59  ;;  %v3621_v59 = vld [vmem:[%s11826_s5 + $0x5d0] sm:$0xff] }
 0x31a   : > { %5995 = vmatpush1.bf16.msra.mxu1 %v7910_v38  ;;  %v3792_v38 = vld [vmem:[%s11826_s5 + $0xb28] sm:$0xff] }
 0x31b   : > { %6118 = vmatpush1.bf16.msra.mxu0 %v7912_v44  ;;  %5996 = vmatprep.subr.bf16.mxu1 %v7903_v45  ;;  %v3789_v44 = vld [vmem:[%s11826_s5 + $0xb10] sm:$0xff]  ;;  %v7983_v25 = vcombine.high %v3788_v43, %v3792_v38 }
 0x31c   : > { %6119 = vmatprep.subr.bf16.mxu0 %v7905_v0  ;;  %v3793_v45 = vld [vmem:[%s11826_s5 + $0xb30] sm:$0xff]  ;;  %v7990_v0 = vcombine.low %v3796_v56, %v3800_v47 }
 0x31d   : > { %v7985_v1 = vcombine.high %v3789_v44, %v3793_v45  ;;  %v7984_v62 = vcombine.low %v3789_v44, %v3793_v45  ;;  %v3613_v45 = vld [vmem:[%s11826_s5 + $0x590] sm:$0xff] }
 0x31e   : > { %5997 = vmatpush1.bf16.msra.mxu1 %v7902_v51  ;;  %v3784_v51 = vld [vmem:[%s11826_s5 + $0xae8] sm:$0xff] }
 0x31f   : > { %6120 = vmatpush1.bf16.msra.mxu0 %v7904_v55  ;;  %5998 = vmatprep.subr.bf16.mxu1 %v7895_v37  ;;  %v3781_v55 = vld [vmem:[%s11826_s5 + $0xad0] sm:$0xff]  ;;  %v7975_v63 = vcombine.high %v3780_v50, %v3784_v51 }
 0x320   : > { %6121 = vmatprep.subr.bf16.mxu0 %v7897_v61  ;;  %v3785_v37 = vld [vmem:[%s11826_s5 + $0xaf0] sm:$0xff]  ;;  %v7982_v61 = vcombine.low %v3788_v43, %v3792_v38 }
 0x321   : > { %v7977_v54 = vcombine.high %v3781_v55, %v3785_v37  ;;  %v7976_v52 = vcombine.low %v3781_v55, %v3785_v37  ;;  %v3605_v37 = vld [vmem:[%s11826_s5 + $0x550] sm:$0xff] }
 0x322   : > { %5999 = vmatpush1.bf16.msra.mxu1 %v7894_v60  ;;  %v3776_v60 = vld [vmem:[%s11826_s5 + $0xaa8] sm:$0xff] }
 0x323   : > { %6122 = vmatpush1.bf16.msra.mxu0 %v7896_v3  ;;  %6000 = vmatprep.subr.bf16.mxu1 %v7887_v35  ;;  %v3773_v3 = vld [vmem:[%s11826_s5 + $0xa90] sm:$0xff]  ;;  %v7967_v58 = vcombine.high %v3772_v57, %v3776_v60 }
 0x324   : > { %6123 = vmatprep.subr.bf16.mxu0 %v7889_v4  ;;  %v3777_v35 = vld [vmem:[%s11826_s5 + $0xab0] sm:$0xff]  ;;  %v7974_v4 = vcombine.low %v3780_v50, %v3784_v51 }
 0x325   : > { %v7969_v5 = vcombine.high %v3773_v3, %v3777_v35  ;;  %v7968_v21 = vcombine.low %v3773_v3, %v3777_v35 }
 0x326   : > { %6001 = vmatpush1.bf16.msra.mxu1 %v7886_v11  ;;  %v3768_v11 = vld [vmem:[%s11826_s5 + $0xa68] sm:$0xff] }
 0x327   : > { %6124 = vmatpush1.bf16.msra.mxu0 %v7888_v13  ;;  %6002 = vmatprep.subr.bf16.mxu1 %v8007_v15  ;;  %v3765_v13 = vld [vmem:[%s11826_s5 + $0xa50] sm:$0xff]  ;;  %v7959_v19 = vcombine.high %v3764_v7, %v3768_v11 }
 0x328   : > { %6125 = vmatprep.subr.bf16.mxu0 %v8009_v18  ;;  %v3769_v15 = vld [vmem:[%s11826_s5 + $0xa70] sm:$0xff]  ;;  %v7966_v18 = vcombine.low %v3772_v57, %v3776_v60  ;;  %v3610_v57 = vld [vmem:[%s11826_s5 + $0x578] sm:$0xff] }
 0x329   : > { %v7961_v27 = vcombine.high %v3765_v13, %v3769_v15  ;;  %v7960_v56 = vcombine.low %v3765_v13, %v3769_v15 }
 0x32a   : > { %6003 = vmatpush2.bf16.msra.mxu1 %v8006_v32  ;;  %v3760_v32 = vld [vmem:[%s11826_s5 + $0xa28] sm:$0xff] }
 0x32b   : > { %6126 = vmatpush2.bf16.msra.mxu0 %v8008_v24  ;;  %6004 = vmatprep.subr.bf16.mxu1 %v7999_v33  ;;  %v3757_v24 = vld [vmem:[%s11826_s5 + $0xa10] sm:$0xff]  ;;  %v7951_v47 = vcombine.high %v3756_v48, %v3760_v32 }
 0x32c   : > { %6127 = vmatprep.subr.bf16.mxu0 %v8001_v26  ;;  %v3761_v33 = vld [vmem:[%s11826_s5 + $0xa30] sm:$0xff]  ;;  %v7958_v26 = vcombine.low %v3764_v7, %v3768_v11  ;;  %v3598_v11 = vld [vmem:[%s11826_s5 + $0x518] sm:$0xff] }
 0x32d   : > { %v7953_v49 = vcombine.high %v3757_v24, %v3761_v33  ;;  %v7952_v43 = vcombine.low %v3757_v24, %v3761_v33 }
 0x32e   : > { %6005 = vmatpush2.bf16.msra.mxu1 %v7998_v22  ;;  %v3625_v22 = vld [vmem:[%s11826_s5 + $0x5f0] sm:$0xff] }
 0x32f   : > { %6128 = vmatpush2.bf16.msra.mxu0 %v8000_v36  ;;  %6006 = vmatprep.subr.bf16.mxu1 %v7991_v39  ;;  %v3622_v36 = vld [vmem:[%s11826_s5 + $0x5d8] sm:$0xff]  ;;  %v7817_v38 = vcombine.high %v3621_v59, %v3625_v22 }
 0x330   : > { %6129 = vmatprep.subr.bf16.mxu0 %v7993_v40  ;;  %v3626_v39 = vld [vmem:[%s11826_s5 + $0x5f8] sm:$0xff]  ;;  %v7950_v40 = vcombine.low %v3756_v48, %v3760_v32 }
 0x331   : > { %v7819_v44 = vcombine.high %v3622_v36, %v3626_v39  ;;  %v7818_v51 = vcombine.low %v3622_v36, %v3626_v39  ;;  %v3590_v48 = vld [vmem:[%s11826_s5 + $0x4d8] sm:$0xff] }
 0x332   : > { %6007 = vmatpush2.bf16.msra.mxu1 %v7990_v0  ;;  %v3617_v0 = vld [vmem:[%s11826_s5 + $0x5b0] sm:$0xff]  ;;  %v3594_v32 = vld [vmem:[%s11826_s5 + $0x4f8] sm:$0xff] }
 0x333   : > { %6130 = vmatpush2.bf16.msra.mxu0 %v7992_v46  ;;  %6008 = vmatprep.subr.bf16.mxu1 %v7983_v25  ;;  %v7816_v46 = vcombine.low %v3621_v59, %v3625_v22  ;;  %v3614_v25 = vld [vmem:[%s11826_s5 + $0x598] sm:$0xff]  ;;  %v7809_v55 = vcombine.high %v3613_v45, %v3617_v0  ;;  %v7808_v60 = vcombine.low %v3613_v45, %v3617_v0 }
 0x334   : > { %6131 = vmatprep.subr.bf16.mxu0 %v7985_v1  ;;  %v3618_v1 = vld [vmem:[%s11826_s5 + $0x5b8] sm:$0xff]  ;;  %v7786_v39 = vcombine.low %v3590_v48, %v3594_v32 }
 0x335   : > { %v7810_v35 = vcombine.low %v3614_v25, %v3618_v1  ;;  %v3582_v59 = vld [vmem:[%s11826_s5 + $0x498] sm:$0xff] }
 0x336   : > { %6009 = vmatpush2.bf16.msra.mxu1 %v7982_v61  ;;  %v3609_v61 = vld [vmem:[%s11826_s5 + $0x570] sm:$0xff]  ;;  %v3586_v22 = vld [vmem:[%s11826_s5 + $0x4b8] sm:$0xff] }
 0x337   : > { %6132 = vmatpush2.bf16.msra.mxu0 %v7984_v62  ;;  %6010 = vmatprep.subr.bf16.mxu1 %v7975_v63  ;;  %v7811_v63 = vcombine.high %v3614_v25, %v3618_v1  ;;  %v7800_v13 = vcombine.low %v3605_v37, %v3609_v61  ;;  %v3574_v45 = vld [vmem:[%s11826_s5 + $0x458] sm:$0xff]  ;;  %v7778_v25 = vcombine.low %v3582_v59, %v3586_v22 }
 0x338   : > { %6133 = vmatprep.subr.bf16.mxu0 %v7977_v54  ;;  %v3606_v54 = vld [vmem:[%s11826_s5 + $0x558] sm:$0xff] }
 0x339   : > { %v7802_v15 = vcombine.low %v3606_v54, %v3610_v57  ;;  %v3578_v0 = vld [vmem:[%s11826_s5 + $0x478] sm:$0xff] }
 0x33a   : > { %6011 = vmatpush2.bf16.msra.mxu1 %v7974_v4  ;;  %v7801_v4 = vcombine.high %v3605_v37, %v3609_v61  ;;  %v3569_v37 = vld [vmem:[%s11826_s5 + $0x430] sm:$0xff]  ;;  %v3566_v61 = vld [vmem:[%s11826_s5 + $0x418] sm:$0xff] }
 0x33b   : > { %6134 = vmatpush2.bf16.msra.mxu0 %v7976_v52  ;;  %6012 = vmatprep.subr.bf16.mxu1 %v7967_v58  ;;  %v7803_v52 = vcombine.high %v3606_v54, %v3610_v57  ;;  %v3597_v58 = vld [vmem:[%s11826_s5 + $0x510] sm:$0xff]  ;;  %v7770_v57 = vcombine.low %v3574_v45, %v3578_v0 }
 0x33c   : > { %6135 = vmatprep.subr.bf16.mxu0 %v7969_v5  ;;  %v3601_v5 = vld [vmem:[%s11826_s5 + $0x530] sm:$0xff] }
 0x33d   : > { %v7792_v24 = vcombine.low %v3597_v58, %v3601_v5 }
 0x33e   : > { %6013 = vmatpush2.bf16.msra.mxu1 %v7966_v18  ;;  %v7793_v18 = vcombine.high %v3597_v58, %v3601_v5  ;;  %v3690_v58 = vld [vmem:[%s11826_s5 + $0x7f8] sm:$0xff] }
 0x33f   : > { %6136 = vmatpush2.bf16.msra.mxu0 %v7968_v21  ;;  %6014 = vmatprep.subr.bf16.mxu1 %v7959_v19  ;;  %v3589_v19 = vld [vmem:[%s11826_s5 + $0x4d0] sm:$0xff] }
 0x340   : > { %6137 = vmatprep.subr.bf16.mxu0 %v7961_v27  ;;  %v3593_v27 = vld [vmem:[%s11826_s5 + $0x4f0] sm:$0xff] }
 0x341   : > { %v7784_v36 = vcombine.low %v3589_v19, %v3593_v27 }
 0x342   : > { %6015 = vmatpush2.bf16.msra.mxu1 %v7958_v26  ;;  %v7785_v26 = vcombine.high %v3589_v19, %v3593_v27 }
 0x343   : > { %6138 = vmatpush2.bf16.msra.mxu0 %v7960_v56  ;;  %6016 = vmatprep.subr.bf16.mxu1 %v7951_v47  ;;  %v7787_v56 = vcombine.high %v3590_v48, %v3594_v32  ;;  %v3581_v47 = vld [vmem:[%s11826_s5 + $0x490] sm:$0xff] }
 0x344   : > { %6139 = vmatprep.subr.bf16.mxu0 %v7953_v49  ;;  %v3585_v49 = vld [vmem:[%s11826_s5 + $0x4b0] sm:$0xff] }
 0x346   : > { %6017 = vmatpush2.bf16.msra.mxu1 %v7950_v40  ;;  %v7777_v40 = vcombine.high %v3581_v47, %v3585_v49 }
 0x347   : > { %6140 = vmatpush2.bf16.msra.mxu0 %v7952_v43  ;;  %v11108_v50 = vpop.f32.mrf.mxu0  ;;  %6068 = vmatprep.subr.bf16.mxu1 %v7817_v38  ;;  %v7779_v43 = vcombine.high %v3582_v59, %v3586_v22  ;;  %v3573_v38 = vld [vmem:[%s11826_s5 + $0x450] sm:$0xff] }
 0x348   : > { %6191 = vmatprep.subr.bf16.mxu0 %v7819_v44  ;;  %v3577_v44 = vld [vmem:[%s11826_s5 + $0x470] sm:$0xff] }
 0x349   : > { %v11116_v62 = vpop.f32.mrf.mxu0  ;;  %8015 = vmatmul.mubr.msk.bf16.vlgmr.msra.gmra.mxu1 %vm10464_vm11, %v10584_v14  ;;  %v7769_v1 = vcombine.high %v3573_v38, %v3577_v44  ;;  %v7768_v54 = vcombine.low %v3573_v38, %v3577_v44 }
 0x34a   : > { %8017 = vmatmul.mubr.msk.bf16.vlgmr.msra.gmra.mxu0 %vm10464_vm11, %v10584_v14  ;;  %6069 = vmatpush1.bf16.msra.mxu1 %v7816_v46  ;;  %v7776_v46 = vcombine.low %v3581_v47, %v3585_v49 }
 0x34b   : > { %6100 = vmatprep.mubr.bf16.mxu1 %v10699_v6  ;;  %6192 = vmatpush1.bf16.msra.mxu0 %v7818_v51  ;;  %v5901_v3 = vpop.f32.mrf.mxu0  ;;  %v7771_v51 = vcombine.high %v3574_v45, %v3578_v0 }
 0x34c   : > { %6223 = vmatprep.mubr.bf16.mxu0 %v10699_v6  ;;  %6070 = vmatprep.subr.bf16.mxu1 %v7809_v55  ;;  %v3602_v6 = vld [vmem:[%s11826_s5 + $0x538] sm:$0xff]  ;;  %v3565_v55 = vld [vmem:[%s11826_s5 + $0x410] sm:$0xff] }
 0x34d   : > { %v5902_v7 = vpop.f32.mrf.mxu0  ;;  %6193 = vmatprep.subr.bf16.mxu0 %v7811_v63  ;;  %v7795_v21 = vcombine.high %v3598_v11, %v3602_v6  ;;  %v7794_v33 = vcombine.low %v3598_v11, %v3602_v6  ;;  %v3570_v63 = vld [vmem:[%s11826_s5 + $0x438] sm:$0xff]  ;;  %v7760_v5 = vcombine.low %v3565_v55, %v3569_v37 }
 0x34e   : > { %6071 = vmatpush1.bf16.msra.mxu1 %v7808_v60  ;;  %v7761_v60 = vcombine.high %v3565_v55, %v3569_v37  ;;  %v7763_v3 = vcombine.high %v3566_v61, %v3570_v63  ;;  %v7762_v7 = vcombine.low %v3566_v61, %v3570_v63 }
 0x34f   : > { %6194 = vmatpush1.bf16.msra.mxu0 %v7810_v35  ;;  %6072 = vmatprep.subr.bf16.mxu1 %v7801_v4  ;;  %v3685_v35 = vld [vmem:[%s11826_s5 + $0x7d0] sm:$0xff] }
 0x350   : > { %6195 = vmatprep.subr.bf16.mxu0 %v7803_v52  ;;  %v3689_v4 = vld [vmem:[%s11826_s5 + $0x7f0] sm:$0xff]  ;;  %v3686_v52 = vld [vmem:[%s11826_s5 + $0x7d8] sm:$0xff] }
 0x351   : > { %v7881_v11 = vcombine.high %v3685_v35, %v3689_v4  ;;  %v7883_v6 = vcombine.high %v3686_v52, %v3690_v58  ;;  %v7880_v19 = vcombine.low %v3685_v35, %v3689_v4  ;;  %v7882_v27 = vcombine.low %v3686_v52, %v3690_v58 }
 0x352   : > { %6073 = vmatpush1.bf16.msra.mxu1 %v7800_v13  ;;  %v3677_v13 = vld [vmem:[%s11826_s5 + $0x790] sm:$0xff] }
 0x353   : > { %6196 = vmatpush1.bf16.msra.mxu0 %v7802_v15  ;;  %6074 = vmatprep.subr.bf16.mxu1 %v7793_v18  ;;  %v3681_v15 = vld [vmem:[%s11826_s5 + $0x7b0] sm:$0xff]  ;;  %v3678_v18 = vld [vmem:[%s11826_s5 + $0x798] sm:$0xff] }
 0x354   : > { %6197 = vmatprep.subr.bf16.mxu0 %v7795_v21  ;;  %v3682_v21 = vld [vmem:[%s11826_s5 + $0x7b8] sm:$0xff]  ;;  %v7873_v48 = vcombine.high %v3677_v13, %v3681_v15  ;;  %v7872_v47 = vcombine.low %v3677_v13, %v3681_v15 }
 0x355   : > { %v7875_v32 = vcombine.high %v3678_v18, %v3682_v21  ;;  %v7874_v49 = vcombine.low %v3678_v18, %v3682_v21 }
 0x356   : > { %6075 = vmatpush1.bf16.msra.mxu1 %v7792_v24  ;;  %v3669_v24 = vld [vmem:[%s11826_s5 + $0x750] sm:$0xff] }
 0x357   : > { %6198 = vmatpush1.bf16.msra.mxu0 %v7794_v33  ;;  %6076 = vmatprep.subr.bf16.mxu1 %v7785_v26  ;;  %v3673_v33 = vld [vmem:[%s11826_s5 + $0x770] sm:$0xff]  ;;  %v3670_v26 = vld [vmem:[%s11826_s5 + $0x758] sm:$0xff] }
 0x358   : > { %6199 = vmatprep.subr.bf16.mxu0 %v7787_v56  ;;  %v3674_v56 = vld [vmem:[%s11826_s5 + $0x778] sm:$0xff]  ;;  %v7865_v59 = vcombine.high %v3669_v24, %v3673_v33  ;;  %v7864_v38 = vcombine.low %v3669_v24, %v3673_v33 }
 0x359   : > { %v7867_v22 = vcombine.high %v3670_v26, %v3674_v56  ;;  %v7866_v44 = vcombine.low %v3670_v26, %v3674_v56 }
 0x35a   : > { %6077 = vmatpush1.bf16.msra.mxu1 %v7784_v36  ;;  %v3661_v36 = vld [vmem:[%s11826_s5 + $0x710] sm:$0xff] }
 0x35b   : > { %6200 = vmatpush1.bf16.msra.mxu0 %v7786_v39  ;;  %6078 = vmatprep.subr.bf16.mxu1 %v7777_v40  ;;  %v3665_v39 = vld [vmem:[%s11826_s5 + $0x730] sm:$0xff]  ;;  %v3662_v40 = vld [vmem:[%s11826_s5 + $0x718] sm:$0xff] }
 0x35c   : > { %6201 = vmatprep.subr.bf16.mxu0 %v7779_v43  ;;  %v3666_v43 = vld [vmem:[%s11826_s5 + $0x738] sm:$0xff]  ;;  %v7857_v45 = vcombine.high %v3661_v36, %v3665_v39  ;;  %v7856_v55 = vcombine.low %v3661_v36, %v3665_v39 }
 0x35d   : > { %v7859_v0 = vcombine.high %v3662_v40, %v3666_v43  ;;  %v7858_v37 = vcombine.low %v3662_v40, %v3666_v43  ;;  %v8707_v39 = vld [vmem:[%s11828_s7 + $0x78] sm:$0xff]   ;;  %v11300_v40 = vld [vmem:[%s11827_s6] sm:$0xff] }
 0x35e   : > { %6079 = vmatpush1.bf16.msra.mxu1 %v7776_v46  ;;  %v3653_v46 = vld [vmem:[%s11826_s5 + $0x6d0] sm:$0xff]  ;;  %v3486_v43 = vld [vmem:[%s11826_s5 + $0x198] sm:$0xff] }
 0x35f   : > { %6202 = vmatpush1.bf16.msra.mxu0 %v7778_v25  ;;  %6080 = vmatprep.subr.bf16.mxu1 %v7769_v1  ;;  %v3657_v25 = vld [vmem:[%s11826_s5 + $0x6f0] sm:$0xff]  ;;  %v3654_v1 = vld [vmem:[%s11826_s5 + $0x6d8] sm:$0xff] }
 0x360   : > { %6203 = vmatprep.subr.bf16.mxu0 %v7771_v51  ;;  %v3658_v51 = vld [vmem:[%s11826_s5 + $0x6f8] sm:$0xff]  ;;  %v7849_v61 = vcombine.high %v3653_v46, %v3657_v25  ;;  %v7848_v35 = vcombine.low %v3653_v46, %v3657_v25  ;;  %v8709_v25 = vld [vmem:[%s11828_s7 + $0x70] sm:$0xff]  }
 0x361   : > { %v7851_v63 = vcombine.high %v3654_v1, %v3658_v51  ;;  %v7850_v4 = vcombine.low %v3654_v1, %v3658_v51  ;;  %v3478_v1 = vld [vmem:[%s11826_s5 + $0x158] sm:$0xff] }
 0x362   : > { %6081 = vmatpush1.bf16.msra.mxu1 %v7768_v54  ;;  %v3645_v54 = vld [vmem:[%s11826_s5 + $0x690] sm:$0xff] }
 0x363   : > { %6204 = vmatpush1.bf16.msra.mxu0 %v7770_v57  ;;  %6082 = vmatprep.subr.bf16.mxu1 %v7761_v60  ;;  %v3649_v57 = vld [vmem:[%s11826_s5 + $0x6b0] sm:$0xff]  ;;  %v3646_v60 = vld [vmem:[%s11826_s5 + $0x698] sm:$0xff] }
 0x364   : > { %6205 = vmatprep.subr.bf16.mxu0 %v7763_v3  ;;  %v3650_v3 = vld [vmem:[%s11826_s5 + $0x6b8] sm:$0xff]  ;;  %v7841_v52 = vcombine.high %v3645_v54, %v3649_v57  ;;  %v7840_v13 = vcombine.low %v3645_v54, %v3649_v57  ;;  %v8710_v57 = vld [vmem:[%s11828_s7 + $0x30] sm:$0xff]  }
 0x365   : > { %v7843_v58 = vcombine.high %v3646_v60, %v3650_v3  ;;  %v7842_v15 = vcombine.low %v3646_v60, %v3650_v3 }
 0x366   : > { %6083 = vmatpush1.bf16.msra.mxu1 %v7760_v5  ;;  %v3637_v5 = vld [vmem:[%s11826_s5 + $0x650] sm:$0xff] }
 0x367   : > { %6206 = vmatpush1.bf16.msra.mxu0 %v7762_v7  ;;  %6084 = vmatprep.subr.bf16.mxu1 %v7881_v11  ;;  %v3641_v7 = vld [vmem:[%s11826_s5 + $0x670] sm:$0xff]  ;;  %v3638_v11 = vld [vmem:[%s11826_s5 + $0x658] sm:$0xff] }
 0x368   : > { %6207 = vmatprep.subr.bf16.mxu0 %v7883_v6  ;;  %v3642_v6 = vld [vmem:[%s11826_s5 + $0x678] sm:$0xff]  ;;  %v7833_v18 = vcombine.high %v3637_v5, %v3641_v7  ;;  %v7832_v24 = vcombine.low %v3637_v5, %v3641_v7 }
 0x369   : > { %v7835_v21 = vcombine.high %v3638_v11, %v3642_v6  ;;  %v7834_v33 = vcombine.low %v3638_v11, %v3642_v6  ;;  %v8712_v11 = vld [vmem:[%s11828_s7 + $0x28] sm:$0xff]  }
 0x36a   : > { %6085 = vmatpush2.bf16.msra.mxu1 %v7880_v19  ;;  %v3629_v19 = vld [vmem:[%s11826_s5 + $0x610] sm:$0xff] }
 0x36b   : > { %6208 = vmatpush2.bf16.msra.mxu0 %v7882_v27  ;;  %6086 = vmatprep.subr.bf16.mxu1 %v7873_v48  ;;  %v3633_v27 = vld [vmem:[%s11826_s5 + $0x630] sm:$0xff]  ;;  %v3630_v48 = vld [vmem:[%s11826_s5 + $0x618] sm:$0xff] }
 0x36c   : > { %6209 = vmatprep.subr.bf16.mxu0 %v7875_v32  ;;  %v3634_v32 = vld [vmem:[%s11826_s5 + $0x638] sm:$0xff]  ;;  %v7825_v26 = vcombine.high %v3629_v19, %v3633_v27 }
 0x36d   : > { %v7827_v56 = vcombine.high %v3630_v48, %v3634_v32 }
 0x36e   : > { %6087 = vmatpush2.bf16.msra.mxu1 %v7872_v47  ;;  %v3494_v47 = vld [vmem:[%s11826_s5 + $0x1d8] sm:$0xff] }
 0x36f   : > { %6210 = vmatpush2.bf16.msra.mxu0 %v7874_v49  ;;  %6088 = vmatprep.subr.bf16.mxu1 %v7865_v59  ;;  %v3498_v49 = vld [vmem:[%s11826_s5 + $0x1f8] sm:$0xff]  ;;  %v7824_v59 = vcombine.low %v3629_v19, %v3633_v27  ;;  %v8714_v27 = vld [vmem:[%s11828_s7 + $0x20] sm:$0xff]  }
 0x370   : > { %6211 = vmatprep.subr.bf16.mxu0 %v7867_v22  ;;  %v7826_v22 = vcombine.low %v3630_v48, %v3634_v32  ;;  %v7691_v36 = vcombine.high %v3494_v47, %v3498_v49  ;;  %v8715_v32 = vld [vmem:[%s11828_s7 + $0x58] sm:$0xff]  }
 0x372   : > { %6089 = vmatpush2.bf16.msra.mxu1 %v7864_v38  ;;  %v3490_v38 = vld [vmem:[%s11826_s5 + $0x1b8] sm:$0xff] }
 0x373   : > { %6212 = vmatpush2.bf16.msra.mxu0 %v7866_v44  ;;  %6090 = vmatprep.subr.bf16.mxu1 %v7857_v45  ;;  %v3828_v44 = vrot.slane %v11300_v40, %v9323_v30  ;;  %v7690_v45 = vcombine.low %v3494_v47, %v3498_v49  ;;  %v7683_v46 = vcombine.high %v3486_v43, %v3490_v38  ;;  %v3482_v30 = vld [vmem:[%s11826_s5 + $0x178] sm:$0xff] }
 0x374   : > { %6213 = vmatprep.subr.bf16.mxu0 %v7859_v0  ;;  %v8708_v0 = vld [vmem:[%s11828_s7 + $0x38] sm:$0xff]   ;;  %v7675_v60 = vcombine.high %v3478_v1, %v3482_v30 }
 0x375   : > { %v8716_v47 = vld [vmem:[%s11828_s7 + $0x18] sm:$0xff]  }
 0x376   : > { %6091 = vmatpush2.bf16.msra.mxu1 %v7856_v55 }
 0x377   : > { %6214 = vmatpush2.bf16.msra.mxu0 %v7858_v37  ;;  %6092 = vmatprep.subr.bf16.mxu1 %v7849_v61  ;;  %v5818_v37 = vadd.f32 %v10914_v2, %v3828_v44  ;;  %v7682_v61 = vcombine.low %v3486_v43, %v3490_v38  ;;  %v3474_v2 = vld [vmem:[%s11826_s5 + $0x138] sm:$0xff]  ;;  %v8718_v43 = vld [vmem:[%s11828_s7 + $0x10] sm:$0xff]  }
 0x378   : > { %6215 = vmatprep.subr.bf16.mxu0 %v7851_v63 }
 0x37a   : > { %6093 = vmatpush2.bf16.msra.mxu1 %v7848_v35 }
 0x37b   : > { %6216 = vmatpush2.bf16.msra.mxu0 %v7850_v4  ;;  %6094 = vmatprep.subr.bf16.mxu1 %v7841_v52 }
 0x37c   : > { %6217 = vmatprep.subr.bf16.mxu0 %v7843_v58  ;;  %v7674_v58 = vcombine.low %v3478_v1, %v3482_v30 }
 0x37e   : > { %6095 = vmatpush2.bf16.msra.mxu1 %v7840_v13 }
 0x37f   : > { %6218 = vmatpush2.bf16.msra.mxu0 %v7842_v15  ;;  %6096 = vmatprep.subr.bf16.mxu1 %v7833_v18  ;;  %v8713_v15 = vld [vmem:[%s11828_s7 + $0x60] sm:$0xff]   ;;  %v3466_v18 = vld [vmem:[%s11826_s5 + $0xf8] sm:$0xff] }
 0x380   : > { %6219 = vmatprep.subr.bf16.mxu0 %v7835_v21 }
 0x382   : > { %6097 = vmatpush2.bf16.msra.mxu1 %v7832_v24  ;;  %v3454_v24 = vld [vmem:[%s11826_s5 + $0x98] sm:$0xff] }
 0x383   : > { %6220 = vmatpush2.bf16.msra.mxu0 %v7834_v33  ;;  %6098 = vmatprep.subr.bf16.mxu1 %v7825_v26  ;;  %v3458_v33 = vld [vmem:[%s11826_s5 + $0xb8] sm:$0xff]  ;;  %v3824_v26 = vrot.slane %v11300_v40, %v9317_v28 }
 0x384   : > { %6221 = vmatprep.subr.bf16.mxu0 %v7827_v56  ;;  %v7651_v49 = vcombine.high %v3454_v24, %v3458_v33  ;;  %v3450_v28 = vld [vmem:[%s11826_s5 + $0x78] sm:$0xff] }
 0x386   : > { %6099 = vmatpush2.bf16.msra.mxu1 %v7824_v59  ;;  %v8717_v59 = vld [vmem:[%s11828_s7 + $0x50] sm:$0xff]  }
 0x387   : > { %6222 = vmatpush2.bf16.msra.mxu0 %v7826_v22  ;;  %6150 = vmatprep.subr.bf16.mxu1 %v7691_v36  ;;  %v3446_v22 = vld [vmem:[%s11826_s5 + $0x58] sm:$0xff]  ;;  %v5816_v36 = vadd.f32 %v10904_v53, %v3824_v26 }
 0x388   : > { %8106 = vmatprep.subr.bf16.mxu0 %v8707_v39  ;;  %v7650_v39 = vcombine.low %v3454_v24, %v3458_v33  ;;  %v7643_v38 = vcombine.high %v3446_v22, %v3450_v28  ;;  %v3438_v53 = vld [vmem:[%s11826_s5 + $0x18] sm:$0xff]  ;;  %v8744_v24 = vld [vmem:[%s11828_s7 + $0x128] sm:$0xff]   ;;  %v8745_v33 = vld [vmem:[%s11828_s7 + $0x160] sm:$0xff]  }
 0x389   : > { %6101 = vmatmul.mubr.bf16.vlgmr.msra.gmra.mxu1 %v10701_v9  ;;  %v11323_v51 = vpop.f32.mrf.mxu1  ;;  %v11325_v55 = vpop.f32.mrf.mxu0 }
 0x38a   : > { %6224 = vmatmul.mubr.bf16.vlgmr.msra.gmra.mxu0 %v10701_v9  ;;  %6151 = vmatpush1.bf16.msra.mxu1 %v7690_v45  ;;  %v8711_v9 = vld [vmem:[%s11828_s7 + $0x68] sm:$0xff]   ;;  %v5857_v44 = vadd.f32 %v11323_v51, %v5816_v36  ;;  %v8721_v51 = vld [vmem:[%s11828_s7 + $0x40] sm:$0xff]  }
 0x38b   : > { %6182 = vmatprep.mubr.bf16.mxu1 %v10432_v12  ;;  %8107 = vmatpush3.bf16.msra.mxu0 %v8708_v0  ;;  %v5858_v63 = vpop.f32.mrf.mxu1  ;;  %v11330_v54 = vpop.f32.mrf.mxu0  ;;  %v3470_v12 = vld [vmem:[%s11826_s5 + $0x118] sm:$0xff]  ;;  %v8719_v45 = vld [vmem:[%s11828_s7 + $0x48] sm:$0xff]  }
 0x38c   : > { %v5859_v3 = vadd.f32 %v5858_v63, %v5818_v37  ;;  %6152 = vmatprep.subr.bf16.mxu1 %v7683_v46  ;;  %8108 = vmatprep.subr.bf16.mxu0 %v8709_v25  ;;  %v7667_v6 = vcombine.high %v3470_v12, %v3474_v2  ;;  %v7666_v19 = vcombine.low %v3470_v12, %v3474_v2  ;;  %v3442_v0 = vld [vmem:[%s11826_s5 + $0x38] sm:$0xff]  ;;  %v8720_v25 = vld [vmem:[%s11828_s7 + $0x8] sm:$0xff]  }
 0x38d   : > { %v5860_v35 = vpop.f32.mrf.mxu1  ;;  %v5983_v4 = vpop.f32.mrf.mxu0  ;;  %v7642_v46 = vcombine.low %v3446_v22, %v3450_v28  ;;  %v7635_v1 = vcombine.high %v3438_v53, %v3442_v0  ;;  %v5898_v30 = vadd.f32 %v11108_v50, %v5857_v44  ;;  %v3558_v37 = vld [vmem:[%s11826_s5 + $0x3d8] sm:$0xff]  ;;  %v7634_v63 = vcombine.low %v3438_v53, %v3442_v0  ;;  %v8722_v50 = vld [vmem:[%s11828_s7] sm:$0xff]   ;;  %v8749_v44 = vld [vmem:[%s11828_s7 + $0x150] sm:$0xff]  }
 0x38e   : > { %v5900_v52 = vadd.f32 %v11116_v62, %v5859_v3  ;;  %6153 = vmatpush1.bf16.msra.mxu1 %v7682_v61  ;;  %v3462_v62 = vld [vmem:[%s11826_s5 + $0xd8] sm:$0xff] }
 0x38f   : > { %8109 = vmatpush3.bf16.msra.mxu0 %v8710_v57  ;;  %v5861_v5 = vpop.f32.mrf.mxu1  ;;  %v5984_v7 = vpop.f32.mrf.mxu0  ;;  %6154 = vmatprep.subr.bf16.mxu1 %v7675_v60  ;;  %v7659_v48 = vcombine.high %v3462_v62, %v3466_v18  ;;  %v7658_v56 = vcombine.low %v3462_v62, %v3466_v18  ;;  %v3562_v61 = vld [vmem:[%s11826_s5 + $0x3f8] sm:$0xff]  ;;  %v6273_v60 = vmax.f32 %v5898_v30, 0.0  ;;  %v8742_v62 = vld [vmem:[%s11828_s7 + $0x130] sm:$0xff]   ;;  %v8743_v18 = vld [vmem:[%s11828_s7 + $0x168] sm:$0xff]  }
 0x390   : > { %v6274_v13 = vmax.f32 %v5900_v52, 0.0  ;;  %8110 = vmatprep.subr.bf16.mxu0 %v8711_v9  ;;  %v7755_v57 = vcombine.high %v3558_v37, %v3562_v61  ;;  %v3550_v3 = vld [vmem:[%s11826_s5 + $0x398] sm:$0xff]  ;;  %v7754_v12 = vcombine.low %v3558_v37, %v3562_v61  ;;  %v8741_v7 = vld [vmem:[%s11828_s7 + $0x170] sm:$0xff]  }
 0x391   : > { %v3554_v9 = vld [vmem:[%s11826_s5 + $0x3b8] sm:$0xff]  ;;  %v11422_v35 = vpack.c.bf16 %v6273_v60, %v6273_v60 }
 0x392   : > { %v11357_v21 = vpack.c.bf16 %v6274_v13, %v6274_v13  ;;  %6155 = vmatpush1.bf16.msra.mxu1 %v7674_v58  ;;  %v7747_v2 = vcombine.high %v3550_v3, %v3554_v9  ;;  %v3542_v4 = vld [vmem:[%s11826_s5 + $0x358] sm:$0xff] }
 0x393   : > { %8111 = vmatpush3.bf16.msra.mxu0 %v8712_v11  ;;  %6156 = vmatprep.subr.bf16.mxu1 %v7667_v6  ;;  %v3546_v52 = vld [vmem:[%s11826_s5 + $0x378] sm:$0xff]  ;;  %v7746_v11 = vcombine.low %v3550_v3, %v3554_v9 }
 0x394   : > { %8112 = vmatprep.subr.bf16.mxu0 %v8713_v15  ;;  %6988 = vmatprep.mubr.bf16.mxu0 %v11357_v21  ;;  %v8739_v58 = vld [vmem:[%s11828_s7 + $0x178] sm:$0xff]   ;;  %v7739_v6 = vcombine.high %v3542_v4, %v3546_v52 }
 0x395   : > { %v8740_v5 = vld [vmem:[%s11828_s7 + $0x138] sm:$0xff]  }
 0x396   : > { %6157 = vmatpush1.bf16.msra.mxu1 %v7666_v19  ;;  %v3534_v13 = vld [vmem:[%s11826_s5 + $0x318] sm:$0xff]  ;;  %v7738_v19 = vcombine.low %v3542_v4, %v3546_v52  ;;  %v8750_v4 = vld [vmem:[%s11828_s7 + $0x110] sm:$0xff]  }
 0x397   : > { %8113 = vmatpush3.bf16.msra.mxu0 %v8714_v27  ;;  %6158 = vmatprep.subr.bf16.mxu1 %v7659_v48  ;;  %v3538_v15 = vld [vmem:[%s11826_s5 + $0x338] sm:$0xff] }
 0x398   : > { %8114 = vmatprep.subr.bf16.mxu0 %v8715_v32  ;;  %v7731_v27 = vcombine.high %v3534_v13, %v3538_v15  ;;  %v3526_v48 = vld [vmem:[%s11826_s5 + $0x2d8] sm:$0xff]  ;;  %v7730_v26 = vcombine.low %v3534_v13, %v3538_v15  ;;  %v8752_v15 = vld [vmem:[%s11828_s7 + $0x108] sm:$0xff]  }
 0x399   : > { %v3530_v32 = vld [vmem:[%s11826_s5 + $0x2f8] sm:$0xff] }
 0x39a   : > { %6159 = vmatpush1.bf16.msra.mxu1 %v7658_v56  ;;  %v7723_v56 = vcombine.high %v3526_v48, %v3530_v32  ;;  %v8747_v22 = vld [vmem:[%s11828_s7 + $0x158] sm:$0xff]   ;;  %v7722_v28 = vcombine.low %v3526_v48, %v3530_v32 }
 0x39b   : > { %8115 = vmatpush3.bf16.msra.mxu0 %v8716_v47  ;;  %6160 = vmatprep.subr.bf16.mxu1 %v7651_v49  ;;  %v3518_v47 = vld [vmem:[%s11826_s5 + $0x298] sm:$0xff] }
 0x39c   : > { %8116 = vmatprep.subr.bf16.mxu0 %v8717_v59  ;;  %v3522_v49 = vld [vmem:[%s11826_s5 + $0x2b8] sm:$0xff]  ;;  %v8746_v59 = vld [vmem:[%s11828_s7 + $0x120] sm:$0xff]  }
 0x39d   : > { %v7715_v36 = vcombine.high %v3518_v47, %v3522_v49  ;;  %v3502_v0 = vld [vmem:[%s11826_s5 + $0x218] sm:$0xff] }
 0x39e   : > { %6161 = vmatpush1.bf16.msra.mxu1 %v7650_v39  ;;  %v3510_v39 = vld [vmem:[%s11826_s5 + $0x258] sm:$0xff] }
 0x39f   : > { %8117 = vmatpush3.bf16.msra.mxu0 %v8718_v43  ;;  %6162 = vmatprep.subr.bf16.mxu1 %v7643_v38  ;;  %v3514_v43 = vld [vmem:[%s11826_s5 + $0x278] sm:$0xff] }
 0x3a0   : > { %8118 = vmatprep.subr.bf16.mxu0 %v8719_v45  ;;  %v8748_v38 = vld [vmem:[%s11828_s7 + $0x118] sm:$0xff]   ;;  %v7714_v45 = vcombine.low %v3518_v47, %v3522_v49  ;;  %v7707_v53 = vcombine.high %v3510_v39, %v3514_v43 }
 0x3a1   : > { %v3750_v30 = vld [vmem:[%s11826_s5 + $0x9d8] sm:$0xff] }
 0x3a2   : > { %6163 = vmatpush1.bf16.msra.mxu1 %v7642_v46  ;;  %v3506_v46 = vld [vmem:[%s11826_s5 + $0x238] sm:$0xff] }
 0x3a3   : > { %8119 = vmatpush3.bf16.msra.mxu0 %v8720_v25  ;;  %6164 = vmatprep.subr.bf16.mxu1 %v7635_v1  ;;  %v7706_v25 = vcombine.low %v3510_v39, %v3514_v43  ;;  %v7699_v1 = vcombine.high %v3502_v0, %v3506_v46  ;;  %v7698_v37 = vcombine.low %v3502_v0, %v3506_v46  ;;  %v3734_v3 = vld [vmem:[%s11826_s5 + $0x958] sm:$0xff] }
 0x3a4   : > { %8120 = vmatprep.subr.bf16.mxu0 %v8721_v51  ;;  %v3754_v51 = vld [vmem:[%s11826_s5 + $0x9f8] sm:$0xff] }
 0x3a5   : > { %v7947_v61 = vcombine.high %v3750_v30, %v3754_v51  ;;  %v3738_v9 = vld [vmem:[%s11826_s5 + $0x978] sm:$0xff] }
 0x3a6   : > { %6165 = vmatpush1.bf16.msra.mxu1 %v7634_v63  ;;  %v3742_v63 = vld [vmem:[%s11826_s5 + $0x998] sm:$0xff] }
 0x3a7   : > { %8121 = vmatpush3.bf16.msra.mxu0 %v8722_v50  ;;  %6166 = vmatprep.subr.bf16.mxu1 %v7755_v57  ;;  %v3746_v50 = vld [vmem:[%s11826_s5 + $0x9b8] sm:$0xff]  ;;  %v7946_v57 = vcombine.low %v3750_v30, %v3754_v51 }
 0x3a8   : > { %8150 = vmatprep.subr.bf16.mxu0 %v8739_v58  ;;  %v7939_v60 = vcombine.high %v3742_v63, %v3746_v50  ;;  %v7938_v52 = vcombine.low %v3742_v63, %v3746_v50  ;;  %v3718_v48 = vld [vmem:[%s11826_s5 + $0x8d8] sm:$0xff] }
 0x3a9   : > { %v3722_v32 = vld [vmem:[%s11826_s5 + $0x8f8] sm:$0xff] }
 0x3aa   : > { %6989 = vmatmul.mubr.bf16.vlgmr.msra.gmra.mxu0 %v11422_v35  ;;  %6167 = vmatpush2.bf16.msra.mxu1 %v7754_v12  ;;  %v3710_v47 = vld [vmem:[%s11826_s5 + $0x898] sm:$0xff] }
 0x3ab   : > { %6168 = vmatprep.subr.bf16.mxu1 %v7747_v2  ;;  %8151 = vmatpush3.bf16.msra.mxu0 %v8740_v5  ;;  %v3714_v49 = vld [vmem:[%s11826_s5 + $0x8b8] sm:$0xff] }
 0x3ac   : > { %8152 = vmatprep.subr.bf16.mxu0 %v8741_v7  ;;  %v7931_v7 = vcombine.high %v3734_v3, %v3738_v9  ;;  %v3706_v39 = vld [vmem:[%s11826_s5 + $0x878] sm:$0xff]  ;;  %v7906_v43 = vcombine.low %v3710_v47, %v3714_v49 }
 0x3ad   : > { %v3814_v46 = vld [vmem:[%s11826_s5 + $0xbd8] sm:$0xff] }
 0x3ae   : > { %6169 = vmatpush2.bf16.msra.mxu1 %v7746_v11  ;;  %v3730_v11 = vld [vmem:[%s11826_s5 + $0x938] sm:$0xff] }
 0x3af   : > { %6170 = vmatprep.subr.bf16.mxu1 %v7739_v6  ;;  %8153 = vmatpush3.bf16.msra.mxu0 %v8742_v62  ;;  %v7930_v62 = vcombine.low %v3734_v3, %v3738_v9  ;;  %v3806_v51 = vld [vmem:[%s11826_s5 + $0xb98] sm:$0xff] }
 0x3b0   : > { %8154 = vmatprep.subr.bf16.mxu0 %v8743_v18  ;;  %v3798_v50 = vld [vmem:[%s11826_s5 + $0xb58] sm:$0xff] }
 0x3b1   : > { %v3790_v9 = vld [vmem:[%s11826_s5 + $0xb18] sm:$0xff] }
 0x3b2   : > { %6171 = vmatpush2.bf16.msra.mxu1 %v7738_v19 }
 0x3b3   : > { %6172 = vmatprep.subr.bf16.mxu1 %v7731_v27  ;;  %8155 = vmatpush3.bf16.msra.mxu0 %v8744_v24  ;;  %v8753_v24 = vld [vmem:[%s11828_s7 + $0x140] sm:$0xff]  }
 0x3b4   : > { %8156 = vmatprep.subr.bf16.mxu0 %v8745_v33  ;;  %v8754_v33 = vld [vmem:[%s11828_s7 + $0x100] sm:$0xff]  }
 0x3b6   : > { %6173 = vmatpush2.bf16.msra.mxu1 %v7730_v26 }
 0x3b7   : > { %6174 = vmatprep.subr.bf16.mxu1 %v7723_v56  ;;  %8157 = vmatpush3.bf16.msra.mxu0 %v8746_v59  ;;  %v7915_v56 = vcombine.high %v3718_v48, %v3722_v32  ;;  %v8755_v59 = vld [vmem:[%s11828_s7 + $0x278] sm:$0xff]  }
 0x3b8   : > { %8158 = vmatprep.subr.bf16.mxu0 %v8747_v22  ;;  %v7914_v22 = vcombine.low %v3718_v48, %v3722_v32 }
 0x3ba   : > { %6175 = vmatpush2.bf16.msra.mxu1 %v7722_v28  ;;  %v7907_v28 = vcombine.high %v3710_v47, %v3714_v49  ;;  %v3836_v47 = vrot.slane %v11300_v40, %v9326_v31 }
 0x3bb   : > { %6176 = vmatprep.subr.bf16.mxu1 %v7715_v36  ;;  %8159 = vmatpush3.bf16.msra.mxu0 %v8748_v38  ;;  %v3702_v36 = vld [vmem:[%s11826_s5 + $0x858] sm:$0xff] }
 0x3bc   : > { %8160 = vmatprep.subr.bf16.mxu0 %v8749_v44  ;;  %v7899_v38 = vcombine.high %v3702_v36, %v3706_v39  ;;  %v3694_v44 = vld [vmem:[%s11826_s5 + $0x818] sm:$0xff] }
 0x3be   : > { %6177 = vmatpush2.bf16.msra.mxu1 %v7714_v45  ;;  %v3698_v45 = vld [vmem:[%s11826_s5 + $0x838] sm:$0xff] }
 0x3bf   : > { %6178 = vmatprep.subr.bf16.mxu1 %v7707_v53  ;;  %8161 = vmatpush3.bf16.msra.mxu0 %v8750_v4  ;;  %v7898_v53 = vcombine.low %v3702_v36, %v3706_v39  ;;  %v7891_v0 = vcombine.high %v3694_v44, %v3698_v45  ;;  %v3794_v4 = vld [vmem:[%s11826_s5 + $0xb38] sm:$0xff]  ;;  %v8725_v36 = vld [vmem:[%s11828_s7 + $0xf0] sm:$0xff]  }
 0x3c2   : > { %6179 = vmatpush2.bf16.msra.mxu1 %v7706_v25  ;;  %v3818_v25 = vld [vmem:[%s11826_s5 + $0xbf8] sm:$0xff] }
 0x3c3   : > { %6180 = vmatprep.subr.bf16.mxu1 %v7699_v1  ;;  %v7890_v1 = vcombine.low %v3694_v44, %v3698_v45  ;;  %v8011_v30 = vcombine.high %v3814_v46, %v3818_v25  ;;  %v8727_v44 = vld [vmem:[%s11828_s7 + $0xe8] sm:$0xff]  }
 0x3c6   : > { %6181 = vmatpush2.bf16.msra.mxu1 %v7698_v37  ;;  %v3810_v37 = vld [vmem:[%s11826_s5 + $0xbb8] sm:$0xff] }
 0x3c7   : > { %6232 = vmatprep.subr.bf16.mxu1 %v7947_v61  ;;  %v8010_v61 = vcombine.low %v3814_v46, %v3818_v25  ;;  %v8003_v63 = vcombine.high %v3806_v51, %v3810_v37 }
 0x3c9   : > { %v11512_v12 = vpop.f32.mrf.mxu1  ;;  %v11514_v2 = vpop.f32.mrf.mxu0  ;;  %6183 = vmatmul.mubr.bf16.vlgmr.msra.gmra.mxu1 %v10436_v17  ;;  %v3726_v17 = vld [vmem:[%s11826_s5 + $0x918] sm:$0xff] }
 0x3ca   : > { %6233 = vmatpush1.bf16.msra.mxu1 %v7946_v57  ;;  %8018 = vmatprep.mubr.msk.bf16.mxu1 %vm10464_vm11, %v10482_v42  ;;  %v8751_v42 = vld [vmem:[%s11828_s7 + $0x148] sm:$0xff]   ;;  %v7923_v27 = vcombine.high %v3726_v17, %v3730_v11  ;;  %v7922_v26 = vcombine.low %v3726_v17, %v3730_v11  ;;  %v3802_v57 = vld [vmem:[%s11826_s5 + $0xb78] sm:$0xff] }
 0x3cb   : > { %v11523_v58 = vpop.f32.mrf.mxu1  ;;  %v11525_v5 = vpop.f32.mrf.mxu0  ;;  %6234 = vmatprep.subr.bf16.mxu1 %v7939_v60  ;;  %8162 = vmatprep.subr.bf16.mxu0 %v8751_v42  ;;  %v8002_v60 = vcombine.low %v3806_v51, %v3810_v37  ;;  %v7995_v3 = vcombine.high %v3798_v50, %v3802_v57  ;;  %v3782_v17 = vld [vmem:[%s11826_s5 + $0xad8] sm:$0xff]  ;;  %v7986_v42 = vcombine.low %v3790_v9, %v3794_v4  ;;  %v8730_v37 = vld [vmem:[%s11828_s7 + $0xa0] sm:$0xff]  }
 0x3cc   : > { %8163 = vmatpush3.bf16.msra.mxu0 %v8752_v15  ;;  %v3786_v11 = vld [vmem:[%s11826_s5 + $0xaf8] sm:$0xff] }
 0x3cd   : > { %v5942_v6 = vpop.f32.mrf.mxu1  ;;  %v6065_v13 = vpop.f32.mrf.mxu0  ;;  %8164 = vmatprep.subr.bf16.mxu0 %v8753_v24  ;;  %v3778_v15 = vld [vmem:[%s11826_s5 + $0xab8] sm:$0xff] }
 0x3ce   : > { %6235 = vmatpush1.bf16.msra.mxu1 %v7938_v52  ;;  %v7994_v52 = vcombine.low %v3798_v50, %v3802_v57  ;;  %v7979_v6 = vcombine.high %v3782_v17, %v3786_v11  ;;  %v3774_v13 = vld [vmem:[%s11826_s5 + $0xa98] sm:$0xff]  ;;  %v8733_v57 = vld [vmem:[%s11828_s7 + $0xd0] sm:$0xff]  }
 0x3cf   : > { %v5943_v18 = vpop.f32.mrf.mxu1  ;;  %v6066_v19 = vpop.f32.mrf.mxu0  ;;  %6236 = vmatprep.subr.bf16.mxu1 %v7931_v7  ;;  %v7987_v7 = vcombine.high %v3790_v9, %v3794_v4  ;;  %v7970_v48 = vcombine.low %v3774_v13, %v3778_v15  ;;  %v3758_v24 = vld [vmem:[%s11826_s5 + $0xa18] sm:$0xff]  ;;  %v8736_v4 = vld [vmem:[%s11828_s7 + $0x88] sm:$0xff]  }
 0x3d0   : > { %8165 = vmatpush3.bf16.msra.mxu0 %v8754_v33  ;;  %v7971_v18 = vcombine.high %v3774_v13, %v3778_v15  ;;  %v3766_v19 = vld [vmem:[%s11826_s5 + $0xa58] sm:$0xff]  ;;  %v8774_v13 = vld [vmem:[%s11828_s7 + $0x1b0] sm:$0xff]   ;;  %v8775_v15 = vld [vmem:[%s11828_s7 + $0x1e8] sm:$0xff]  }
 0x3d1   : > { %8194 = vmatprep.subr.bf16.mxu0 %v8755_v59  ;;  %v3762_v33 = vld [vmem:[%s11826_s5 + $0xa38] sm:$0xff] }
 0x3d2   : > { %6237 = vmatpush1.bf16.msra.mxu1 %v7930_v62  ;;  %v7978_v62 = vcombine.low %v3782_v17, %v3786_v11  ;;  %v7954_v49 = vcombine.low %v3758_v24, %v3762_v33  ;;  %v8723_v59 = vld [vmem:[%s11828_s7 + $0xf8] sm:$0xff]  }
 0x3d3   : > { %6238 = vmatprep.subr.bf16.mxu1 %v7923_v27  ;;  %v3770_v27 = vld [vmem:[%s11826_s5 + $0xa78] sm:$0xff] }
 0x3d4   : > { %v7963_v32 = vcombine.high %v3766_v19, %v3770_v27  ;;  %v8732_v50 = vld [vmem:[%s11828_s7 + $0x98] sm:$0xff]  }
 0x3d5   : > { %v8772_v11 = vld [vmem:[%s11828_s7 + $0x1b8] sm:$0xff]  }
 0x3d6   : > { %6239 = vmatpush1.bf16.msra.mxu1 %v7922_v26  ;;  %v7962_v26 = vcombine.low %v3766_v19, %v3770_v27  ;;  %v8778_v19 = vld [vmem:[%s11828_s7 + $0x1a0] sm:$0xff]   ;;  %v8779_v27 = vld [vmem:[%s11828_s7 + $0x1d8] sm:$0xff]  }
 0x3d7   : > { %6240 = vmatprep.subr.bf16.mxu1 %v7915_v56  ;;  %v7955_v56 = vcombine.high %v3758_v24, %v3762_v33  ;;  %v8782_v24 = vld [vmem:[%s11828_s7 + $0x190] sm:$0xff]   ;;  %v3840_v33 = vrot.slane %v11300_v40, %v443_v8 }
 0x3da   : > { %6241 = vmatpush1.bf16.msra.mxu1 %v7914_v22  ;;  %v5941_v22 = vadd.f32 %v11523_v58, %v3836_v47 }
 0x3db   : > { %6242 = vmatprep.subr.bf16.mxu1 %v7907_v28  ;;  %v8724_v28 = vld [vmem:[%s11828_s7 + $0xb8] sm:$0xff]  }
 0x3dc   : > { %v5982_v58 = vadd.f32 %v11330_v54, %v5941_v22  ;;  %v8728_v54 = vld [vmem:[%s11828_s7 + $0xa8] sm:$0xff]  }
 0x3de   : > { %6243 = vmatpush1.bf16.msra.mxu1 %v7906_v43  ;;  %v8726_v43 = vld [vmem:[%s11828_s7 + $0xb0] sm:$0xff]  }
 0x3df   : > { %6244 = vmatprep.subr.bf16.mxu1 %v7899_v38 }
 0x3e2   : > { %6245 = vmatpush1.bf16.msra.mxu1 %v7898_v53 }
 0x3e3   : > { %6246 = vmatprep.subr.bf16.mxu1 %v7891_v0 }
 0x3e6   : > { %6247 = vmatpush1.bf16.msra.mxu1 %v7890_v1  ;;  %v8729_v1 = vld [vmem:[%s11828_s7 + $0xe0] sm:$0xff]  }
 0x3e7   : > { %6248 = vmatprep.subr.bf16.mxu1 %v8011_v30 }
 0x3ea   : > { %6249 = vmatpush2.bf16.msra.mxu1 %v8010_v61  ;;  %v8731_v61 = vld [vmem:[%s11828_s7 + $0xd8] sm:$0xff]  }
 0x3eb   : > { %6250 = vmatprep.subr.bf16.mxu1 %v8003_v63  ;;  %v3832_v63 = vrot.slane %v11300_v40, %v9320_v29  ;;  %v8735_v29 = vld [vmem:[%s11828_s7 + $0xc8] sm:$0xff]  }
 0x3ee   : > { %6251 = vmatpush2.bf16.msra.mxu1 %v8002_v60  ;;  %v5939_v60 = vadd.f32 %v11512_v12, %v3832_v63  ;;  %v8737_v12 = vld [vmem:[%s11828_s7 + $0xc0] sm:$0xff]   ;;  %v8759_v63 = vld [vmem:[%s11828_s7 + $0x268] sm:$0xff]  }
 0x3ef   : > { %6252 = vmatprep.subr.bf16.mxu1 %v7995_v3  ;;  %v8734_v3 = vld [vmem:[%s11828_s7 + $0x90] sm:$0xff]  }
 0x3f0   : > { %v5980_v9 = vadd.f32 %v11325_v55, %v5939_v60  ;;  %v8771_v55 = vld [vmem:[%s11828_s7 + $0x1f8] sm:$0xff]   ;;  %v8762_v60 = vld [vmem:[%s11828_s7 + $0x220] sm:$0xff]  }
 0x3f2   : > { %6253 = vmatpush2.bf16.msra.mxu1 %v7994_v52 }
 0x3f3   : > { %6254 = vmatprep.subr.bf16.mxu1 %v7987_v7  ;;  %v8738_v7 = vld [vmem:[%s11828_s7 + $0x80] sm:$0xff]  }
 0x3f6   : > { %6255 = vmatpush2.bf16.msra.mxu1 %v7986_v42 }
 0x3f7   : > { %6256 = vmatprep.subr.bf16.mxu1 %v7979_v6  ;;  %v8773_v6 = vld [vmem:[%s11828_s7 + $0x1f0] sm:$0xff]  }
 0x3fa   : > { %6257 = vmatpush2.bf16.msra.mxu1 %v7978_v62  ;;  %v8776_v62 = vld [vmem:[%s11828_s7 + $0x1a8] sm:$0xff]  }
 0x3fb   : > { %6258 = vmatprep.subr.bf16.mxu1 %v7971_v18  ;;  %v8777_v18 = vld [vmem:[%s11828_s7 + $0x1e0] sm:$0xff]  }
 0x3fe   : > { %6259 = vmatpush2.bf16.msra.mxu1 %v7970_v48  ;;  %v8780_v48 = vld [vmem:[%s11828_s7 + $0x198] sm:$0xff]  }
 0x3ff   : > { %6260 = vmatprep.subr.bf16.mxu1 %v7963_v32  ;;  %v8781_v32 = vld [vmem:[%s11828_s7 + $0x1d0] sm:$0xff]  }
 0x402   : > { %6261 = vmatpush2.bf16.msra.mxu1 %v7962_v26  ;;  %v3844_v26 = vrot.slane %v11300_v40, %v447_v16  ;;  %v8784_v16 = vld [vmem:[%s11828_s7 + $0x188] sm:$0xff]  }
 0x403   : > { %6262 = vmatprep.subr.bf16.mxu1 %v7955_v56  ;;  %v6062_v56 = vadd.f32 %v11514_v2, %v3840_v33  ;;  %v3848_v33 = vrot.slane %v11300_v40, %v451_v10 }
 0x406   : > { %6263 = vmatpush2.bf16.msra.mxu1 %v7954_v49  ;;  %v6299_v49 = vshll.u32 %v11357_v21, 16 }
 0x407   : > { %8128 = vmatprep.subr.bf16.mxu1 %v8723_v59  ;;  %v6064_v59 = vadd.f32 %v11525_v5, %v3844_v26  ;;  %v3852_v26 = vrot.slane %v11300_v40, %v455_v20 }
 0x409   : > { %v6020_v31 = vpop.f32.mrf.mxu1  ;;  %8019 = vmatmul.mubr.msk.bf16.vlgmr.msra.gmra.mxu1 %vm10464_vm11, %v10584_v14 }
 0x40a   : > { %v11635_v39 = vpop.f32.mrf.mxu0  ;;  %8129 = vmatpush3.bf16.msra.mxu1 %v8724_v28  ;;  %v6021_v52 = vadd.f32 %v6020_v31, %v5980_v9  ;;  %v8783_v31 = vld [vmem:[%s11828_s7 + $0x1c8] sm:$0xff]   ;;  %v8765_v9 = vld [vmem:[%s11828_s7 + $0x250] sm:$0xff]  }
 0x40b   : > { %v6022_v38 = vpop.f32.mrf.mxu1  ;;  %8130 = vmatprep.subr.bf16.mxu1 %v8725_v36 }
 0x40c   : > { %v6023_v45 = vadd.f32 %v6022_v38, %v5982_v58  ;;  %v11644_v53 = vpop.f32.mrf.mxu0  ;;  %v6275_v17 = vmax.f32 %v6021_v52, 0.0  ;;  %v6301_v38 = vrot.slane %v6299_v49, 1  ;;  %v8767_v52 = vld [vmem:[%s11828_s7 + $0x248] sm:$0xff]  }
 0x40d   : > { %v6024_v0 = vpop.f32.mrf.mxu1 }
 0x40e   : > { %v6276_v14 = vmax.f32 %v6023_v45, 0.0  ;;  %v6147_v46 = vpop.f32.mrf.mxu0  ;;  %8131 = vmatpush3.bf16.msra.mxu1 %v8726_v43  ;;  %v6283_v42 = vpack.c.bf16 %v6275_v17, %v6275_v17  ;;  %v8768_v17 = vld [vmem:[%s11828_s7 + $0x208] sm:$0xff]  }
 0x40f   : > { %v6025_v25 = vpop.f32.mrf.mxu1  ;;  %8132 = vmatprep.subr.bf16.mxu1 %v8727_v44 }
 0x410   : > { %v6284_v30 = vpack.c.bf16 %v6276_v14, %v6276_v14  ;;  %v6148_v51 = vpop.f32.mrf.mxu0  ;;  %v6297_v14 = vshrl.u32 %v11357_v21, 16  ;;  %v8786_v25 = vld [vmem:[%s11828_s7 + $0x180] sm:$0xff]   ;;  %v8757_v21 = vld [vmem:[%s11828_s7 + $0x270] sm:$0xff]  }
 0x412   : > { %8133 = vmatpush3.bf16.msra.mxu1 %v8728_v54  ;;  %7028 = vmatprep.mubr.bf16.mxu1 %v6284_v30 }
 0x413   : > { %8134 = vmatprep.subr.bf16.mxu1 %v8729_v1  ;;  %v6302_v1 = vor.u32 %v6301_v38, %v6297_v14 }
 0x416   : > { %8135 = vmatpush3.bf16.msra.mxu1 %v8730_v37  ;;  %v6306_v37 = vsel %vm10476_vm12, %v6302_v1, 0 }
 0x417   : > { %8136 = vmatprep.subr.bf16.mxu1 %v8731_v61  ;;  %v8758_v61 = vld [vmem:[%s11828_s7 + $0x230] sm:$0xff]  }
 0x41a   : > { %8137 = vmatpush3.bf16.msra.mxu1 %v8732_v50  ;;  %v8760_v50 = vld [vmem:[%s11828_s7 + $0x228] sm:$0xff]  }
 0x41b   : > { %8138 = vmatprep.subr.bf16.mxu1 %v8733_v57  ;;  %v8761_v57 = vld [vmem:[%s11828_s7 + $0x260] sm:$0xff]  }
 0x41e   : > { %8139 = vmatpush3.bf16.msra.mxu1 %v8734_v3  ;;  %v8763_v3 = vld [vmem:[%s11828_s7 + $0x258] sm:$0xff]  }
 0x41f   : > { %8140 = vmatprep.subr.bf16.mxu1 %v8735_v29  ;;  %v8764_v29 = vld [vmem:[%s11828_s7 + $0x218] sm:$0xff]  }
 0x422   : > { %8141 = vmatpush3.bf16.msra.mxu1 %v8736_v4  ;;  %v8766_v4 = vld [vmem:[%s11828_s7 + $0x210] sm:$0xff]  }
 0x423   : > { %8142 = vmatprep.subr.bf16.mxu1 %v8737_v12  ;;  %v6292_v12 = vshll.u32 %v11422_v35, 16 }
 0x426   : > { %8143 = vmatpush3.bf16.msra.mxu1 %v8738_v7 }
 0x427   : > { %8172 = vmatprep.subr.bf16.mxu1 %v8771_v55  ;;  %v8769_v55 = vld [vmem:[%s11828_s7 + $0x240] sm:$0xff]  }
 0x429   : > { %7029 = vmatmul.mubr.bf16.vlgmr.msra.gmra.mxu1 %v6283_v42 }
 0x42a   : > { %8173 = vmatpush3.bf16.msra.mxu1 %v8772_v11  ;;  %v6294_v11 = vrot.slane %v6292_v12, 1 }
 0x42b   : > { %8174 = vmatprep.subr.bf16.mxu1 %v8773_v6 }
 0x42e   : > { %8175 = vmatpush3.bf16.msra.mxu1 %v8774_v13  ;;  %v6290_v13 = vshrl.u32 %v11422_v35, 16 }
 0x42f   : > { %8176 = vmatprep.subr.bf16.mxu1 %v8775_v15 }
 0x432   : > { %8177 = vmatpush3.bf16.msra.mxu1 %v8776_v62  ;;  %v8770_v62 = vld [vmem:[%s11828_s7 + $0x200] sm:$0xff]  }
 0x433   : > { %8178 = vmatprep.subr.bf16.mxu1 %v8777_v18 }
 0x436   : > { %8179 = vmatpush3.bf16.msra.mxu1 %v8778_v19  ;;  %v6295_v19 = vor.u32 %v6294_v11, %v6290_v13 }
 0x437   : > { %8180 = vmatprep.subr.bf16.mxu1 %v8779_v27 }
 0x438   : > { %v6305_v27 = vsel %vm10476_vm12, %v6295_v19, 0 }
 0x43a   : > { %8181 = vmatpush3.bf16.msra.mxu1 %v8780_v48 }
 0x43b   : > { %8182 = vmatprep.subr.bf16.mxu1 %v8781_v32 }
 0x43e   : > { %8183 = vmatpush3.bf16.msra.mxu1 %v8782_v24 }
 0x43f   : > { %8184 = vmatprep.subr.bf16.mxu1 %v8783_v31 }
 0x442   : > { %8185 = vmatpush3.bf16.msra.mxu1 %v8784_v16 }
 0x449   : > { %v6102_v47 = vpop.f32.mrf.mxu1 }
 0x44a   : > { %v6103_v22 = vadd.f32 %v6102_v47, %v6062_v56  ;;  %v11728_v28 = vpop.f32.mrf.mxu0 }
 0x44b   : > { %v6104_v36 = vpop.f32.mrf.mxu1 }
 0x44c   : > { %v6144_v8 = vadd.f32 %v11635_v39, %v6103_v22  ;;  %v6105_v58 = vadd.f32 %v6104_v36, %v6064_v59  ;;  %v11734_v43 = vpop.f32.mrf.mxu0  ;;  %v8785_v39 = vld [vmem:[%s11828_s7 + $0x1c0] sm:$0xff]  }
 0x44d   : > { %v6106_v2 = vpop.f32.mrf.mxu1  ;;  %8186 = vmatprep.subr.bf16.mxu1 %v8785_v39 }
 0x44e   : > { %v6146_v5 = vadd.f32 %v11644_v53, %v6105_v58  ;;  %v6229_v44 = vpop.f32.mrf.mxu0  ;;  %v6277_v45 = vmax.f32 %v6144_v8, 0.0  ;;  %v8756_v53 = vld [vmem:[%s11828_s7 + $0x238] sm:$0xff]   ;;  %8187 = vmatpush3.bf16.msra.mxu1 %v8786_v25 }
 0x44f   : > { %v6107_v0 = vpop.f32.mrf.mxu1 }
 0x450   : > { %v6278_v46 = vmax.f32 %v6146_v5, 0.0  ;;  %v6230_v54 = vpop.f32.mrf.mxu0  ;;  %v6285_v51 = vpack.c.bf16 %v6277_v45, %v6277_v45 }
 0x452   : > { %v6286_v30 = vpack.c.bf16 %v6278_v46, %v6278_v46 }
 0x454   : > { %7068 = vmatprep.mubr.bf16.mxu0 %v6286_v30 }
 0x455   : > { %7069 = vmatmul.mubr.bf16.vlgmr.msra.gmra.mxu0 %v6285_v51 }
 0x456   : > { %8195 = vmatpush3.bf16.msra.mxu0 %v8756_v53  ;;  %8101 = vmatprep.mubr.msk.bf16.mxu0 %vm10464_vm11, %v6306_v37 }
 0x457   : > { %8196 = vmatprep.subr.bf16.mxu0 %v8757_v21 }
 0x45a   : > { %8197 = vmatpush3.bf16.msra.mxu0 %v8758_v61 }
 0x45b   : > { %8198 = vmatprep.subr.bf16.mxu0 %v8759_v63 }
 0x45e   : > { %8199 = vmatpush3.bf16.msra.mxu0 %v8760_v50 }
 0x45f   : > { %8200 = vmatprep.subr.bf16.mxu0 %v8761_v57 }
 0x462   : > { %8201 = vmatpush3.bf16.msra.mxu0 %v8762_v60 }
 0x463   : > { %8202 = vmatprep.subr.bf16.mxu0 %v8763_v3 }
 0x466   : > { %8203 = vmatpush3.bf16.msra.mxu0 %v8764_v29 }
 0x467   : > { %8204 = vmatprep.subr.bf16.mxu0 %v8765_v9 }
 0x46a   : > { %v8122_v7 = vpop.f32.mrf.mxu0  ;;  %8205 = vmatpush3.bf16.msra.mxu0 %v8766_v4 }
 0x46b   : > { %8206 = vmatprep.subr.bf16.mxu0 %v8767_v52 }
 0x46c   : > { %v8123_v42 = vpop.f32.mrf.mxu0 }
 0x46d   : > { %v8124_v6 = vadd.f32 %v8123_v42, %v8122_v7 }
 0x46e   : > { %v8125_v15 = vpop.f32.mrf.mxu0  ;;  %8207 = vmatpush3.bf16.msra.mxu0 %v8768_v17 }
 0x46f   : > { %8208 = vmatprep.subr.bf16.mxu0 %v8769_v55 }
 0x470   : > { %v8126_v18 = vpop.f32.mrf.mxu0 }
 0x472   : > { %8209 = vmatpush3.bf16.msra.mxu0 %v8770_v62 }
 0x475   : > { %8102 = vmatmul.mubr.msk.bf16.vlgmr.msra.gmra.mxu0 %vm10464_vm11, %v6305_v27 }
 0x489   : > { %v6184_v48 = vpop.f32.mrf.mxu1 }
 0x48a   : > { %v6185_v56 = vadd.f32 %v6184_v48, %v3848_v33 }
 0x48b   : > { %v6186_v32 = vpop.f32.mrf.mxu1 }
 0x48c   : > { %v6187_v47 = vadd.f32 %v6186_v32, %v3852_v26  ;;  %v6226_v41 = vadd.f32 %v11728_v28, %v6185_v56  ;;  %v6991_v28 = vadd.f32 %v8124_v6, %v8020_v23 }
 0x48d   : > { %v6188_v24 = vpop.f32.mrf.mxu1 }
 0x48e   : > { %v6228_v34 = vadd.f32 %v11734_v43, %v6187_v47 }
 0x48f   : > { %v6189_v35 = vpop.f32.mrf.mxu1 }
 0x4c9   : > { %v6266_v49 = vpop.f32.mrf.mxu1 }
 0x4ca   : > { %v6267_v59 = vadd.f32 %v6266_v49, %v6226_v41 }
 0x4cb   : > { %v6268_v22 = vpop.f32.mrf.mxu1 }
 0x4cc   : > { %v6269_v36 = vadd.f32 %v6268_v22, %v6228_v34  ;;  %v6279_v31 = vmax.f32 %v6267_v59, 0.0 }
 0x4cd   : > { %v6270_v8 = vpop.f32.mrf.mxu1 }
 0x4ce   : > { %v6280_v58 = vmax.f32 %v6269_v36, 0.0  ;;  %v6287_v10 = vpack.c.bf16 %v6279_v31, %v6279_v31 }
 0x4cf   : > { %v6271_v16 = vpop.f32.mrf.mxu1 }
 0x4d0   : > { %v6288_v2 = vpack.c.bf16 %v6280_v58, %v6280_v58 }
 0x4d2   : > { %7108 = vmatprep.mubr.bf16.mxu1 %v6288_v2 }
 0x4d3   : > { %7109 = vmatmul.mubr.bf16.vlgmr.msra.gmra.mxu1 %v6287_v10 }
 0x4e9   : > { %v8144_v20 = vpop.f32.mrf.mxu1 }
 0x4eb   : > { %v8145_v40 = vpop.f32.mrf.mxu1 }
 0x4ec   : > { %v8146_v38 = vadd.f32 %v8145_v40, %v8144_v20 }
 0x4ed   : > { %v8147_v5 = vpop.f32.mrf.mxu1 }
 0x4ee   : > { %v7031_v43 = vadd.f32 %v8146_v38, %v6991_v28 }
 0x4ef   : > { %v8148_v44 = vpop.f32.mrf.mxu1 }
 0x515   : > { %v8166_v45 = vpop.f32.mrf.mxu0 }
 0x517   : > { %v8167_v0 = vpop.f32.mrf.mxu0 }
 0x518   : > { %v8168_v14 = vadd.f32 %v8167_v0, %v8166_v45 }
 0x519   : > { %v8169_v39 = vpop.f32.mrf.mxu0 }
 0x51a   : > { %v7071_v46 = vadd.f32 %v8168_v14, %v7031_v43 }
 0x51b   : > { %v8170_v54 = vpop.f32.mrf.mxu0 }
 0x535   : > { %v8210_v25 = vpop.f32.mrf.mxu0 }
 0x537   : > { %v8211_v1 = vpop.f32.mrf.mxu0 }
 0x538   : > { %v8212_v30 = vadd.f32 %v8211_v1, %v8210_v25 }
 0x539   : > { %v8213_v53 = vpop.f32.mrf.mxu0 }
 0x53b   : > { %v8214_v51 = vpop.f32.mrf.mxu0 }
 0x593   : > { %v8188_v21 = vpop.f32.mrf.mxu1 }
 0x595   : > { %v8189_v37 = vpop.f32.mrf.mxu1 }
 0x596   : > { %v8190_v61 = vadd.f32 %v8189_v37, %v8188_v21 }
 0x597   : > { %v8191_v63 = vpop.f32.mrf.mxu1 }
 0x598   : > { %v7111_v50 = vadd.f32 %v8190_v61, %v7071_v46 }
 0x599   : > { %v8192_v57 = vpop.f32.mrf.mxu1 }
 0x59a   : > { %v7151_v60 = vadd.f32 %v8212_v30, %v7111_v50 }
 0x59c   : > { %v7156_v3 = vsub.f32 0.0, %v7151_v60 }
 0x59e   : > { %v7157_v29 = vmul.f32 1.442695, %v7156_v3 }
 0x5a0   : > { %8787 = vpow2.f32 %v7157_v29 }
 0x5ad   : > { %v8788_v9 = vpop.eup %8787 }
 0x5ae   : > { %v7159_v4 = vadd.f32 1.0, %v8788_v9 }
 0x5b0   : > { %8789 = vrcp.f32 %v7159_v4 }
 0x5bd   : > { %v8790_v52 = vpop.eup %8789 }
 0x5be   : > { %7162 = vst [vmem:[%s330_s28] sm:$0xff] %v8790_v52 }
 0x5bf PF: > { %s19_s30 = sadd.s32 1, %s8798_s30  }
 0x5c0   : > { %p16_p4 = scmp.ge.s32.totalorder %s19_s30, 4  }
 0x5c2   :  { %18 = sbr.rel (!%p16_p4) target bundleno = 1 (0x1), region = 86 }

</bundles_post_ra>
